<compile_context>
chip_gen: v5e
topology: v5e:2x2
jax: 0.10.0
libtpu: 0.0.40
codegen_flags: <defaults>
</compile_context>

<pallas_src>
import functools

import jax
import jax.numpy as jnp
from jax.experimental import pallas as pl
from jax.experimental.pallas import tpu as pltpu

NZ = 32                 # `nz` global in the reference script
NZ_PAD = 128            # latent padded to a full lane tile
LRELU_SLOPE = 0.2
BN_EPS = 1e-5
TM_MAX = 256            # max row tile: small enough for v7x scoped VMEM, MXU friendly


def _round_up(x, m):
    return (x + m - 1) // m * m


def _m_tile(m):
    """Padded row count + row tile (multiple of 16 for packed-bf16 sublanes)."""
    m16 = _round_up(m, 16)
    if m16 <= TM_MAX:
        return m16, m16
    return _round_up(m, TM_MAX), TM_MAX


# ----------------------------------------------------------------------------
# Pallas kernels
# ----------------------------------------------------------------------------
def _matmul_act_kernel(x_ref, w_ref, shift_ref, o_ref, *, activation):
    """o = act(x @ w + shift); bf16 x bf16 -> f32 accumulation on the MXU."""
    acc = jnp.dot(x_ref[...], w_ref[...], preferred_element_type=jnp.float32)
    y = acc + shift_ref[...]
    if activation == "leaky_relu":
        y = jnp.where(y > 0, y, LRELU_SLOPE * y)
    elif activation == "relu":
        y = jnp.maximum(y, 0.0)
    elif activation == "sigmoid":
        # exp and approximate reciprocal both land on the EUP slot.
        y = pl.reciprocal(1.0 + jnp.exp(-y), approx=True)
    o_ref[...] = y.astype(o_ref.dtype)


def fused_matmul(x, w, shift, activation="none", out_dtype=jnp.float32):
    """act(x @ w + shift) with zero-padded, MXU/lane-friendly operand shapes."""
    M, K = x.shape
    K2, N = w.shape
    assert K == K2
    Kp = _round_up(K, 128)
    Np = _round_up(N, 128)
    Mp, TM = _m_tile(M)

    xp = jnp.pad(x.astype(jnp.bfloat16), ((0, Mp - M), (0, Kp - K)))
    wp = jnp.pad(w.astype(jnp.bfloat16), ((0, Kp - K), (0, Np - N)))
    sp = jnp.pad(shift.reshape(1, N).astype(jnp.float32), ((0, 0), (0, Np - N)))

    out = pl.pallas_call(
        functools.partial(_matmul_act_kernel, activation=activation),
        out_shape=jax.ShapeDtypeStruct((Mp, Np), out_dtype),
        grid_spec=pltpu.PrefetchScalarGridSpec(
            num_scalar_prefetch=0,
            grid=(Mp // TM,),
            in_specs=[
                pl.BlockSpec((TM, Kp), lambda i: (i, 0)),
                pl.BlockSpec((Kp, Np), lambda i: (0, 0)),   # weights stay resident
                pl.BlockSpec((1, Np), lambda i: (0, 0)),
            ],
            out_specs=pl.BlockSpec((TM, Np), lambda i: (i, 0)),
        ),
        compiler_params=pltpu.CompilerParams(dimension_semantics=("parallel",)),
    )(xp, wp, sp)
    return out[:M, :N]


def _encoder_head_kernel(x_ref, w_ref, b_ref, eps_ref, mean_ref, logstd_ref, z_ref):
    """Fused [fc1 | fc2] matmul + reparameterization z = mean + eps*exp(logstd)."""
    h = jnp.dot(x_ref[...], w_ref[...], preferred_element_type=jnp.float32)
    h = h + b_ref[...]
    nzp = mean_ref.shape[-1]
    mean = h[:, :nzp]
    logstd = h[:, nzp:]
    z = mean + eps_ref[...] * jnp.exp(logstd)
    mean_ref[...] = mean
    logstd_ref[...] = logstd
    z_ref[...] = z.astype(z_ref.dtype)


def encoder_head(flat, w1, b1, w2, b2, eps):
    B, K = flat.shape
    Kp = _round_up(K, 128)
    Mp, TM = _m_tile(B)

    # fc1 in lanes [0:NZ] of the first 128-lane block, fc2 in the second block,
    # so mean / logstd come out as clean full-lane slabs.
    w = jnp.zeros((Kp, 2 * NZ_PAD), jnp.bfloat16)
    w = w.at[:K, :NZ].set(w1.astype(jnp.bfloat16))
    w = w.at[:K, NZ_PAD:NZ_PAD + NZ].set(w2.astype(jnp.bfloat16))
    bias = jnp.zeros((1, 2 * NZ_PAD), jnp.float32)
    bias = bias.at[0, :NZ].set(b1)
    bias = bias.at[0, NZ_PAD:NZ_PAD + NZ].set(b2)
    xp = jnp.pad(flat.astype(jnp.bfloat16), ((0, Mp - B), (0, Kp - K)))
    epsp = jnp.pad(eps.astype(jnp.float32), ((0, Mp - B), (0, NZ_PAD - NZ)))

    mean_p, logstd_p, z_p = pl.pallas_call(
        _encoder_head_kernel,
        out_shape=(
            jax.ShapeDtypeStruct((Mp, NZ_PAD), jnp.float32),
            jax.ShapeDtypeStruct((Mp, NZ_PAD), jnp.float32),
            jax.ShapeDtypeStruct((Mp, NZ_PAD), jnp.bfloat16),
        ),
        grid_spec=pltpu.PrefetchScalarGridSpec(
            num_scalar_prefetch=0,
            grid=(Mp // TM,),
            in_specs=[
                pl.BlockSpec((TM, Kp), lambda i: (i, 0)),
                pl.BlockSpec((Kp, 2 * NZ_PAD), lambda i: (0, 0)),
                pl.BlockSpec((1, 2 * NZ_PAD), lambda i: (0, 0)),
                pl.BlockSpec((TM, NZ_PAD), lambda i: (i, 0)),
            ],
            out_specs=(
                pl.BlockSpec((TM, NZ_PAD), lambda i: (i, 0)),
                pl.BlockSpec((TM, NZ_PAD), lambda i: (i, 0)),
                pl.BlockSpec((TM, NZ_PAD), lambda i: (i, 0)),
            ),
        ),
        compiler_params=pltpu.CompilerParams(dimension_semantics=("parallel",)),
    )(xp, w, bias, epsp)
    return mean_p[:B, :NZ], logstd_p[:B, :NZ], z_p[:B, :NZ]


# ----------------------------------------------------------------------------
# Host-side (trace-time) glue: NHWC im2col, BN folding, sub-pixel deconv
# ----------------------------------------------------------------------------
# TODO(synk): move im2col into the kernel (implicit GEMM via pl.ds tap slices)
# to avoid the k^2 host-side patch duplication at large batch sizes.
def im2col_nhwc(x, k, stride, pad):
    """x: [B, H, W, C] -> [B*Ho*Wo, k*k*C], feature order (kh, kw, C)."""
    B, H, W, C = x.shape
    xp = jnp.pad(x, ((0, 0), (pad, pad), (pad, pad), (0, 0)))
    Ho = (H + 2 * pad - k) // stride + 1
    Wo = (W + 2 * pad - k) // stride + 1
    taps = []
    for i in range(k):
        for j in range(k):
            taps.append(xp[:, i:i + stride * Ho:stride, j:j + stride * Wo:stride, :])
    p = jnp.stack(taps, axis=3)                       # [B, Ho, Wo, k*k, C]
    return p.reshape(B * Ho * Wo, k * k * C), Ho, Wo


def conv_bn_lrelu(x, w, b, gamma, beta, rm, rv, stride, pad, out_dtype=jnp.bfloat16):
    """Conv2d (weight [Cout,Cin,k,k]) + eval BatchNorm2d + LeakyReLU(0.2), NHWC."""
    B, H, W, Cin = x.shape
    Cout, _, k, _ = w.shape
    patches, Ho, Wo = im2col_nhwc(x, k, stride, pad)
    scale = gamma / jnp.sqrt(rv + BN_EPS)                          # [Cout]
    w_mat = w.transpose(2, 3, 1, 0).reshape(k * k * Cin, Cout) * scale[None, :]
    shift = (b - rm) * scale + beta
    y = fused_matmul(patches, w_mat, shift, "leaky_relu", out_dtype)
    return y.reshape(B, Ho, Wo, Cout)


# output parity -> {3x3 patch tap offset : transposed-conv kernel tap (0..3)}
_SUBPIX_TAPS = {0: {0: 3, 1: 1}, 1: {1: 2, 2: 0}}


def _subpixel_weight(w_t):
    """ConvTranspose2d(k=4, s=2, p=1) weight [Cin,Cout,4,4] -> [9*Cin, 4*Cout]."""
    Cin, Cout = w_t.shape[0], w_t.shape[1]
    blocks = []
    for r in (0, 1):
        for s in (0, 1):
            w_rs = jnp.zeros((3, 3, Cin, Cout), w_t.dtype)
            for dh, kh in _SUBPIX_TAPS[r].items():
                for dw, kw in _SUBPIX_TAPS[s].items():
                    w_rs = w_rs.at[dh, dw].set(w_t[:, :, kh, kw])
            blocks.append(w_rs.reshape(9 * Cin, Cout))
    return jnp.concatenate(blocks, axis=1)            # columns ordered (r, s, Cout)


def deconv(x, w_t, b, activation, out_dtype):
    """ConvTranspose2d(k=4, stride=2, pad=1) as a sub-pixel conv (no dilation)."""
    B, H, W, Cin = x.shape
    Cout = w_t.shape[1]
    patches, _, _ = im2col_nhwc(x, 3, 1, 1)           # [B*H*W, 9*Cin]
    w_all = _subpixel_weight(w_t)                     # [9*Cin, 4*Cout]
    shift = jnp.tile(b, 4)                            # bias per (r, s, Cout) column
    y = fused_matmul(patches, w_all, shift, activation, out_dtype)
    y = y.reshape(B, H, W, 2, 2, Cout)
    y = y.transpose(0, 1, 3, 2, 4, 5).reshape(B, 2 * H, 2 * W, Cout)
    return y


# ----------------------------------------------------------------------------
# Parameters and full forward
# ----------------------------------------------------------------------------
def init_params(key):
    ks = jax.random.split(key, 16)
    n = lambda k, s, sc=0.05: (sc * jax.random.normal(k, s)).astype(jnp.float32)
    return {
        # encoder convs: Conv2d weight layout [Cout, Cin, k, k]
        "c1_w": n(ks[0], (16, 1, 3, 3)),  "c1_b": n(ks[1], (16,)),
        "c2_w": n(ks[2], (32, 16, 3, 3)), "c2_b": n(ks[3], (32,)),
        "c3_w": n(ks[4], (32, 32, 3, 3)), "c3_b": n(ks[5], (32,)),
        # BatchNorm (eval-mode running stats / affine)
        "bn1_g": jnp.ones((16,), jnp.float32), "bn1_b": jnp.zeros((16,), jnp.float32),
        "bn1_m": jnp.zeros((16,), jnp.float32), "bn1_v": jnp.ones((16,), jnp.float32),
        "bn2_g": jnp.ones((32,), jnp.float32), "bn2_b": jnp.zeros((32,), jnp.float32),
        "bn2_m": jnp.zeros((32,), jnp.float32), "bn2_v": jnp.ones((32,), jnp.float32),
        "bn3_g": jnp.ones((32,), jnp.float32), "bn3_b": jnp.zeros((32,), jnp.float32),
        "bn3_m": jnp.zeros((32,), jnp.float32), "bn3_v": jnp.ones((32,), jnp.float32),
        # fully connected (stored as [in, out])
        "fc1_w": n(ks[6], (32 * 7 * 7, NZ)), "fc1_b": n(ks[7], (NZ,)),
        "fc2_w": n(ks[8], (32 * 7 * 7, NZ)), "fc2_b": n(ks[9], (NZ,)),
        "dfc_w": n(ks[10], (NZ, 32 * 7 * 7)), "dfc_b": n(ks[11], (32 * 7 * 7,)),
        # decoder: ConvTranspose2d weight layout [Cin, Cout, k, k]
        "d1_w": n(ks[12], (32, 16, 4, 4)), "d1_b": n(ks[13], (16,)),
        "d2_w": n(ks[14], (16, 1, 4, 4)),  "d2_b": n(ks[15], (1,)),
    }


def vae_forward(p, x, eps):
    B = x.shape[0]
    xh = x.transpose(0, 2, 3, 1)                                    # NCHW -> NHWC (once)
    h = conv_bn_lrelu(xh, p["c1_w"], p["c1_b"], p["bn1_g"], p["bn1_b"],
                      p["bn1_m"], p["bn1_v"], stride=2, pad=1)      # [B,14,14,16]
    h = conv_bn_lrelu(h, p["c2_w"], p["c2_b"], p["bn2_g"], p["bn2_b"],
                      p["bn2_m"], p["bn2_v"], stride=2, pad=1)      # [B,7,7,32]
    h = conv_bn_lrelu(h, p["c3_w"], p["c3_b"], p["bn3_g"], p["bn3_b"],
                      p["bn3_m"], p["bn3_v"], stride=1, pad=1)      # [B,7,7,32]
    # Reference runs the encoder twice; eval-mode BN => out1 == out2, compute once.
    flat = h.transpose(0, 3, 1, 2).reshape(B, 32 * 7 * 7)           # torch NCHW flatten
    mean, logstd, z = encoder_head(flat, p["fc1_w"], p["fc1_b"],
                                   p["fc2_w"], p["fc2_b"], eps)
    d = fused_matmul(z, p["dfc_w"], p["dfc_b"], "none", jnp.bfloat16)
    d = d.reshape(B, 32, 7, 7).transpose(0, 2, 3, 1)                # torch .view -> NHWC
    d = deconv(d, p["d1_w"], p["d1_b"], "relu", jnp.bfloat16)       # [B,14,14,16]
    d = deconv(d, p["d2_w"], p["d2_b"], "sigmoid", jnp.float32)     # [B,28,28,1]
    return d.transpose(0, 3, 1, 2), mean, logstd                    # NCHW output


# ----------------------------------------------------------------------------
# Pure-JAX f32 NCHW reference (torch semantics) for numerical validation
# ----------------------------------------------------------------------------
def vae_reference(p, x, eps):
    def bn(y, g, b, m, v):
        sh = (1, -1, 1, 1)
        return (y - m.reshape(sh)) / jnp.sqrt(v.reshape(sh) + BN_EPS) * g.reshape(sh) \
            + b.reshape(sh)

    def lrelu(y):
        return jnp.where(y > 0, y, LRELU_SLOPE * y)

    def conv(x_, w, b, s, pd):
        y = jax.lax.conv_general_dilated(
            x_, w, (s, s), [(pd, pd), (pd, pd)],
            dimension_numbers=("NCHW", "OIHW", "NCHW"))
        return y + b.reshape(1, -1, 1, 1)

    def conv_t(x_, w_t, b, s, pd):
        k = w_t.shape[2]
        w_conv = jnp.flip(w_t, (2, 3)).transpose(1, 0, 2, 3)        # [Cout,Cin,k,k]
        y = jax.lax.conv_general_dilated(
            x_, w_conv, (1, 1), [(k - 1 - pd, k - 1 - pd)] * 2,
            lhs_dilation=(s, s), dimension_numbers=("NCHW", "OIHW", "NCHW"))
        return y + b.reshape(1, -1, 1, 1)

    h = lrelu(bn(conv(x, p["c1_w"], p["c1_b"], 2, 1),
                 p["bn1_g"], p["bn1_b"], p["bn1_m"], p["bn1_v"]))
    h = lrelu(bn(conv(h, p["c2_w"], p["c2_b"], 2, 1),
                 p["bn2_g"], p["bn2_b"], p["bn2_m"], p["bn2_v"]))
    h = lrelu(bn(conv(h, p["c3_w"], p["c3_b"], 1, 1),
                 p["bn3_g"], p["bn3_b"], p["bn3_m"], p["bn3_v"]))
    flat = h.reshape(h.shape[0], -1)
    mean = flat @ p["fc1_w"] + p["fc1_b"]
    logstd = flat @ p["fc2_w"] + p["fc2_b"]
    z = mean + eps * jnp.exp(logstd)
    d = (z @ p["dfc_w"] + p["dfc_b"]).reshape(-1, 32, 7, 7)
    d = jnp.maximum(conv_t(d, p["d1_w"], p["d1_b"], 2, 1), 0.0)
    d = jax.nn.sigmoid(conv_t(d, p["d2_w"], p["d2_b"], 2, 1))
    return d, mean, logstd


if __name__ == "__main__":
    key = jax.random.PRNGKey(0)
    k_param, k_x, k_eps = jax.random.split(key, 3)

    params = init_params(k_param)
    # Linear(32*7*7, nz) pins the input spatial size at 28x28 (MNIST-style).
    x = jax.random.normal(k_x, (2, 1, 28, 28), dtype=jnp.float32)
    eps = jax.random.normal(k_eps, (2, NZ), dtype=jnp.float32)

    out3, mean, logstd = jax.jit(vae_forward)(params, x, eps)
    jax.block_until_ready((out3, mean, logstd))

    assert out3.shape == (2, 1, 28, 28)
    assert mean.shape == (2, NZ) and logstd.shape == (2, NZ)
    assert bool(jnp.all(jnp.isfinite(out3)))

    # Numerical check against the pure-JAX f32 reference (bf16 MXU tolerance).
    r_out3, r_mean, r_logstd = jax.jit(vae_reference)(params, x, eps)
    for got, ref, name in ((out3, r_out3, "out3"), (mean, r_mean, "mean"),
                           (logstd, r_logstd, "logstd")):
        err = float(jnp.max(jnp.abs(got - ref)))
        assert err < 5e-2, f"{name} mismatch vs reference: max|diff|={err}"

    print("KERNEL_OK")
</pallas_src>

<mosaic_0001>
module attributes {stable_mosaic.version = 11 : i64} {
  func.func @_matmul_act_kernel(%arg0: i32, %arg1: memref<256x128xbf16, #tpu.memory_space<vmem>>, %arg2: memref<128x128xbf16, #tpu.memory_space<vmem>>, %arg3: memref<1x128xf32, #tpu.memory_space<vmem>>, %arg4: memref<256x128xbf16, #tpu.memory_space<vmem>>) attributes {dimension_semantics = [#tpu.dimension_semantics<parallel>], iteration_bounds = array<i64: 2>, scalar_prefetch = 0 : i64, scratch_operands = 0 : i64, tpu.core_type = #tpu.core_type<tc>, window_params = [{transform_indices = @transform_0, window_bounds = array<i64: 256, 128>}, {pipeline_mode = #tpu.pipeline_mode<synchronous>, transform_indices = @transform_1, window_bounds = array<i64: 128, 128>}, {pipeline_mode = #tpu.pipeline_mode<synchronous>, transform_indices = @transform_2, window_bounds = array<i64: 1, 128>}, {transform_indices = @transform_3, window_bounds = array<i64: 256, 128>}]} {
    %c0 = arith.constant 0 : index
    %c0_0 = arith.constant 0 : index
    %0 = vector.load %arg1[%c0, %c0_0] : memref<256x128xbf16, #tpu.memory_space<vmem>>, vector<256x128xbf16>
    %c0_1 = arith.constant 0 : index
    %c0_2 = arith.constant 0 : index
    %1 = vector.load %arg2[%c0_1, %c0_2] : memref<128x128xbf16, #tpu.memory_space<vmem>>, vector<128x128xbf16>
    %cst = arith.constant dense<0.000000e+00> : vector<256x128xf32>
    %2 = tpu.matmul %0, %1, %cst {dimension_numbers = #tpu.dot_dimension_numbers<[1], [0], [0], [1], [0, 0, 1, 1], [], []>} : vector<256x128xbf16>, vector<128x128xbf16>, vector<256x128xf32> -> vector<256x128xf32>
    %c0_3 = arith.constant 0 : index
    %c0_4 = arith.constant 0 : index
    %3 = vector.load %arg3[%c0_3, %c0_4] : memref<1x128xf32, #tpu.memory_space<vmem>>, vector<1x128xf32>
    %4 = vector.broadcast %3 : vector<1x128xf32> to vector<256x128xf32>
    %5 = arith.addf %2, %4 : vector<256x128xf32>
    %cst_5 = arith.constant 0.000000e+00 : f32
    %6 = vector.broadcast %cst_5 : f32 to vector<256x128xf32>
    %7 = arith.cmpf ogt, %5, %6 : vector<256x128xf32>
    %cst_6 = arith.constant 2.000000e-01 : f32
    %8 = vector.broadcast %cst_6 : f32 to vector<256x128xf32>
    %9 = arith.mulf %8, %5 : vector<256x128xf32>
    %10 = arith.select %7, %5, %9 : vector<256x128xi1>, vector<256x128xf32>
    %11 = arith.truncf %10 : vector<256x128xf32> to vector<256x128xbf16>
    %c0_7 = arith.constant 0 : index
    %c0_8 = arith.constant 0 : index
    %12 = vector.load %arg4[%c0_7, %c0_8] : memref<256x128xbf16, #tpu.memory_space<vmem>>, vector<256x128xbf16>
    tpu.vector_store %arg4[%c0_7, %c0_8], %11 {strides = array<i32>} : memref<256x128xbf16, #tpu.memory_space<vmem>>, vector<256x128xbf16>,
    return
  }
  func.func @transform_0(%arg0: i32) -> (i32, i32) {
    %c0_i32 = arith.constant 0 : i32
    %c0_i32_0 = arith.constant 0 : i32
    return %arg0, %c0_i32 : i32, i32
  }
  func.func @transform_1(%arg0: i32) -> (i32, i32) {
    %c0_i32 = arith.constant 0 : i32
    %c0_i32_0 = arith.constant 0 : i32
    %c0_i32_1 = arith.constant 0 : i32
    return %c0_i32, %c0_i32_0 : i32, i32
  }
  func.func @transform_2(%arg0: i32) -> (i32, i32) {
    %c0_i32 = arith.constant 0 : i32
    %c0_i32_0 = arith.constant 0 : i32
    %c0_i32_1 = arith.constant 0 : i32
    return %c0_i32, %c0_i32_0 : i32, i32
  }
  func.func @transform_3(%arg0: i32) -> (i32, i32) {
    %c0_i32 = arith.constant 0 : i32
    %c0_i32_0 = arith.constant 0 : i32
    return %arg0, %c0_i32 : i32, i32
  }
}

module attributes {stable_mosaic.version = 11 : i64} {
  func.func @_matmul_act_kernel(%arg0: i32, %arg1: memref<112x256xbf16, #tpu.memory_space<vmem>>, %arg2: memref<256x128xbf16, #tpu.memory_space<vmem>>, %arg3: memref<1x128xf32, #tpu.memory_space<vmem>>, %arg4: memref<112x128xbf16, #tpu.memory_space<vmem>>) attributes {dimension_semantics = [#tpu.dimension_semantics<parallel>], iteration_bounds = array<i64: 1>, scalar_prefetch = 0 : i64, scratch_operands = 0 : i64, tpu.core_type = #tpu.core_type<tc>, window_params = [{transform_indices = @transform_0, window_bounds = array<i64: 112, 256>}, {pipeline_mode = #tpu.pipeline_mode<synchronous>, transform_indices = @transform_1, window_bounds = array<i64: 256, 128>}, {pipeline_mode = #tpu.pipeline_mode<synchronous>, transform_indices = @transform_2, window_bounds = array<i64: 1, 128>}, {transform_indices = @transform_3, window_bounds = array<i64: 112, 128>}]} {
    %c0 = arith.constant 0 : index
    %c0_0 = arith.constant 0 : index
    %0 = vector.load %arg1[%c0, %c0_0] : memref<112x256xbf16, #tpu.memory_space<vmem>>, vector<112x256xbf16>
    %c0_1 = arith.constant 0 : index
    %c0_2 = arith.constant 0 : index
    %1 = vector.load %arg2[%c0_1, %c0_2] : memref<256x128xbf16, #tpu.memory_space<vmem>>, vector<256x128xbf16>
    %cst = arith.constant dense<0.000000e+00> : vector<112x128xf32>
    %2 = tpu.matmul %0, %1, %cst {dimension_numbers = #tpu.dot_dimension_numbers<[1], [0], [0], [1], [0, 0, 1, 1], [], []>} : vector<112x256xbf16>, vector<256x128xbf16>, vector<112x128xf32> -> vector<112x128xf32>
    %c0_3 = arith.constant 0 : index
    %c0_4 = arith.constant 0 : index
    %3 = vector.load %arg3[%c0_3, %c0_4] : memref<1x128xf32, #tpu.memory_space<vmem>>, vector<1x128xf32>
    %4 = vector.broadcast %3 : vector<1x128xf32> to vector<112x128xf32>
    %5 = arith.addf %2, %4 : vector<112x128xf32>
    %cst_5 = arith.constant 0.000000e+00 : f32
    %6 = vector.broadcast %cst_5 : f32 to vector<112x128xf32>
    %7 = arith.cmpf ogt, %5, %6 : vector<112x128xf32>
    %cst_6 = arith.constant 2.000000e-01 : f32
    %8 = vector.broadcast %cst_6 : f32 to vector<112x128xf32>
    %9 = arith.mulf %8, %5 : vector<112x128xf32>
    %10 = arith.select %7, %5, %9 : vector<112x128xi1>, vector<112x128xf32>
    %11 = arith.truncf %10 : vector<112x128xf32> to vector<112x128xbf16>
    %c0_7 = arith.constant 0 : index
    %c0_8 = arith.constant 0 : index
    %12 = vector.load %arg4[%c0_7, %c0_8] : memref<112x128xbf16, #tpu.memory_space<vmem>>, vector<112x128xbf16>
    tpu.vector_store %arg4[%c0_7, %c0_8], %11 {strides = array<i32>} : memref<112x128xbf16, #tpu.memory_space<vmem>>, vector<112x128xbf16>,
    return
  }
  func.func @transform_0(%arg0: i32) -> (i32, i32) {
    %c0_i32 = arith.constant 0 : i32
    %c0_i32_0 = arith.constant 0 : i32
    return %arg0, %c0_i32 : i32, i32
  }
  func.func @transform_1(%arg0: i32) -> (i32, i32) {
    %c0_i32 = arith.constant 0 : i32
    %c0_i32_0 = arith.constant 0 : i32
    %c0_i32_1 = arith.constant 0 : i32
    return %c0_i32, %c0_i32_0 : i32, i32
  }
  func.func @transform_2(%arg0: i32) -> (i32, i32) {
    %c0_i32 = arith.constant 0 : i32
    %c0_i32_0 = arith.constant 0 : i32
    %c0_i32_1 = arith.constant 0 : i32
    return %c0_i32, %c0_i32_0 : i32, i32
  }
  func.func @transform_3(%arg0: i32) -> (i32, i32) {
    %c0_i32 = arith.constant 0 : i32
    %c0_i32_0 = arith.constant 0 : i32
    return %arg0, %c0_i32 : i32, i32
  }
}

module attributes {stable_mosaic.version = 11 : i64} {
  func.func @_matmul_act_kernel(%arg0: i32, %arg1: memref<112x384xbf16, #tpu.memory_space<vmem>>, %arg2: memref<384x128xbf16, #tpu.memory_space<vmem>>, %arg3: memref<1x128xf32, #tpu.memory_space<vmem>>, %arg4: memref<112x128xbf16, #tpu.memory_space<vmem>>) attributes {dimension_semantics = [#tpu.dimension_semantics<parallel>], iteration_bounds = array<i64: 1>, scalar_prefetch = 0 : i64, scratch_operands = 0 : i64, tpu.core_type = #tpu.core_type<tc>, window_params = [{transform_indices = @transform_0, window_bounds = array<i64: 112, 384>}, {pipeline_mode = #tpu.pipeline_mode<synchronous>, transform_indices = @transform_1, window_bounds = array<i64: 384, 128>}, {pipeline_mode = #tpu.pipeline_mode<synchronous>, transform_indices = @transform_2, window_bounds = array<i64: 1, 128>}, {transform_indices = @transform_3, window_bounds = array<i64: 112, 128>}]} {
    %c0 = arith.constant 0 : index
    %c0_0 = arith.constant 0 : index
    %0 = vector.load %arg1[%c0, %c0_0] : memref<112x384xbf16, #tpu.memory_space<vmem>>, vector<112x384xbf16>
    %c0_1 = arith.constant 0 : index
    %c0_2 = arith.constant 0 : index
    %1 = vector.load %arg2[%c0_1, %c0_2] : memref<384x128xbf16, #tpu.memory_space<vmem>>, vector<384x128xbf16>
    %cst = arith.constant dense<0.000000e+00> : vector<112x128xf32>
    %2 = tpu.matmul %0, %1, %cst {dimension_numbers = #tpu.dot_dimension_numbers<[1], [0], [0], [1], [0, 0, 1, 1], [], []>} : vector<112x384xbf16>, vector<384x128xbf16>, vector<112x128xf32> -> vector<112x128xf32>
    %c0_3 = arith.constant 0 : index
    %c0_4 = arith.constant 0 : index
    %3 = vector.load %arg3[%c0_3, %c0_4] : memref<1x128xf32, #tpu.memory_space<vmem>>, vector<1x128xf32>
    %4 = vector.broadcast %3 : vector<1x128xf32> to vector<112x128xf32>
    %5 = arith.addf %2, %4 : vector<112x128xf32>
    %cst_5 = arith.constant 0.000000e+00 : f32
    %6 = vector.broadcast %cst_5 : f32 to vector<112x128xf32>
    %7 = arith.cmpf ogt, %5, %6 : vector<112x128xf32>
    %cst_6 = arith.constant 2.000000e-01 : f32
    %8 = vector.broadcast %cst_6 : f32 to vector<112x128xf32>
    %9 = arith.mulf %8, %5 : vector<112x128xf32>
    %10 = arith.select %7, %5, %9 : vector<112x128xi1>, vector<112x128xf32>
    %11 = arith.truncf %10 : vector<112x128xf32> to vector<112x128xbf16>
    %c0_7 = arith.constant 0 : index
    %c0_8 = arith.constant 0 : index
    %12 = vector.load %arg4[%c0_7, %c0_8] : memref<112x128xbf16, #tpu.memory_space<vmem>>, vector<112x128xbf16>
    tpu.vector_store %arg4[%c0_7, %c0_8], %11 {strides = array<i32>} : memref<112x128xbf16, #tpu.memory_space<vmem>>, vector<112x128xbf16>,
    return
  }
  func.func @transform_0(%arg0: i32) -> (i32, i32) {
    %c0_i32 = arith.constant 0 : i32
    %c0_i32_0 = arith.constant 0 : i32
    return %arg0, %c0_i32 : i32, i32
  }
  func.func @transform_1(%arg0: i32) -> (i32, i32) {
    %c0_i32 = arith.constant 0 : i32
    %c0_i32_0 = arith.constant 0 : i32
    %c0_i32_1 = arith.constant 0 : i32
    return %c0_i32, %c0_i32_0 : i32, i32
  }
  func.func @transform_2(%arg0: i32) -> (i32, i32) {
    %c0_i32 = arith.constant 0 : i32
    %c0_i32_0 = arith.constant 0 : i32
    %c0_i32_1 = arith.constant 0 : i32
    return %c0_i32, %c0_i32_0 : i32, i32
  }
  func.func @transform_3(%arg0: i32) -> (i32, i32) {
    %c0_i32 = arith.constant 0 : i32
    %c0_i32_0 = arith.constant 0 : i32
    return %arg0, %c0_i32 : i32, i32
  }
}

module attributes {stable_mosaic.version = 11 : i64} {
  func.func @_encoder_head_kernel(%arg0: i32, %arg1: memref<16x1664xbf16, #tpu.memory_space<vmem>>, %arg2: memref<1664x256xbf16, #tpu.memory_space<vmem>>, %arg3: memref<1x256xf32, #tpu.memory_space<vmem>>, %arg4: memref<16x128xf32, #tpu.memory_space<vmem>>, %arg5: memref<16x128xf32, #tpu.memory_space<vmem>>, %arg6: memref<16x128xf32, #tpu.memory_space<vmem>>, %arg7: memref<16x128xbf16, #tpu.memory_space<vmem>>) attributes {dimension_semantics = [#tpu.dimension_semantics<parallel>], iteration_bounds = array<i64: 1>, scalar_prefetch = 0 : i64, scratch_operands = 0 : i64, tpu.core_type = #tpu.core_type<tc>, window_params = [{transform_indices = @transform_0, window_bounds = array<i64: 16, 1664>}, {pipeline_mode = #tpu.pipeline_mode<synchronous>, transform_indices = @transform_1, window_bounds = array<i64: 1664, 256>}, {pipeline_mode = #tpu.pipeline_mode<synchronous>, transform_indices = @transform_2, window_bounds = array<i64: 1, 256>}, {transform_indices = @transform_3, window_bounds = array<i64: 16, 128>}, {transform_indices = @transform_4, window_bounds = array<i64: 16, 128>}, {transform_indices = @transform_5, window_bounds = array<i64: 16, 128>}, {transform_indices = @transform_6, window_bounds = array<i64: 16, 128>}]} {
    %c0 = arith.constant 0 : index
    %c0_0 = arith.constant 0 : index
    %0 = vector.load %arg1[%c0, %c0_0] : memref<16x1664xbf16, #tpu.memory_space<vmem>>, vector<16x1664xbf16>
    %c0_1 = arith.constant 0 : index
    %c0_2 = arith.constant 0 : index
    %1 = vector.load %arg2[%c0_1, %c0_2] : memref<1664x256xbf16, #tpu.memory_space<vmem>>, vector<1664x256xbf16>
    %cst = arith.constant dense<0.000000e+00> : vector<16x256xf32>
    %2 = tpu.matmul %0, %1, %cst {dimension_numbers = #tpu.dot_dimension_numbers<[1], [0], [0], [1], [0, 0, 1, 1], [], []>} : vector<16x1664xbf16>, vector<1664x256xbf16>, vector<16x256xf32> -> vector<16x256xf32>
    %c0_3 = arith.constant 0 : index
    %c0_4 = arith.constant 0 : index
    %3 = vector.load %arg3[%c0_3, %c0_4] : memref<1x256xf32, #tpu.memory_space<vmem>>, vector<1x256xf32>
    %4 = vector.broadcast %3 : vector<1x256xf32> to vector<16x256xf32>
    %5 = arith.addf %2, %4 : vector<16x256xf32>
    %6 = vector.extract_strided_slice %5 {offsets = [0, 0], sizes = [16, 128], strides = [1, 1]} : vector<16x256xf32> to vector<16x128xf32>
    %7 = vector.extract_strided_slice %5 {offsets = [0, 128], sizes = [16, 128], strides = [1, 1]} : vector<16x256xf32> to vector<16x128xf32>
    %c0_5 = arith.constant 0 : index
    %c0_6 = arith.constant 0 : index
    %8 = vector.load %arg4[%c0_5, %c0_6] : memref<16x128xf32, #tpu.memory_space<vmem>>, vector<16x128xf32>
    %9 = math.exp %7 : vector<16x128xf32>
    %10 = arith.mulf %8, %9 : vector<16x128xf32>
    %11 = arith.addf %6, %10 : vector<16x128xf32>
    %c0_7 = arith.constant 0 : index
    %c0_8 = arith.constant 0 : index
    %12 = vector.load %arg5[%c0_7, %c0_8] : memref<16x128xf32, #tpu.memory_space<vmem>>, vector<16x128xf32>
    tpu.vector_store %arg5[%c0_7, %c0_8], %6 {strides = array<i32>} : memref<16x128xf32, #tpu.memory_space<vmem>>, vector<16x128xf32>,
    %c0_9 = arith.constant 0 : index
    %c0_10 = arith.constant 0 : index
    %13 = vector.load %arg6[%c0_9, %c0_10] : memref<16x128xf32, #tpu.memory_space<vmem>>, vector<16x128xf32>
    tpu.vector_store %arg6[%c0_9, %c0_10], %7 {strides = array<i32>} : memref<16x128xf32, #tpu.memory_space<vmem>>, vector<16x128xf32>,
    %14 = arith.truncf %11 : vector<16x128xf32> to vector<16x128xbf16>
    %c0_11 = arith.constant 0 : index
    %c0_12 = arith.constant 0 : index
    %15 = vector.load %arg7[%c0_11, %c0_12] : memref<16x128xbf16, #tpu.memory_space<vmem>>, vector<16x128xbf16>
    tpu.vector_store %arg7[%c0_11, %c0_12], %14 {strides = array<i32>} : memref<16x128xbf16, #tpu.memory_space<vmem>>, vector<16x128xbf16>,
    return
  }
  func.func @transform_0(%arg0: i32) -> (i32, i32) {
    %c0_i32 = arith.constant 0 : i32
    %c0_i32_0 = arith.constant 0 : i32
    return %arg0, %c0_i32 : i32, i32
  }
  func.func @transform_1(%arg0: i32) -> (i32, i32) {
    %c0_i32 = arith.constant 0 : i32
    %c0_i32_0 = arith.constant 0 : i32
    %c0_i32_1 = arith.constant 0 : i32
    return %c0_i32, %c0_i32_0 : i32, i32
  }
  func.func @transform_2(%arg0: i32) -> (i32, i32) {
    %c0_i32 = arith.constant 0 : i32
    %c0_i32_0 = arith.constant 0 : i32
    %c0_i32_1 = arith.constant 0 : i32
    return %c0_i32, %c0_i32_0 : i32, i32
  }
  func.func @transform_3(%arg0: i32) -> (i32, i32) {
    %c0_i32 = arith.constant 0 : i32
    %c0_i32_0 = arith.constant 0 : i32
    return %arg0, %c0_i32 : i32, i32
  }
  func.func @transform_4(%arg0: i32) -> (i32, i32) {
    %c0_i32 = arith.constant 0 : i32
    %c0_i32_0 = arith.constant 0 : i32
    return %arg0, %c0_i32 : i32, i32
  }
  func.func @transform_5(%arg0: i32) -> (i32, i32) {
    %c0_i32 = arith.constant 0 : i32
    %c0_i32_0 = arith.constant 0 : i32
    return %arg0, %c0_i32 : i32, i32
  }
  func.func @transform_6(%arg0: i32) -> (i32, i32) {
    %c0_i32 = arith.constant 0 : i32
    %c0_i32_0 = arith.constant 0 : i32
    return %arg0, %c0_i32 : i32, i32
  }
}

module attributes {stable_mosaic.version = 11 : i64} {
  func.func @_matmul_act_kernel(%arg0: i32, %arg1: memref<16x128xbf16, #tpu.memory_space<vmem>>, %arg2: memref<128x1664xbf16, #tpu.memory_space<vmem>>, %arg3: memref<1x1664xf32, #tpu.memory_space<vmem>>, %arg4: memref<16x1664xbf16, #tpu.memory_space<vmem>>) attributes {dimension_semantics = [#tpu.dimension_semantics<parallel>], iteration_bounds = array<i64: 1>, scalar_prefetch = 0 : i64, scratch_operands = 0 : i64, tpu.core_type = #tpu.core_type<tc>, window_params = [{transform_indices = @transform_0, window_bounds = array<i64: 16, 128>}, {pipeline_mode = #tpu.pipeline_mode<synchronous>, transform_indices = @transform_1, window_bounds = array<i64: 128, 1664>}, {pipeline_mode = #tpu.pipeline_mode<synchronous>, transform_indices = @transform_2, window_bounds = array<i64: 1, 1664>}, {transform_indices = @transform_3, window_bounds = array<i64: 16, 1664>}]} {
    %c0 = arith.constant 0 : index
    %c0_0 = arith.constant 0 : index
    %0 = vector.load %arg1[%c0, %c0_0] : memref<16x128xbf16, #tpu.memory_space<vmem>>, vector<16x128xbf16>
    %c0_1 = arith.constant 0 : index
    %c0_2 = arith.constant 0 : index
    %1 = vector.load %arg2[%c0_1, %c0_2] : memref<128x1664xbf16, #tpu.memory_space<vmem>>, vector<128x1664xbf16>
    %cst = arith.constant dense<0.000000e+00> : vector<16x1664xf32>
    %2 = tpu.matmul %0, %1, %cst {dimension_numbers = #tpu.dot_dimension_numbers<[1], [0], [0], [1], [0, 0, 1, 1], [], []>} : vector<16x128xbf16>, vector<128x1664xbf16>, vector<16x1664xf32> -> vector<16x1664xf32>
    %c0_3 = arith.constant 0 : index
    %c0_4 = arith.constant 0 : index
    %3 = vector.load %arg3[%c0_3, %c0_4] : memref<1x1664xf32, #tpu.memory_space<vmem>>, vector<1x1664xf32>
    %4 = vector.broadcast %3 : vector<1x1664xf32> to vector<16x1664xf32>
    %5 = arith.addf %2, %4 : vector<16x1664xf32>
    %6 = arith.truncf %5 : vector<16x1664xf32> to vector<16x1664xbf16>
    %c0_5 = arith.constant 0 : index
    %c0_6 = arith.constant 0 : index
    %7 = vector.load %arg4[%c0_5, %c0_6] : memref<16x1664xbf16, #tpu.memory_space<vmem>>, vector<16x1664xbf16>
    tpu.vector_store %arg4[%c0_5, %c0_6], %6 {strides = array<i32>} : memref<16x1664xbf16, #tpu.memory_space<vmem>>, vector<16x1664xbf16>,
    return
  }
  func.func @transform_0(%arg0: i32) -> (i32, i32) {
    %c0_i32 = arith.constant 0 : i32
    %c0_i32_0 = arith.constant 0 : i32
    return %arg0, %c0_i32 : i32, i32
  }
  func.func @transform_1(%arg0: i32) -> (i32, i32) {
    %c0_i32 = arith.constant 0 : i32
    %c0_i32_0 = arith.constant 0 : i32
    %c0_i32_1 = arith.constant 0 : i32
    return %c0_i32, %c0_i32_0 : i32, i32
  }
  func.func @transform_2(%arg0: i32) -> (i32, i32) {
    %c0_i32 = arith.constant 0 : i32
    %c0_i32_0 = arith.constant 0 : i32
    %c0_i32_1 = arith.constant 0 : i32
    return %c0_i32, %c0_i32_0 : i32, i32
  }
  func.func @transform_3(%arg0: i32) -> (i32, i32) {
    %c0_i32 = arith.constant 0 : i32
    %c0_i32_0 = arith.constant 0 : i32
    return %arg0, %c0_i32 : i32, i32
  }
}

module attributes {stable_mosaic.version = 11 : i64} {
  func.func @_matmul_act_kernel(%arg0: i32, %arg1: memref<112x384xbf16, #tpu.memory_space<vmem>>, %arg2: memref<384x128xbf16, #tpu.memory_space<vmem>>, %arg3: memref<1x128xf32, #tpu.memory_space<vmem>>, %arg4: memref<112x128xbf16, #tpu.memory_space<vmem>>) attributes {dimension_semantics = [#tpu.dimension_semantics<parallel>], iteration_bounds = array<i64: 1>, scalar_prefetch = 0 : i64, scratch_operands = 0 : i64, tpu.core_type = #tpu.core_type<tc>, window_params = [{transform_indices = @transform_0, window_bounds = array<i64: 112, 384>}, {pipeline_mode = #tpu.pipeline_mode<synchronous>, transform_indices = @transform_1, window_bounds = array<i64: 384, 128>}, {pipeline_mode = #tpu.pipeline_mode<synchronous>, transform_indices = @transform_2, window_bounds = array<i64: 1, 128>}, {transform_indices = @transform_3, window_bounds = array<i64: 112, 128>}]} {
    %c0 = arith.constant 0 : index
    %c0_0 = arith.constant 0 : index
    %0 = vector.load %arg1[%c0, %c0_0] : memref<112x384xbf16, #tpu.memory_space<vmem>>, vector<112x384xbf16>
    %c0_1 = arith.constant 0 : index
    %c0_2 = arith.constant 0 : index
    %1 = vector.load %arg2[%c0_1, %c0_2] : memref<384x128xbf16, #tpu.memory_space<vmem>>, vector<384x128xbf16>
    %cst = arith.constant dense<0.000000e+00> : vector<112x128xf32>
    %2 = tpu.matmul %0, %1, %cst {dimension_numbers = #tpu.dot_dimension_numbers<[1], [0], [0], [1], [0, 0, 1, 1], [], []>} : vector<112x384xbf16>, vector<384x128xbf16>, vector<112x128xf32> -> vector<112x128xf32>
    %c0_3 = arith.constant 0 : index
    %c0_4 = arith.constant 0 : index
    %3 = vector.load %arg3[%c0_3, %c0_4] : memref<1x128xf32, #tpu.memory_space<vmem>>, vector<1x128xf32>
    %4 = vector.broadcast %3 : vector<1x128xf32> to vector<112x128xf32>
    %5 = arith.addf %2, %4 : vector<112x128xf32>
    %cst_5 = arith.constant 0.000000e+00 : f32
    %6 = vector.broadcast %cst_5 : f32 to vector<112x128xf32>
    %7 = arith.maximumf %5, %6 : vector<112x128xf32>
    %8 = arith.truncf %7 : vector<112x128xf32> to vector<112x128xbf16>
    %c0_6 = arith.constant 0 : index
    %c0_7 = arith.constant 0 : index
    %9 = vector.load %arg4[%c0_6, %c0_7] : memref<112x128xbf16, #tpu.memory_space<vmem>>, vector<112x128xbf16>
    tpu.vector_store %arg4[%c0_6, %c0_7], %8 {strides = array<i32>} : memref<112x128xbf16, #tpu.memory_space<vmem>>, vector<112x128xbf16>,
    return
  }
  func.func @transform_0(%arg0: i32) -> (i32, i32) {
    %c0_i32 = arith.constant 0 : i32
    %c0_i32_0 = arith.constant 0 : i32
    return %arg0, %c0_i32 : i32, i32
  }
  func.func @transform_1(%arg0: i32) -> (i32, i32) {
    %c0_i32 = arith.constant 0 : i32
    %c0_i32_0 = arith.constant 0 : i32
    %c0_i32_1 = arith.constant 0 : i32
    return %c0_i32, %c0_i32_0 : i32, i32
  }
  func.func @transform_2(%arg0: i32) -> (i32, i32) {
    %c0_i32 = arith.constant 0 : i32
    %c0_i32_0 = arith.constant 0 : i32
    %c0_i32_1 = arith.constant 0 : i32
    return %c0_i32, %c0_i32_0 : i32, i32
  }
  func.func @transform_3(%arg0: i32) -> (i32, i32) {
    %c0_i32 = arith.constant 0 : i32
    %c0_i32_0 = arith.constant 0 : i32
    return %arg0, %c0_i32 : i32, i32
  }
}

module attributes {stable_mosaic.version = 11 : i64} {
  func.func @_matmul_act_kernel(%arg0: i32, %arg1: memref<256x256xbf16, #tpu.memory_space<vmem>>, %arg2: memref<256x128xbf16, #tpu.memory_space<vmem>>, %arg3: memref<1x128xf32, #tpu.memory_space<vmem>>, %arg4: memref<256x128xf32, #tpu.memory_space<vmem>>) attributes {dimension_semantics = [#tpu.dimension_semantics<parallel>], iteration_bounds = array<i64: 2>, scalar_prefetch = 0 : i64, scratch_operands = 0 : i64, tpu.core_type = #tpu.core_type<tc>, window_params = [{transform_indices = @transform_0, window_bounds = array<i64: 256, 256>}, {pipeline_mode = #tpu.pipeline_mode<synchronous>, transform_indices = @transform_1, window_bounds = array<i64: 256, 128>}, {pipeline_mode = #tpu.pipeline_mode<synchronous>, transform_indices = @transform_2, window_bounds = array<i64: 1, 128>}, {transform_indices = @transform_3, window_bounds = array<i64: 256, 128>}]} {
    %c0 = arith.constant 0 : index
    %c0_0 = arith.constant 0 : index
    %0 = vector.load %arg1[%c0, %c0_0] : memref<256x256xbf16, #tpu.memory_space<vmem>>, vector<256x256xbf16>
    %c0_1 = arith.constant 0 : index
    %c0_2 = arith.constant 0 : index
    %1 = vector.load %arg2[%c0_1, %c0_2] : memref<256x128xbf16, #tpu.memory_space<vmem>>, vector<256x128xbf16>
    %cst = arith.constant dense<0.000000e+00> : vector<256x128xf32>
    %2 = tpu.matmul %0, %1, %cst {dimension_numbers = #tpu.dot_dimension_numbers<[1], [0], [0], [1], [0, 0, 1, 1], [], []>} : vector<256x256xbf16>, vector<256x128xbf16>, vector<256x128xf32> -> vector<256x128xf32>
    %c0_3 = arith.constant 0 : index
    %c0_4 = arith.constant 0 : index
    %3 = vector.load %arg3[%c0_3, %c0_4] : memref<1x128xf32, #tpu.memory_space<vmem>>, vector<1x128xf32>
    %4 = vector.broadcast %3 : vector<1x128xf32> to vector<256x128xf32>
    %5 = arith.addf %2, %4 : vector<256x128xf32>
    %cst_5 = arith.constant 0.000000e+00 : f32
    %6 = vector.broadcast %cst_5 : f32 to vector<256x128xf32>
    %7 = arith.subf %6, %5 : vector<256x128xf32>
    %8 = math.exp %7 : vector<256x128xf32>
    %cst_6 = arith.constant 1.000000e+00 : f32
    %9 = vector.broadcast %cst_6 : f32 to vector<256x128xf32>
    %10 = arith.addf %9, %8 : vector<256x128xf32>
    %11 = tpu.reciprocal %10 {approx = true} : vector<256x128xf32> -> vector<256x128xf32>
    %c0_7 = arith.constant 0 : index
    %c0_8 = arith.constant 0 : index
    %12 = vector.load %arg4[%c0_7, %c0_8] : memref<256x128xf32, #tpu.memory_space<vmem>>, vector<256x128xf32>
    tpu.vector_store %arg4[%c0_7, %c0_8], %11 {strides = array<i32>} : memref<256x128xf32, #tpu.memory_space<vmem>>, vector<256x128xf32>,
    return
  }
  func.func @transform_0(%arg0: i32) -> (i32, i32) {
    %c0_i32 = arith.constant 0 : i32
    %c0_i32_0 = arith.constant 0 : i32
    return %arg0, %c0_i32 : i32, i32
  }
  func.func @transform_1(%arg0: i32) -> (i32, i32) {
    %c0_i32 = arith.constant 0 : i32
    %c0_i32_0 = arith.constant 0 : i32
    %c0_i32_1 = arith.constant 0 : i32
    return %c0_i32, %c0_i32_0 : i32, i32
  }
  func.func @transform_2(%arg0: i32) -> (i32, i32) {
    %c0_i32 = arith.constant 0 : i32
    %c0_i32_0 = arith.constant 0 : i32
    %c0_i32_1 = arith.constant 0 : i32
    return %c0_i32, %c0_i32_0 : i32, i32
  }
  func.func @transform_3(%arg0: i32) -> (i32, i32) {
    %c0_i32 = arith.constant 0 : i32
    %c0_i32_0 = arith.constant 0 : i32
    return %arg0, %c0_i32 : i32, i32
  }
}

</mosaic_0001>

<bundles_post_ra>
// kernel: vae_forward.7
= control target key start
LH: loop header
LB: loop body
LE: loop exit
PB: predicated region body
PF: predicated region fallthrough
CT: control target
= control target key end

     0   :  { %s962_s12 = smov 0   ;;  %s1083_s0 = inlined_call_operand.vmem [shape: bf16[512,128], index: 0, kind: input, shape index: {}]   ;;  %s1084_s1 = inlined_call_operand.vmem [shape: bf16[128,128], index: 1, kind: input, shape index: {}]   ;;  %s1085_s2 = inlined_call_operand.vmem [shape: f32[1,128], index: 2, kind: input, shape index: {}]   ;;  %s1086_s3 = inlined_call_operand.vmem [shape: bf16[512,128], index: 3, kind: output, shape index: {}]  }
   0x1 LB: > { %s675_s13 = sadd.s32 4294967295, %s940_s12   ;;  %p679_p0 = scmp.ge.s32.totalorder %s940_s12, 1  ;;  %s940_s12 = sphi %s962_s12, %s13_s12  }
   0x2   : > { %p138_p1 = scmp.lt.s32.totalorder %s940_s12, 3 }
   0x4   : > { %p139_p2 = pnand %p679_p0, %p138_p1 }
   0x5   : > { %s680_s22 = sshll.u32 (!%p139_p2), %s675_s13, 5 }
   0x6   : > { %142 = sbr.rel (%p139_p2) target bundleno = 241 (0xf1), region = 32  ;;  %p163_p3 = scmp.lt.s32.totalorder (!%p139_p2), %s680_s22, 63 }
   0xb   : > { %v805_v0 = vld [vmem:[%s1084_s1 + $0x38] sm:$0xff]  ;;  %v804_v1 = vld [vmem:[%s1084_s1 + $0x30] sm:$0xff]  ;;  %v803_v2 = vld [vmem:[%s1084_s1 + $0x28] sm:$0xff]  ;;  %s1088_s22 = smov (!%p163_p3, %s680_s22), 63 }
   0xc   : > { %370 = vmatpush.bf16.msra.mxu0 %v805_v0  ;;  %901 = vmatpush.bf16.msra.mxu1 %v805_v0  ;;  %v802_v3 = vld [vmem:[%s1084_s1 + $0x20] sm:$0xff]  ;;  %v801_v4 = vld [vmem:[%s1084_s1 + $0x18] sm:$0xff]  ;;  %v800_v5 = vld [vmem:[%s1084_s1 + $0x10] sm:$0xff]  ;;  %s681_s29 = sshll.u32 %s1088_s22, 2 }
   0xd   : > { %902 = vmatpush.bf16.msra.mxu2 %v805_v0  ;;  %903 = vmatpush.bf16.msra.mxu3 %v805_v0  ;;  %v799_v6 = vld [vmem:[%s1084_s1 + $0x8] sm:$0xff]  ;;  %v798_v7 = vld [vmem:[%s1084_s1] sm:$0xff]  ;;  %s1002_s7 = scalar_lea.vmem %s1083_s0, %s681_s29  ;;  %s1036_s13 = scalar_lea.vmem %s1086_s3, %s681_s29 }
   0xe   : > { %v782_v8 = vld [vmem:[%s1002_s7] sm:$0xff]  ;;  %v783_v12 = vld [vmem:[%s1002_s7 + $0x8] sm:$0xff]  ;;  %v784_v16 = vld [vmem:[%s1002_s7 + $0x10] sm:$0xff] }
   0xf   : > { %v786_v9 = vld [vmem:[%s1002_s7 + $0x20] sm:$0xff]  ;;  %v787_v13 = vld [vmem:[%s1002_s7 + $0x28] sm:$0xff]  ;;  %v788_v17 = vld [vmem:[%s1002_s7 + $0x30] sm:$0xff] }
  0x10   : > { %371 = vmatpush.bf16.msra.mxu0 %v804_v1  ;;  %904 = vmatpush.bf16.msra.mxu1 %v804_v1  ;;  %v790_v10 = vld [vmem:[%s1002_s7 + $0x40] sm:$0xff]  ;;  %v791_v14 = vld [vmem:[%s1002_s7 + $0x48] sm:$0xff]  ;;  %v792_v18 = vld [vmem:[%s1002_s7 + $0x50] sm:$0xff] }
  0x11   : > { %905 = vmatpush.bf16.msra.mxu2 %v804_v1  ;;  %906 = vmatpush.bf16.msra.mxu3 %v804_v1  ;;  %v794_v11 = vld [vmem:[%s1002_s7 + $0x60] sm:$0xff]  ;;  %v795_v15 = vld [vmem:[%s1002_s7 + $0x68] sm:$0xff]  ;;  %v796_v19 = vld [vmem:[%s1002_s7 + $0x70] sm:$0xff] }
  0x12   : > { %v785_v20 = vld [vmem:[%s1002_s7 + $0x18] sm:$0xff]  ;;  %v1023_v26 = vld [vmem:[%s1085_s2] ss:$0 sm:$0xff] }
  0x13   : > { %v789_v21 = vld [vmem:[%s1002_s7 + $0x38] sm:$0xff] }
  0x14   : > { %372 = vmatpush.bf16.msra.mxu0 %v803_v2  ;;  %907 = vmatpush.bf16.msra.mxu1 %v803_v2  ;;  %v793_v22 = vld [vmem:[%s1002_s7 + $0x58] sm:$0xff] }
  0x15   : > { %908 = vmatpush.bf16.msra.mxu2 %v803_v2  ;;  %909 = vmatpush.bf16.msra.mxu3 %v803_v2  ;;  %v797_v23 = vld [vmem:[%s1002_s7 + $0x78] sm:$0xff] }
  0x18   : > { %373 = vmatpush.bf16.msra.mxu0 %v802_v3  ;;  %910 = vmatpush.bf16.msra.mxu1 %v802_v3 }
  0x19   : > { %911 = vmatpush.bf16.msra.mxu2 %v802_v3  ;;  %912 = vmatpush.bf16.msra.mxu3 %v802_v3 }
  0x1c   : > { %374 = vmatpush.bf16.msra.mxu0 %v801_v4  ;;  %913 = vmatpush.bf16.msra.mxu1 %v801_v4 }
  0x1d   : > { %914 = vmatpush.bf16.msra.mxu2 %v801_v4  ;;  %915 = vmatpush.bf16.msra.mxu3 %v801_v4 }
  0x20   : > { %375 = vmatpush.bf16.msra.mxu0 %v800_v5  ;;  %916 = vmatpush.bf16.msra.mxu1 %v800_v5 }
  0x21   : > { %917 = vmatpush.bf16.msra.mxu2 %v800_v5  ;;  %918 = vmatpush.bf16.msra.mxu3 %v800_v5 }
  0x24   : > { %376 = vmatpush.bf16.msra.mxu0 %v799_v6  ;;  %919 = vmatpush.bf16.msra.mxu1 %v799_v6 }
  0x25   : > { %920 = vmatpush.bf16.msra.mxu2 %v799_v6  ;;  %921 = vmatpush.bf16.msra.mxu3 %v799_v6 }
  0x28   : > { %377 = vmatpush.bf16.msra.mxu0 %v798_v7  ;;  %922 = vmatpush.bf16.msra.mxu1 %v798_v7 }
  0x29   : > { %923 = vmatpush.bf16.msra.mxu2 %v798_v7  ;;  %924 = vmatpush.bf16.msra.mxu3 %v798_v7 }
  0x2b   : > { %378 = vmatmul.bf16.vlgmr.msra.gmra.mxu0 %v782_v8  ;;  %398 = vmatmul.bf16.vlgmr.msra.gmra.mxu1 %v786_v9 }
  0x2c   : > { %418 = vmatmul.bf16.vlgmr.msra.gmra.mxu2 %v790_v10  ;;  %438 = vmatmul.bf16.vlgmr.msra.gmra.mxu3 %v794_v11 }
  0x3b   : > { %383 = vmatmul.bf16.gmra.mxu0 %v783_v12  ;;  %403 = vmatmul.bf16.gmra.mxu1 %v787_v13 }
  0x3c   : > { %423 = vmatmul.bf16.gmra.mxu2 %v791_v14  ;;  %443 = vmatmul.bf16.gmra.mxu3 %v795_v15 }
  0x4b   : > { %388 = vmatmul.bf16.gmra.mxu0 %v784_v16  ;;  %408 = vmatmul.bf16.gmra.mxu1 %v788_v17 }
  0x4c   : > { %428 = vmatmul.bf16.gmra.mxu2 %v792_v18  ;;  %448 = vmatmul.bf16.gmra.mxu3 %v796_v19 }
  0x5b   : > { %393 = vmatmul.bf16.gmra.mxu0 %v785_v20  ;;  %413 = vmatmul.bf16.gmra.mxu1 %v789_v21 }
  0x5c   : > { %433 = vmatmul.bf16.gmra.mxu2 %v793_v22  ;;  %453 = vmatmul.bf16.gmra.mxu3 %v797_v23 }
  0xa8   : > { %v379_v24 = vpop.f32.mrf.mxu0  ;;  %v399_v25 = vpop.f32.mrf.mxu1 }
  0xa9   : > { %v380_v27 = vadd.f32 %v1023_v26, %v379_v24  ;;  %v400_v28 = vadd.f32 %v1023_v26, %v399_v25 }
  0xab   : > { %v491_v33 = vmul.f32 0.2, %v380_v27  ;;  %v499_v34 = vmul.f32 0.2, %v400_v28  ;;  %vm459_vm0 = vcmp.gt.f32.partialorder %v380_v27, 0.0  ;;  %vm467_vm1 = vcmp.gt.f32.partialorder %v400_v28, 0.0 }
  0xad   : > { %v523_v41 = vsel %vm459_vm0, %v380_v27, %v491_v33  ;;  %v531_v42 = vsel %vm467_vm1, %v400_v28, %v499_v34 }
  0xaf   : > { %v419_v29 = vpop.f32.mrf.mxu2  ;;  %v439_v30 = vpop.f32.mrf.mxu3 }
  0xb0   : > { %v381_v31 = vpop.f32.mrf.mxu0  ;;  %v401_v32 = vpop.f32.mrf.mxu1  ;;  %v420_v39 = vadd.f32 %v1023_v26, %v419_v29  ;;  %v440_v40 = vadd.f32 %v1023_v26, %v439_v30 }
  0xb1   : > { %v382_v35 = vadd.f32 %v1023_v26, %v381_v31  ;;  %v402_v36 = vadd.f32 %v1023_v26, %v401_v32 }
  0xb2   : > { %v507_v49 = vmul.f32 0.2, %v420_v39  ;;  %v515_v50 = vmul.f32 0.2, %v440_v40  ;;  %vm475_vm4 = vcmp.gt.f32.partialorder %v420_v39, 0.0  ;;  %vm483_vm5 = vcmp.gt.f32.partialorder %v440_v40, 0.0 }
  0xb3   : > { %vm460_vm2 = vcmp.gt.f32.partialorder %v382_v35, 0.0  ;;  %v492_v37 = vmul.f32 0.2, %v382_v35  ;;  %vm468_vm3 = vcmp.gt.f32.partialorder %v402_v36, 0.0  ;;  %v500_v38 = vmul.f32 0.2, %v402_v36 }
  0xb4   : > { %v539_v57 = vsel %vm475_vm4, %v420_v39, %v507_v49  ;;  %v547_v58 = vsel %vm483_vm5, %v440_v40, %v515_v50 }
  0xb5   : > { %v524_v43 = vsel %vm460_vm2, %v382_v35, %v492_v37  ;;  %v532_v44 = vsel %vm468_vm3, %v402_v36, %v500_v38 }
  0xb6   : > { %v809_v45 = vpack.c.bf16 %v524_v43, %v523_v41  ;;  %v829_v46 = vpack.c.bf16 %v532_v44, %v531_v42 }
  0xb7   : > { %v421_v47 = vpop.f32.mrf.mxu2  ;;  %v441_v48 = vpop.f32.mrf.mxu3 }
  0xb8   : > { %810 = vst [vmem:[%s1036_s13] sm:$0xff] %v809_v45   ;;  %v422_v51 = vadd.f32 %v1023_v26, %v421_v47  ;;  %v442_v52 = vadd.f32 %v1023_v26, %v441_v48  ;;  %v384_v53 = vpop.f32.mrf.mxu0  ;;  %v404_v54 = vpop.f32.mrf.mxu1 }
  0xb9   : > { %889 = vst [vmem:[%s1036_s13 + $0x20] sm:$0xff] %v829_v46   ;;  %v385_v63 = vadd.f32 %v1023_v26, %v384_v53  ;;  %v405_v0 = vadd.f32 %v1023_v26, %v404_v54 }
  0xba   : > { %vm476_vm6 = vcmp.gt.f32.partialorder %v422_v51, 0.0  ;;  %v508_v55 = vmul.f32 0.2, %v422_v51  ;;  %vm484_vm7 = vcmp.gt.f32.partialorder %v442_v52, 0.0  ;;  %v516_v56 = vmul.f32 0.2, %v442_v52 }
  0xbb   : > { %v493_v5 = vmul.f32 0.2, %v385_v63  ;;  %v501_v6 = vmul.f32 0.2, %v405_v0  ;;  %vm461_vm8 = vcmp.gt.f32.partialorder %v385_v63, 0.0  ;;  %vm469_vm9 = vcmp.gt.f32.partialorder %v405_v0, 0.0 }
  0xbc   : > { %v540_v59 = vsel %vm476_vm6, %v422_v51, %v508_v55  ;;  %v548_v60 = vsel %vm484_vm7, %v442_v52, %v516_v56 }
  0xbd   : > { %v849_v61 = vpack.c.bf16 %v540_v59, %v539_v57  ;;  %v869_v62 = vpack.c.bf16 %v548_v60, %v547_v58  ;;  %v525_v13 = vsel %vm461_vm8, %v385_v63, %v493_v5  ;;  %v533_v14 = vsel %vm469_vm9, %v405_v0, %v501_v6 }
  0xbf   : > { %893 = vst [vmem:[%s1036_s13 + $0x40] sm:$0xff] %v849_v61   ;;  %v424_v1 = vpop.f32.mrf.mxu2  ;;  %v444_v2 = vpop.f32.mrf.mxu3 }
  0xc0   : > { %897 = vst [vmem:[%s1036_s13 + $0x60] sm:$0xff] %v869_v62   ;;  %v386_v3 = vpop.f32.mrf.mxu0  ;;  %v406_v4 = vpop.f32.mrf.mxu1  ;;  %v425_v11 = vadd.f32 %v1023_v26, %v424_v1  ;;  %v445_v12 = vadd.f32 %v1023_v26, %v444_v2 }
  0xc1   : > { %v387_v7 = vadd.f32 %v1023_v26, %v386_v3  ;;  %v407_v8 = vadd.f32 %v1023_v26, %v406_v4 }
  0xc2   : > { %v509_v21 = vmul.f32 0.2, %v425_v11  ;;  %v517_v22 = vmul.f32 0.2, %v445_v12  ;;  %vm477_vm12 = vcmp.gt.f32.partialorder %v425_v11, 0.0  ;;  %vm485_vm13 = vcmp.gt.f32.partialorder %v445_v12, 0.0 }
  0xc3   : > { %vm462_vm10 = vcmp.gt.f32.partialorder %v387_v7, 0.0  ;;  %v494_v9 = vmul.f32 0.2, %v387_v7  ;;  %vm470_vm11 = vcmp.gt.f32.partialorder %v407_v8, 0.0  ;;  %v502_v10 = vmul.f32 0.2, %v407_v8 }
  0xc4   : > { %v541_v30 = vsel %vm477_vm12, %v425_v11, %v509_v21  ;;  %v549_v31 = vsel %vm485_vm13, %v445_v12, %v517_v22 }
  0xc5   : > { %v526_v15 = vsel %vm462_vm10, %v387_v7, %v494_v9  ;;  %v534_v16 = vsel %vm470_vm11, %v407_v8, %v502_v10 }
  0xc6   : > { %v814_v17 = vpack.c.bf16 %v526_v15, %v525_v13  ;;  %v834_v18 = vpack.c.bf16 %v534_v16, %v533_v14 }
  0xc7   : > { %v426_v19 = vpop.f32.mrf.mxu2  ;;  %v446_v20 = vpop.f32.mrf.mxu3 }
  0xc8   : > { %886 = vst [vmem:[%s1036_s13 + $0x8] sm:$0xff] %v814_v17   ;;  %v427_v23 = vadd.f32 %v1023_v26, %v426_v19  ;;  %v447_v24 = vadd.f32 %v1023_v26, %v446_v20  ;;  %v389_v25 = vpop.f32.mrf.mxu0  ;;  %v409_v27 = vpop.f32.mrf.mxu1 }
  0xc9   : > { %890 = vst [vmem:[%s1036_s13 + $0x28] sm:$0xff] %v834_v18   ;;  %v390_v36 = vadd.f32 %v1023_v26, %v389_v25  ;;  %v410_v37 = vadd.f32 %v1023_v26, %v409_v27 }
  0xca   : > { %vm478_vm14 = vcmp.gt.f32.partialorder %v427_v23, 0.0  ;;  %v510_v28 = vmul.f32 0.2, %v427_v23  ;;  %vm486_vm15 = vcmp.gt.f32.partialorder %v447_v24, 0.0  ;;  %v518_v29 = vmul.f32 0.2, %v447_v24 }
  0xcb   : > { %v495_v42 = vmul.f32 0.2, %v390_v36  ;;  %v503_v43 = vmul.f32 0.2, %v410_v37  ;;  %vm463_vm0 = vcmp.gt.f32.partialorder %v390_v36, 0.0  ;;  %vm471_vm1 = vcmp.gt.f32.partialorder %v410_v37, 0.0 }
  0xcc   : > { %v542_v32 = vsel %vm478_vm14, %v427_v23, %v510_v28  ;;  %v550_v33 = vsel %vm486_vm15, %v447_v24, %v518_v29 }
  0xcd   : > { %v854_v34 = vpack.c.bf16 %v542_v32, %v541_v30  ;;  %v874_v35 = vpack.c.bf16 %v550_v33, %v549_v31  ;;  %v527_v50 = vsel %vm463_vm0, %v390_v36, %v495_v42  ;;  %v535_v51 = vsel %vm471_vm1, %v410_v37, %v503_v43 }
  0xcf   : > { %894 = vst [vmem:[%s1036_s13 + $0x48] sm:$0xff] %v854_v34   ;;  %v429_v38 = vpop.f32.mrf.mxu2  ;;  %v449_v39 = vpop.f32.mrf.mxu3 }
  0xd0   : > { %898 = vst [vmem:[%s1036_s13 + $0x68] sm:$0xff] %v874_v35   ;;  %v391_v40 = vpop.f32.mrf.mxu0  ;;  %v411_v41 = vpop.f32.mrf.mxu1  ;;  %v430_v48 = vadd.f32 %v1023_v26, %v429_v38  ;;  %v450_v49 = vadd.f32 %v1023_v26, %v449_v39 }
  0xd1   : > { %v392_v44 = vadd.f32 %v1023_v26, %v391_v40  ;;  %v412_v45 = vadd.f32 %v1023_v26, %v411_v41 }
  0xd2   : > { %v511_v58 = vmul.f32 0.2, %v430_v48  ;;  %v519_v59 = vmul.f32 0.2, %v450_v49  ;;  %vm479_vm4 = vcmp.gt.f32.partialorder %v430_v48, 0.0  ;;  %vm487_vm5 = vcmp.gt.f32.partialorder %v450_v49, 0.0 }
  0xd3   : > { %vm464_vm2 = vcmp.gt.f32.partialorder %v392_v44, 0.0  ;;  %v496_v46 = vmul.f32 0.2, %v392_v44  ;;  %vm472_vm3 = vcmp.gt.f32.partialorder %v412_v45, 0.0  ;;  %v504_v47 = vmul.f32 0.2, %v412_v45 }
  0xd4   : > { %v543_v2 = vsel %vm479_vm4, %v430_v48, %v511_v58  ;;  %v551_v3 = vsel %vm487_vm5, %v450_v49, %v519_v59 }
  0xd5   : > { %v528_v52 = vsel %vm464_vm2, %v392_v44, %v496_v46  ;;  %v536_v53 = vsel %vm472_vm3, %v412_v45, %v504_v47 }
  0xd6   : > { %v819_v54 = vpack.c.bf16 %v528_v52, %v527_v50  ;;  %v839_v55 = vpack.c.bf16 %v536_v53, %v535_v51 }
  0xd7   : > { %v431_v56 = vpop.f32.mrf.mxu2  ;;  %v451_v57 = vpop.f32.mrf.mxu3 }
  0xd8   : > { %887 = vst [vmem:[%s1036_s13 + $0x10] sm:$0xff] %v819_v54   ;;  %v432_v60 = vadd.f32 %v1023_v26, %v431_v56  ;;  %v452_v61 = vadd.f32 %v1023_v26, %v451_v57  ;;  %v394_v62 = vpop.f32.mrf.mxu0  ;;  %v414_v63 = vpop.f32.mrf.mxu1 }
  0xd9   : > { %891 = vst [vmem:[%s1036_s13 + $0x30] sm:$0xff] %v839_v55   ;;  %v395_v8 = vadd.f32 %v1023_v26, %v394_v62  ;;  %v415_v9 = vadd.f32 %v1023_v26, %v414_v63 }
  0xda   : > { %vm480_vm6 = vcmp.gt.f32.partialorder %v432_v60, 0.0  ;;  %v512_v0 = vmul.f32 0.2, %v432_v60  ;;  %vm488_vm7 = vcmp.gt.f32.partialorder %v452_v61, 0.0  ;;  %v520_v1 = vmul.f32 0.2, %v452_v61 }
  0xdb   : > { %v497_v14 = vmul.f32 0.2, %v395_v8  ;;  %v505_v15 = vmul.f32 0.2, %v415_v9  ;;  %vm465_vm8 = vcmp.gt.f32.partialorder %v395_v8, 0.0  ;;  %vm473_vm9 = vcmp.gt.f32.partialorder %v415_v9, 0.0 }
  0xdc   : > { %v544_v4 = vsel %vm480_vm6, %v432_v60, %v512_v0  ;;  %v552_v5 = vsel %vm488_vm7, %v452_v61, %v520_v1 }
  0xdd   : > { %v859_v6 = vpack.c.bf16 %v544_v4, %v543_v2  ;;  %v879_v7 = vpack.c.bf16 %v552_v5, %v551_v3  ;;  %v529_v22 = vsel %vm465_vm8, %v395_v8, %v497_v14  ;;  %v537_v23 = vsel %vm473_vm9, %v415_v9, %v505_v15 }
  0xdf   : > { %895 = vst [vmem:[%s1036_s13 + $0x50] sm:$0xff] %v859_v6   ;;  %v434_v10 = vpop.f32.mrf.mxu2  ;;  %v454_v11 = vpop.f32.mrf.mxu3 }
  0xe0   : > { %899 = vst [vmem:[%s1036_s13 + $0x70] sm:$0xff] %v879_v7   ;;  %v396_v12 = vpop.f32.mrf.mxu0  ;;  %v416_v13 = vpop.f32.mrf.mxu1  ;;  %v435_v20 = vadd.f32 %v1023_v26, %v434_v10  ;;  %v455_v21 = vadd.f32 %v1023_v26, %v454_v11 }
  0xe1   : > { %v397_v16 = vadd.f32 %v1023_v26, %v396_v12  ;;  %v417_v17 = vadd.f32 %v1023_v26, %v416_v13 }
  0xe2   : > { %v513_v31 = vmul.f32 0.2, %v435_v20  ;;  %v521_v32 = vmul.f32 0.2, %v455_v21  ;;  %vm481_vm12 = vcmp.gt.f32.partialorder %v435_v20, 0.0  ;;  %vm489_vm13 = vcmp.gt.f32.partialorder %v455_v21, 0.0 }
  0xe3   : > { %vm466_vm10 = vcmp.gt.f32.partialorder %v397_v16, 0.0  ;;  %v498_v18 = vmul.f32 0.2, %v397_v16  ;;  %vm474_vm11 = vcmp.gt.f32.partialorder %v417_v17, 0.0  ;;  %v506_v19 = vmul.f32 0.2, %v417_v17 }
  0xe4   : > { %v545_v37 = vsel %vm481_vm12, %v435_v20, %v513_v31  ;;  %v553_v38 = vsel %vm489_vm13, %v455_v21, %v521_v32 }
  0xe5   : > { %v530_v24 = vsel %vm466_vm10, %v397_v16, %v498_v18  ;;  %v538_v25 = vsel %vm474_vm11, %v417_v17, %v506_v19 }
  0xe6   : > { %v824_v27 = vpack.c.bf16 %v530_v24, %v529_v22  ;;  %v844_v28 = vpack.c.bf16 %v538_v25, %v537_v23 }
  0xe7   : > { %v436_v29 = vpop.f32.mrf.mxu2  ;;  %v456_v30 = vpop.f32.mrf.mxu3 }
  0xe8   : > { %888 = vst [vmem:[%s1036_s13 + $0x18] sm:$0xff] %v824_v27   ;;  %v437_v33 = vadd.f32 %v1023_v26, %v436_v29  ;;  %v457_v34 = vadd.f32 %v1023_v26, %v456_v30 }
  0xe9   : > { %892 = vst [vmem:[%s1036_s13 + $0x38] sm:$0xff] %v844_v28  }
  0xea   : > { %vm482_vm14 = vcmp.gt.f32.partialorder %v437_v33, 0.0  ;;  %v514_v35 = vmul.f32 0.2, %v437_v33  ;;  %vm490_vm15 = vcmp.gt.f32.partialorder %v457_v34, 0.0  ;;  %v522_v36 = vmul.f32 0.2, %v457_v34 }
  0xec   : > { %v546_v39 = vsel %vm482_vm14, %v437_v33, %v514_v35  ;;  %v554_v40 = vsel %vm490_vm15, %v457_v34, %v522_v36 }
  0xed   : > { %v864_v41 = vpack.c.bf16 %v546_v39, %v545_v37  ;;  %v884_v42 = vpack.c.bf16 %v554_v40, %v553_v38 }
  0xef   : > { %896 = vst [vmem:[%s1036_s13 + $0x58] sm:$0xff] %v864_v41  }
  0xf0   : > { %900 = vst [vmem:[%s1036_s13 + $0x78] sm:$0xff] %v884_v42  }
  0xf1 PF: > { %s13_s12 = sadd.s32 1, %s940_s12  }
  0xf2   : > { %p10_p4 = scmp.ge.s32.totalorder %s13_s12, 4  }
  0xf4   :  { %12 = sbr.rel (!%p10_p4) target bundleno = 1 (0x1), region = 62 }

// kernel: vae_forward.8
= control target key start
LH: loop header
LB: loop body
LE: loop exit
PB: predicated region body
PF: predicated region fallthrough
CT: control target
= control target key end

     0   :  { %s798_s1 = inlined_call_operand.vmem [shape: bf16[256,128], index: 1, kind: input, shape index: {}]   ;;  %s799_s2 = inlined_call_operand.vmem [shape: f32[1,128], index: 2, kind: input, shape index: {}]   ;;  %s800_s0 = inlined_call_operand.vmem [shape: bf16[112,256], index: 0, kind: input, shape index: {}]   ;;  %s801_s3 = inlined_call_operand.vmem [shape: bf16[112,128], index: 3, kind: output, shape index: {}]  }
   0x1   :  { %v533_v0 = vld [vmem:[%s798_s1 + $0x38] sm:$0xff]  ;;  %v532_v2 = vld [vmem:[%s798_s1 + $0x30] sm:$0xff]  ;;  %v531_v4 = vld [vmem:[%s798_s1 + $0x28] sm:$0xff] }
   0x2   :  { %v541_v1 = vld [vmem:[%s798_s1 + $0x78] sm:$0xff]  ;;  %230 = vmatpush.bf16.msra.mxu0 %v533_v0  ;;  %583 = vmatpush.bf16.msra.mxu2 %v533_v0  ;;  %v540_v3 = vld [vmem:[%s798_s1 + $0x70] sm:$0xff]  ;;  %v539_v5 = vld [vmem:[%s798_s1 + $0x68] sm:$0xff] }
   0x3   :  { %274 = vmatpush.bf16.msra.mxu1 %v541_v1  ;;  %591 = vmatpush.bf16.msra.mxu3 %v541_v1  ;;  %v530_v6 = vld [vmem:[%s798_s1 + $0x20] sm:$0xff]  ;;  %v529_v8 = vld [vmem:[%s798_s1 + $0x18] sm:$0xff]  ;;  %v528_v10 = vld [vmem:[%s798_s1 + $0x10] sm:$0xff] }
   0x4   :  { %v538_v7 = vld [vmem:[%s798_s1 + $0x60] sm:$0xff]  ;;  %v537_v9 = vld [vmem:[%s798_s1 + $0x58] sm:$0xff]  ;;  %v536_v11 = vld [vmem:[%s798_s1 + $0x50] sm:$0xff] }
   0x5   :  { %v527_v12 = vld [vmem:[%s798_s1 + $0x8] sm:$0xff]  ;;  %v526_v14 = vld [vmem:[%s798_s1] sm:$0xff]  ;;  %v418_v18 = vld [vmem:[%s800_s0 + $0x30] sm:$0xf] }
   0x6   :  { %231 = vmatpush.bf16.msra.mxu0 %v532_v2  ;;  %584 = vmatpush.bf16.msra.mxu2 %v532_v2  ;;  %v535_v13 = vld [vmem:[%s798_s1 + $0x48] sm:$0xff]  ;;  %v534_v15 = vld [vmem:[%s798_s1 + $0x40] sm:$0xff]  ;;  %v519_v19 = vld [vmem:[%s800_s0 + $0x34] sm:$0xf0] }
   0x7   :  { %275 = vmatpush.bf16.msra.mxu1 %v540_v3  ;;  %592 = vmatpush.bf16.msra.mxu3 %v540_v3  ;;  %v394_v16 = vld [vmem:[%s800_s0] sm:$0xf]  ;;  %v513_v17 = vld [vmem:[%s800_s0 + $0x4] sm:$0xf0]  ;;  %v512_v20 = vld [vmem:[%s800_s0 + $0x4] sm:$0xf]  ;;  %v419_v25 = vor.u32 %v519_v19, %v418_v18 }
   0x8   :  { %v396_v21 = vld [vmem:[%s800_s0 + $0x8] sm:$0xf0]  ;;  %v520_v22 = vld [vmem:[%s800_s0 + $0x44] sm:$0xf]  ;;  %v395_v24 = vor.u32 %v513_v17, %v394_v16  ;;  %v402_v28 = vld [vmem:[%s800_s0 + $0x10] sm:$0xf] }
   0x9   :  { %v428_v23 = vld [vmem:[%s800_s0 + $0x48] sm:$0xf0]  ;;  %v399_v26 = vor.u32 %v512_v20, %v396_v21  ;;  %v515_v29 = vld [vmem:[%s800_s0 + $0x14] sm:$0xf0]  ;;  %v426_v30 = vld [vmem:[%s800_s0 + $0x40] sm:$0xf] }
   0xa   :  { %232 = vmatpush.bf16.msra.mxu0 %v531_v4  ;;  %585 = vmatpush.bf16.msra.mxu2 %v531_v4  ;;  %v431_v27 = vor.u32 %v520_v22, %v428_v23  ;;  %v521_v31 = vld [vmem:[%s800_s0 + $0x44] sm:$0xf0]  ;;  %v514_v32 = vld [vmem:[%s800_s0 + $0x14] sm:$0xf]  ;;  %v404_v33 = vld [vmem:[%s800_s0 + $0x18] sm:$0xf0]  ;;  %v403_v36 = vor.u32 %v515_v29, %v402_v28 }
   0xb   :  { %276 = vmatpush.bf16.msra.mxu1 %v539_v5  ;;  %593 = vmatpush.bf16.msra.mxu3 %v539_v5  ;;  %v522_v34 = vld [vmem:[%s800_s0 + $0x54] sm:$0xf]  ;;  %v436_v35 = vld [vmem:[%s800_s0 + $0x58] sm:$0xf0]  ;;  %v427_v37 = vor.u32 %v521_v31, %v426_v30  ;;  %v407_v38 = vor.u32 %v514_v32, %v404_v33  ;;  %v410_v40 = vld [vmem:[%s800_s0 + $0x20] sm:$0xf] }
   0xc   :  { %v439_v39 = vor.u32 %v522_v34, %v436_v35  ;;  %v517_v41 = vld [vmem:[%s800_s0 + $0x24] sm:$0xf0]  ;;  %v434_v42 = vld [vmem:[%s800_s0 + $0x50] sm:$0xf]  ;;  %v523_v43 = vld [vmem:[%s800_s0 + $0x54] sm:$0xf0] }
   0xd   :  { %v516_v44 = vld [vmem:[%s800_s0 + $0x24] sm:$0xf]  ;;  %v412_v45 = vld [vmem:[%s800_s0 + $0x28] sm:$0xf0]  ;;  %v411_v48 = vor.u32 %v517_v41, %v410_v40  ;;  %v435_v49 = vor.u32 %v523_v43, %v434_v42  ;;  %v442_v52 = vld [vmem:[%s800_s0 + $0x60] sm:$0xf] }
   0xe   :  { %233 = vmatpush.bf16.msra.mxu0 %v530_v6  ;;  %586 = vmatpush.bf16.msra.mxu2 %v530_v6  ;;  %v524_v46 = vld [vmem:[%s800_s0 + $0x64] sm:$0xf]  ;;  %v444_v47 = vld [vmem:[%s800_s0 + $0x68] sm:$0xf0]  ;;  %v415_v50 = vor.u32 %v516_v44, %v412_v45  ;;  %v525_v53 = vld [vmem:[%s800_s0 + $0x64] sm:$0xf0] }
   0xf   :  { %277 = vmatpush.bf16.msra.mxu1 %v538_v7  ;;  %594 = vmatpush.bf16.msra.mxu3 %v538_v7  ;;  %v447_v51 = vor.u32 %v524_v46, %v444_v47  ;;  %v518_v54 = vld [vmem:[%s800_s0 + $0x34] sm:$0xf]  ;;  %v420_v55 = vld [vmem:[%s800_s0 + $0x38] sm:$0xf0]  ;;  %v443_v56 = vor.u32 %v525_v53, %v442_v52  ;;  %v755_v58 = vld [vmem:[%s799_s2] ss:$0 sm:$0xff] }
  0x10   :  { %v423_v57 = vor.u32 %v518_v54, %v420_v55 }
  0x12   :  { %234 = vmatpush.bf16.msra.mxu0 %v529_v8  ;;  %587 = vmatpush.bf16.msra.mxu2 %v529_v8 }
  0x13   :  { %278 = vmatpush.bf16.msra.mxu1 %v537_v9  ;;  %595 = vmatpush.bf16.msra.mxu3 %v537_v9 }
  0x16   :  { %235 = vmatpush.bf16.msra.mxu0 %v528_v10  ;;  %588 = vmatpush.bf16.msra.mxu2 %v528_v10 }
  0x17   :  { %279 = vmatpush.bf16.msra.mxu1 %v536_v11  ;;  %596 = vmatpush.bf16.msra.mxu3 %v536_v11 }
  0x1a   :  { %236 = vmatpush.bf16.msra.mxu0 %v527_v12  ;;  %589 = vmatpush.bf16.msra.mxu2 %v527_v12 }
  0x1b   :  { %280 = vmatpush.bf16.msra.mxu1 %v535_v13  ;;  %597 = vmatpush.bf16.msra.mxu3 %v535_v13 }
  0x1e   :  { %237 = vmatpush.bf16.msra.mxu0 %v526_v14  ;;  %590 = vmatpush.bf16.msra.mxu2 %v526_v14 }
  0x1f   :  { %281 = vmatpush.bf16.msra.mxu1 %v534_v15  ;;  %598 = vmatpush.bf16.msra.mxu3 %v534_v15 }
  0x21   :  { %238 = vmatmul.bf16.vlgmr.msra.gmra.mxu0 %v395_v24  ;;  %253 = vmatmul.bf16.vlgmr.msra.gmra.mxu2 %v419_v25 }
  0x22   :  { %282 = vmatmul.bf16.vlgmr.msra.gmra.mxu1 %v399_v26  ;;  %302 = vmatmul.bf16.vlgmr.msra.gmra.mxu3 %v431_v27 }
  0x31   :  { %243 = vmatmul.bf16.gmra.mxu0 %v403_v36  ;;  %258 = vmatmul.bf16.gmra.mxu2 %v427_v37 }
  0x32   :  { %287 = vmatmul.bf16.gmra.mxu1 %v407_v38  ;;  %307 = vmatmul.bf16.gmra.mxu3 %v439_v39 }
  0x41   :  { %248 = vmatmul.bf16.gmra.mxu0 %v411_v48  ;;  %263 = vmatmul.bf16.gmra.mxu2 %v435_v49 }
  0x42   :  { %292 = vmatmul.bf16.gmra.mxu1 %v415_v50  ;;  %312 = vmatmul.bf16.gmra.mxu3 %v447_v51 }
  0x51   :  { %268 = vmatmul.bf16.gmra.mxu2 %v443_v56 }
  0x52   :  { %297 = vmatmul.bf16.gmra.mxu1 %v423_v57 }
  0x9e   :  { %v239_v59 = vpop.f32.mrf.mxu0 }
  0x9f   :  { %v283_v60 = vpop.f32.mrf.mxu1  ;;  %v240_v61 = vadd.f32 %v755_v58, %v239_v59 }
  0xa1   :  { %v284_v63 = vadd.f32 %v283_v60, %v240_v61 }
  0xa3   :  { %v332_v3 = vmul.f32 0.2, %v284_v63  ;;  %vm318_vm0 = vcmp.gt.f32.partialorder %v284_v63, 0.0 }
  0xa4   :  { %v758_v62 = vpop.f32.mrf.mxu2 }
  0xa5   :  { %v303_v7 = vpop.f32.mrf.mxu3  ;;  %v346_v8 = vsel %vm318_vm0, %v284_v63, %v332_v3  ;;  %v255_v61 = vadd.f32 %v755_v58, %v758_v62 }
  0xa6   :  { %v241_v0 = vpop.f32.mrf.mxu0 }
  0xa7   :  { %v242_v1 = vadd.f32 %v755_v58, %v241_v0  ;;  %v285_v2 = vpop.f32.mrf.mxu1 }
  0xa9   :  { %v286_v4 = vadd.f32 %v285_v2, %v242_v1 }
  0xab   :  { %vm319_vm1 = vcmp.gt.f32.partialorder %v286_v4, 0.0  ;;  %v333_v5 = vmul.f32 0.2, %v286_v4 }
  0xac   :  { %v761_v6 = vpop.f32.mrf.mxu2 }
  0xad   :  { %v347_v9 = vsel %vm319_vm1, %v286_v4, %v333_v5  ;;  %v305_v17 = vpop.f32.mrf.mxu3  ;;  %v257_v5 = vadd.f32 %v755_v58, %v761_v6 }
  0xae   :  { %v545_v10 = vpack.c.bf16 %v347_v9, %v346_v8  ;;  %v244_v11 = vpop.f32.mrf.mxu0 }
  0xaf   :  { %v288_v12 = vpop.f32.mrf.mxu1  ;;  %v245_v13 = vadd.f32 %v755_v58, %v244_v11 }
  0xb0   :  { %546 = vst [vmem:[%s801_s3] sm:$0xff] %v545_v10  }
  0xb1   :  { %v289_v15 = vadd.f32 %v288_v12, %v245_v13 }
  0xb3   :  { %v334_v21 = vmul.f32 0.2, %v289_v15  ;;  %vm320_vm2 = vcmp.gt.f32.partialorder %v289_v15, 0.0 }
  0xb4   :  { %v259_v14 = vpop.f32.mrf.mxu2 }
  0xb5   :  { %v260_v18 = vadd.f32 %v755_v58, %v259_v14  ;;  %v348_v26 = vsel %vm320_vm2, %v289_v15, %v334_v21  ;;  %v308_v34 = vpop.f32.mrf.mxu3 }
  0xb6   :  { %v246_v16 = vpop.f32.mrf.mxu0 }
  0xb7   :  { %v247_v19 = vadd.f32 %v755_v58, %v246_v16  ;;  %v290_v20 = vpop.f32.mrf.mxu1  ;;  %v304_v23 = vadd.f32 %v303_v7, %v260_v18 }
  0xb9   :  { %v291_v22 = vadd.f32 %v290_v20, %v247_v19  ;;  %v340_v31 = vmul.f32 0.2, %v304_v23  ;;  %vm326_vm4 = vcmp.gt.f32.partialorder %v304_v23, 0.0 }
  0xbb   :  { %vm321_vm3 = vcmp.gt.f32.partialorder %v291_v22, 0.0  ;;  %v335_v24 = vmul.f32 0.2, %v291_v22  ;;  %v354_v37 = vsel %vm326_vm4, %v304_v23, %v340_v31 }
  0xbc   :  { %v261_v25 = vpop.f32.mrf.mxu2 }
  0xbd   :  { %v349_v27 = vsel %vm321_vm3, %v291_v22, %v335_v24  ;;  %v262_v28 = vadd.f32 %v755_v58, %v261_v25  ;;  %v310_v48 = vpop.f32.mrf.mxu3 }
  0xbe   :  { %v550_v29 = vpack.c.bf16 %v349_v27, %v348_v26  ;;  %v249_v30 = vpop.f32.mrf.mxu0 }
  0xbf   :  { %v306_v32 = vadd.f32 %v305_v17, %v262_v28  ;;  %v293_v33 = vpop.f32.mrf.mxu1  ;;  %v250_v36 = vadd.f32 %v755_v58, %v249_v30 }
  0xc0   :  { %577 = vst [vmem:[%s801_s3 + $0x8] sm:$0xff] %v550_v29  }
  0xc1   :  { %vm327_vm5 = vcmp.gt.f32.partialorder %v306_v32, 0.0  ;;  %v341_v35 = vmul.f32 0.2, %v306_v32  ;;  %v294_v41 = vadd.f32 %v293_v33, %v250_v36 }
  0xc3   :  { %v355_v38 = vsel %vm327_vm5, %v306_v32, %v341_v35  ;;  %v336_v46 = vmul.f32 0.2, %v294_v41  ;;  %vm322_vm6 = vcmp.gt.f32.partialorder %v294_v41, 0.0 }
  0xc4   :  { %v565_v39 = vpack.c.bf16 %v355_v38, %v354_v37  ;;  %v264_v40 = vpop.f32.mrf.mxu2 }
  0xc5   :  { %v265_v43 = vadd.f32 %v755_v58, %v264_v40  ;;  %v350_v52 = vsel %vm322_vm6, %v294_v41, %v336_v46  ;;  %v313_v3 = vpop.f32.mrf.mxu3 }
  0xc6   :  { %580 = vst [vmem:[%s801_s3 + $0x20] sm:$0xff] %v565_v39   ;;  %v251_v42 = vpop.f32.mrf.mxu0 }
  0xc7   :  { %v252_v44 = vadd.f32 %v755_v58, %v251_v42  ;;  %v295_v45 = vpop.f32.mrf.mxu1  ;;  %v309_v49 = vadd.f32 %v308_v34, %v265_v43 }
  0xc9   :  { %v296_v47 = vadd.f32 %v295_v45, %v252_v44  ;;  %v342_v56 = vmul.f32 0.2, %v309_v49  ;;  %vm328_vm8 = vcmp.gt.f32.partialorder %v309_v49, 0.0 }
  0xcb   :  { %vm323_vm7 = vcmp.gt.f32.partialorder %v296_v47, 0.0  ;;  %v337_v50 = vmul.f32 0.2, %v296_v47  ;;  %v356_v63 = vsel %vm328_vm8, %v309_v49, %v342_v56 }
  0xcc   :  { %v266_v51 = vpop.f32.mrf.mxu2 }
  0xcd   :  { %v351_v53 = vsel %vm323_vm7, %v296_v47, %v337_v50  ;;  %v267_v54 = vadd.f32 %v755_v58, %v266_v51  ;;  %v315_v6 = vpop.f32.mrf.mxu3 }
  0xce   :  { %v555_v55 = vpack.c.bf16 %v351_v53, %v350_v52 }
  0xcf   :  { %v311_v57 = vadd.f32 %v310_v48, %v267_v54  ;;  %v298_v59 = vpop.f32.mrf.mxu1 }
  0xd0   :  { %578 = vst [vmem:[%s801_s3 + $0x10] sm:$0xff] %v555_v55   ;;  %v299_v2 = vadd.f32 %v298_v59, %v255_v61 }
  0xd1   :  { %vm329_vm9 = vcmp.gt.f32.partialorder %v311_v57, 0.0  ;;  %v343_v60 = vmul.f32 0.2, %v311_v57 }
  0xd2   :  { %v338_v9 = vmul.f32 0.2, %v299_v2  ;;  %vm324_vm10 = vcmp.gt.f32.partialorder %v299_v2, 0.0 }
  0xd3   :  { %v357_v0 = vsel %vm329_vm9, %v311_v57, %v343_v60 }
  0xd4   :  { %v570_v1 = vpack.c.bf16 %v357_v0, %v356_v63  ;;  %v269_v4 = vpop.f32.mrf.mxu2  ;;  %v352_v12 = vsel %vm324_vm10, %v299_v2, %v338_v9 }
  0xd5   :  { %v270_v7 = vadd.f32 %v755_v58, %v269_v4 }
  0xd6   :  { %581 = vst [vmem:[%s801_s3 + $0x28] sm:$0xff] %v570_v1  }
  0xd7   :  { %v300_v8 = vpop.f32.mrf.mxu1  ;;  %v314_v11 = vadd.f32 %v313_v3, %v270_v7 }
  0xd8   :  { %v301_v10 = vadd.f32 %v300_v8, %v257_v5 }
  0xd9   :  { %v344_v17 = vmul.f32 0.2, %v314_v11  ;;  %vm330_vm12 = vcmp.gt.f32.partialorder %v314_v11, 0.0 }
  0xda   :  { %vm325_vm11 = vcmp.gt.f32.partialorder %v301_v10, 0.0  ;;  %v339_v62 = vmul.f32 0.2, %v301_v10 }
  0xdb   :  { %v358_v20 = vsel %vm330_vm12, %v314_v11, %v344_v17 }
  0xdc   :  { %v353_v13 = vsel %vm325_vm11, %v301_v10, %v339_v62  ;;  %v271_v14 = vpop.f32.mrf.mxu2 }
  0xdd   :  { %v560_v15 = vpack.c.bf16 %v353_v13, %v352_v12  ;;  %v272_v16 = vadd.f32 %v755_v58, %v271_v14 }
  0xdf   :  { %579 = vst [vmem:[%s801_s3 + $0x18] sm:$0xff] %v560_v15   ;;  %v316_v18 = vadd.f32 %v315_v6, %v272_v16 }
  0xe1   :  { %vm331_vm13 = vcmp.gt.f32.partialorder %v316_v18, 0.0  ;;  %v345_v19 = vmul.f32 0.2, %v316_v18 }
  0xe3   :  { %v359_v21 = vsel %vm331_vm13, %v316_v18, %v345_v19 }
  0xe4   :  { %v575_v22 = vpack.c.bf16 %v359_v21, %v358_v20 }
  0xe6   :  { %582 = vst [vmem:[%s801_s3 + $0x30] sm:$0xff] %v575_v22  }

// kernel: vae_forward.9
= control target key start
LH: loop header
LB: loop body
LE: loop exit
PB: predicated region body
PF: predicated region fallthrough
CT: control target
= control target key end

     0   :  { %s1145_s1 = inlined_call_operand.vmem [shape: bf16[384,128], index: 1, kind: input, shape index: {}]   ;;  %s1146_s0 = inlined_call_operand.vmem [shape: bf16[112,384], index: 0, kind: input, shape index: {}]   ;;  %s1147_s2 = inlined_call_operand.vmem [shape: f32[1,128], index: 2, kind: input, shape index: {}]   ;;  %s1148_s3 = inlined_call_operand.vmem [shape: bf16[112,128], index: 3, kind: output, shape index: {}]  }
   0x1   :  { %v764_v0 = vld [vmem:[%s1145_s1 + $0x38] sm:$0xff]  ;;  %v763_v3 = vld [vmem:[%s1145_s1 + $0x30] sm:$0xff]  ;;  %v762_v6 = vld [vmem:[%s1145_s1 + $0x28] sm:$0xff] }
   0x2   :  { %v873_v1 = vld [vmem:[%s1145_s1 + $0x78] sm:$0xff]  ;;  %350 = vmatpush.bf16.msra.mxu0 %v764_v0  ;;  %822 = vmatpush.bf16.msra.mxu3 %v764_v0  ;;  %v888_v4 = vld [vmem:[%s1145_s1 + $0x70] sm:$0xff]  ;;  %v770_v7 = vld [vmem:[%s1145_s1 + $0x68] sm:$0xff] }
   0x3   :  { %v878_v2 = vld [vmem:[%s1145_s1 + $0xb8] sm:$0xff]  ;;  %830 = vmatpush.bf16.msra.mxu1 %v873_v1  ;;  %v893_v5 = vld [vmem:[%s1145_s1 + $0xb0] sm:$0xff]  ;;  %v906_v8 = vld [vmem:[%s1145_s1 + $0xa8] sm:$0xff] }
   0x4   :  { %838 = vmatpush.bf16.msra.mxu2 %v878_v2  ;;  %v761_v9 = vld [vmem:[%s1145_s1 + $0x20] sm:$0xff]  ;;  %v760_v12 = vld [vmem:[%s1145_s1 + $0x18] sm:$0xff]  ;;  %v759_v15 = vld [vmem:[%s1145_s1 + $0x10] sm:$0xff] }
   0x5   :  { %v769_v10 = vld [vmem:[%s1145_s1 + $0x60] sm:$0xff]  ;;  %v768_v13 = vld [vmem:[%s1145_s1 + $0x58] sm:$0xff]  ;;  %v767_v16 = vld [vmem:[%s1145_s1 + $0x50] sm:$0xff] }
   0x6   :  { %351 = vmatpush.bf16.msra.mxu0 %v763_v3  ;;  %823 = vmatpush.bf16.msra.mxu3 %v763_v3  ;;  %v918_v11 = vld [vmem:[%s1145_s1 + $0xa0] sm:$0xff]  ;;  %v930_v14 = vld [vmem:[%s1145_s1 + $0x98] sm:$0xff]  ;;  %v942_v17 = vld [vmem:[%s1145_s1 + $0x90] sm:$0xff] }
   0x7   :  { %831 = vmatpush.bf16.msra.mxu1 %v888_v4  ;;  %v758_v18 = vld [vmem:[%s1145_s1 + $0x8] sm:$0xff]  ;;  %v757_v21 = vld [vmem:[%s1145_s1] sm:$0xff]  ;;  %v570_v24 = vld [vmem:[%s1146_s0 + $0x18] sm:$0xf] }
   0x8   :  { %839 = vmatpush.bf16.msra.mxu2 %v893_v5  ;;  %v766_v19 = vld [vmem:[%s1145_s1 + $0x48] sm:$0xff]  ;;  %v765_v22 = vld [vmem:[%s1145_s1 + $0x40] sm:$0xff]  ;;  %v739_v26 = vld [vmem:[%s1146_s0 + $0x1c] sm:$0xf] }
   0x9   :  { %v954_v20 = vld [vmem:[%s1145_s1 + $0x88] sm:$0xff]  ;;  %v965_v23 = vld [vmem:[%s1145_s1 + $0x80] sm:$0xff]  ;;  %v582_v36 = vld [vmem:[%s1146_s0 + $0x30] sm:$0xf] }
   0xa   :  { %352 = vmatpush.bf16.msra.mxu0 %v762_v6  ;;  %824 = vmatpush.bf16.msra.mxu3 %v762_v6  ;;  %v740_v25 = vld [vmem:[%s1146_s0 + $0x20] sm:$0xf0]  ;;  %v558_v27 = vld [vmem:[%s1146_s0] sm:$0xf]  ;;  %v737_v28 = vld [vmem:[%s1146_s0 + $0x8] sm:$0xf0] }
   0xb   :  { %832 = vmatpush.bf16.msra.mxu1 %v770_v7  ;;  %v572_v29 = vld [vmem:[%s1146_s0 + $0x24] sm:$0xf0]  ;;  %v578_v30 = vld [vmem:[%s1146_s0 + $0x20] sm:$0xf]  ;;  %v741_v31 = vld [vmem:[%s1146_s0 + $0x28] sm:$0xf0]  ;;  %v571_v32 = vor.u32 %v740_v25, %v570_v24  ;;  %v559_v33 = vor.u32 %v737_v28, %v558_v27 }
   0xc   :  { %840 = vmatpush.bf16.msra.mxu2 %v906_v8  ;;  %v575_v34 = vor.u32 %v739_v26, %v572_v29  ;;  %v579_v35 = vor.u32 %v741_v31, %v578_v30  ;;  %v743_v37 = vld [vmem:[%s1146_s0 + $0x38] sm:$0xf0]  ;;  %v742_v38 = vld [vmem:[%s1146_s0 + $0x34] sm:$0xf]  ;;  %v584_v39 = vld [vmem:[%s1146_s0 + $0x3c] sm:$0xf0] }
   0xd   :  { %v590_v40 = vld [vmem:[%s1146_s0 + $0x38] sm:$0xf]  ;;  %v744_v41 = vld [vmem:[%s1146_s0 + $0x40] sm:$0xf0]  ;;  %v583_v42 = vor.u32 %v743_v37, %v582_v36  ;;  %v587_v43 = vor.u32 %v742_v38, %v584_v39  ;;  %v560_v46 = vld [vmem:[%s1146_s0 + $0xc] sm:$0xf0] }
   0xe   :  { %353 = vmatpush.bf16.msra.mxu0 %v761_v9  ;;  %825 = vmatpush.bf16.msra.mxu3 %v761_v9  ;;  %v591_v44 = vor.u32 %v744_v41, %v590_v40  ;;  %v736_v45 = vld [vmem:[%s1146_s0 + $0x4] sm:$0xf]  ;;  %v594_v47 = vld [vmem:[%s1146_s0 + $0x48] sm:$0xf]  ;;  %v746_v48 = vld [vmem:[%s1146_s0 + $0x50] sm:$0xf0] }
   0xf   :  { %833 = vmatpush.bf16.msra.mxu1 %v769_v10  ;;  %v745_v49 = vld [vmem:[%s1146_s0 + $0x4c] sm:$0xf]  ;;  %v596_v50 = vld [vmem:[%s1146_s0 + $0x54] sm:$0xf0]  ;;  %v602_v51 = vld [vmem:[%s1146_s0 + $0x50] sm:$0xf]  ;;  %v563_v53 = vor.u32 %v736_v45, %v560_v46  ;;  %v595_v54 = vor.u32 %v746_v48, %v594_v47 }
  0x10   :  { %841 = vmatpush.bf16.msra.mxu2 %v918_v11  ;;  %v747_v52 = vld [vmem:[%s1146_s0 + $0x58] sm:$0xf0]  ;;  %v599_v55 = vor.u32 %v745_v49, %v596_v50  ;;  %v606_v57 = vld [vmem:[%s1146_s0 + $0x60] sm:$0xf]  ;;  %v749_v58 = vld [vmem:[%s1146_s0 + $0x68] sm:$0xf0] }
  0x11   :  { %v603_v56 = vor.u32 %v747_v52, %v602_v51  ;;  %v748_v59 = vld [vmem:[%s1146_s0 + $0x64] sm:$0xf]  ;;  %v608_v60 = vld [vmem:[%s1146_s0 + $0x6c] sm:$0xf0]  ;;  %v614_v61 = vld [vmem:[%s1146_s0 + $0x68] sm:$0xf]  ;;  %v607_v63 = vor.u32 %v749_v58, %v606_v57 }
  0x12   :  { %354 = vmatpush.bf16.msra.mxu0 %v760_v12  ;;  %826 = vmatpush.bf16.msra.mxu3 %v760_v12  ;;  %v750_v62 = vld [vmem:[%s1146_s0 + $0x70] sm:$0xf0]  ;;  %v611_v0 = vor.u32 %v748_v59, %v608_v60  ;;  %v752_v6 = vld [vmem:[%s1146_s0 + $0x80] sm:$0xf0]  ;;  %v626_v9 = vld [vmem:[%s1146_s0 + $0x80] sm:$0xf] }
  0x13   :  { %834 = vmatpush.bf16.msra.mxu1 %v768_v13  ;;  %v738_v3 = vld [vmem:[%s1146_s0 + $0x10] sm:$0xf0]  ;;  %v1108_v24 = vld [vmem:[%s1147_s2] ss:$0 sm:$0xff] }
  0x14   :  { %842 = vmatpush.bf16.msra.mxu2 %v930_v14 }
  0x16   :  { %355 = vmatpush.bf16.msra.mxu0 %v759_v15  ;;  %827 = vmatpush.bf16.msra.mxu3 %v759_v15  ;;  %v755_v15 = vld [vmem:[%s1146_s0 + $0x98] sm:$0xf0] }
  0x17   :  { %835 = vmatpush.bf16.msra.mxu1 %v767_v16 }
  0x18   :  { %843 = vmatpush.bf16.msra.mxu2 %v942_v17 }
  0x1a   :  { %356 = vmatpush.bf16.msra.mxu0 %v758_v18  ;;  %828 = vmatpush.bf16.msra.mxu3 %v758_v18  ;;  %v638_v18 = vld [vmem:[%s1146_s0 + $0x98] sm:$0xf] }
  0x1b   :  { %836 = vmatpush.bf16.msra.mxu1 %v766_v19 }
  0x1c   :  { %844 = vmatpush.bf16.msra.mxu2 %v954_v20 }
  0x1e   :  { %357 = vmatpush.bf16.msra.mxu0 %v757_v21  ;;  %829 = vmatpush.bf16.msra.mxu3 %v757_v21 }
  0x1f   :  { %837 = vmatpush.bf16.msra.mxu1 %v765_v22 }
  0x20   :  { %845 = vmatpush.bf16.msra.mxu2 %v965_v23 }
  0x21   :  { %363 = vmatmul.bf16.vlgmr.msra.gmra.mxu3 %v571_v32  ;;  %358 = vmatmul.bf16.vlgmr.msra.gmra.mxu0 %v559_v33 }
  0x22   :  { %394 = vmatpush.bf16.msrb.mxu0 %v873_v1  ;;  %407 = vmatmul.bf16.vlgmr.msra.gmra.mxu1 %v575_v34  ;;  %v615_v1 = vor.u32 %v750_v62, %v614_v61 }
  0x23   :  { %451 = vmatmul.bf16.vlgmr.msra.gmra.mxu2 %v579_v35 }
  0x26   :  { %395 = vmatpush.bf16.msrb.mxu0 %v888_v4 }
  0x2a   :  { %396 = vmatpush.bf16.msrb.mxu0 %v770_v7  ;;  %v751_v7 = vld [vmem:[%s1146_s0 + $0x7c] sm:$0xf] }
  0x2e   :  { %397 = vmatpush.bf16.msrb.mxu0 %v769_v10  ;;  %v753_v10 = vld [vmem:[%s1146_s0 + $0x88] sm:$0xf0] }
  0x31   :  { %368 = vmatmul.bf16.gmra.mxu3 %v583_v42 }
  0x32   :  { %398 = vmatpush.bf16.msrb.mxu0 %v768_v13  ;;  %412 = vmatmul.bf16.gmra.mxu1 %v587_v43  ;;  %v627_v13 = vor.u32 %v753_v10, %v626_v9 }
  0x33   :  { %456 = vmatmul.bf16.gmra.mxu2 %v591_v44 }
  0x36   :  { %399 = vmatpush.bf16.msrb.mxu0 %v767_v16  ;;  %v754_v16 = vld [vmem:[%s1146_s0 + $0x94] sm:$0xf] }
  0x3a   :  { %400 = vmatpush.bf16.msrb.mxu0 %v766_v19  ;;  %v756_v19 = vld [vmem:[%s1146_s0 + $0xa0] sm:$0xf0] }
  0x3e   :  { %401 = vmatpush.bf16.msrb.mxu0 %v765_v22  ;;  %v639_v22 = vor.u32 %v756_v19, %v638_v18 }
  0x41   :  { %402 = vmatmul.bf16.vlgmr.msrb.gmra.mxu0 %v563_v53  ;;  %373 = vmatmul.bf16.gmra.mxu3 %v595_v54 }
  0x42   :  { %438 = vmatpush.bf16.msra.mxu0 %v878_v2  ;;  %417 = vmatmul.bf16.gmra.mxu1 %v599_v55  ;;  %v566_v2 = vld [vmem:[%s1146_s0 + $0x8] sm:$0xf] }
  0x43   :  { %461 = vmatmul.bf16.gmra.mxu2 %v603_v56  ;;  %v567_v4 = vor.u32 %v738_v3, %v566_v2 }
  0x46   :  { %439 = vmatpush.bf16.msra.mxu0 %v893_v5  ;;  %v618_v5 = vld [vmem:[%s1146_s0 + $0x78] sm:$0xf] }
  0x4a   :  { %440 = vmatpush.bf16.msra.mxu0 %v906_v8  ;;  %v620_v8 = vld [vmem:[%s1146_s0 + $0x84] sm:$0xf0] }
  0x4b   :  { %v623_v12 = vor.u32 %v751_v7, %v620_v8 }
  0x4e   :  { %441 = vmatpush.bf16.msra.mxu0 %v918_v11  ;;  %v619_v11 = vor.u32 %v752_v6, %v618_v5 }
  0x51   :  { %378 = vmatmul.bf16.gmra.mxu3 %v607_v63 }
  0x52   :  { %442 = vmatpush.bf16.msra.mxu0 %v930_v14  ;;  %422 = vmatmul.bf16.gmra.mxu1 %v611_v0  ;;  %v630_v14 = vld [vmem:[%s1146_s0 + $0x90] sm:$0xf] }
  0x53   :  { %466 = vmatmul.bf16.gmra.mxu2 %v615_v1 }
  0x56   :  { %443 = vmatpush.bf16.msra.mxu0 %v942_v17  ;;  %v632_v17 = vld [vmem:[%s1146_s0 + $0x9c] sm:$0xf0] }
  0x57   :  { %v635_v21 = vor.u32 %v754_v16, %v632_v17 }
  0x5a   :  { %444 = vmatpush.bf16.msra.mxu0 %v954_v20  ;;  %v631_v20 = vor.u32 %v755_v15, %v630_v14 }
  0x5e   :  { %445 = vmatpush.bf16.msra.mxu0 %v965_v23 }
  0x61   :  { %446 = vmatmul.bf16.vlgmr.msra.gmra.mxu0 %v567_v4  ;;  %383 = vmatmul.bf16.gmra.mxu3 %v619_v11 }
  0x62   :  { %427 = vmatmul.bf16.gmra.mxu1 %v623_v12 }
  0x63   :  { %471 = vmatmul.bf16.gmra.mxu2 %v627_v13 }
  0x71   :  { %388 = vmatmul.bf16.gmra.mxu3 %v631_v20 }
  0x72   :  { %432 = vmatmul.bf16.gmra.mxu1 %v635_v21 }
  0x73   :  { %476 = vmatmul.bf16.gmra.mxu2 %v639_v22 }
  0x9e   :  { %v359_v38 = vpop.f32.mrf.mxu0 }
  0x9f   :  { %v408_v23 = vpop.f32.mrf.mxu1  ;;  %v360_v18 = vadd.f32 %v1108_v24, %v359_v38 }
  0xa4   :  { %v364_v25 = vpop.f32.mrf.mxu3 }
  0xa5   :  { %v365_v26 = vadd.f32 %v1108_v24, %v364_v25 }
  0xa6   :  { %v452_v27 = vpop.f32.mrf.mxu2  ;;  %v361_v48 = vpop.f32.mrf.mxu0 }
  0xa7   :  { %v410_v28 = vpop.f32.mrf.mxu1  ;;  %v409_v29 = vadd.f32 %v408_v23, %v365_v26  ;;  %v362_v25 = vadd.f32 %v1108_v24, %v361_v48 }
  0xa9   :  { %v453_v31 = vadd.f32 %v452_v27, %v409_v29 }
  0xab   :  { %v498_v36 = vmul.f32 0.2, %v453_v31  ;;  %vm484_vm0 = vcmp.gt.f32.partialorder %v453_v31, 0.0 }
  0xac   :  { %v366_v30 = vpop.f32.mrf.mxu3 }
  0xad   :  { %v367_v32 = vadd.f32 %v1108_v24, %v366_v30  ;;  %v512_v41 = vsel %vm484_vm0, %v453_v31, %v498_v36 }
  0xae   :  { %v454_v33 = vpop.f32.mrf.mxu2 }
  0xaf   :  { %v411_v34 = vadd.f32 %v410_v28, %v367_v32  ;;  %v413_v35 = vpop.f32.mrf.mxu1 }
  0xb1   :  { %v455_v37 = vadd.f32 %v454_v33, %v411_v34 }
  0xb3   :  { %vm485_vm1 = vcmp.gt.f32.partialorder %v455_v37, 0.0  ;;  %v499_v39 = vmul.f32 0.2, %v455_v37 }
  0xb4   :  { %v369_v40 = vpop.f32.mrf.mxu3 }
  0xb5   :  { %v513_v42 = vsel %vm485_vm1, %v455_v37, %v499_v39  ;;  %v370_v43 = vadd.f32 %v1108_v24, %v369_v40 }
  0xb6   :  { %v457_v44 = vpop.f32.mrf.mxu2  ;;  %v789_v45 = vpack.c.bf16 %v513_v42, %v512_v41 }
  0xb7   :  { %v415_v46 = vpop.f32.mrf.mxu1  ;;  %v414_v47 = vadd.f32 %v413_v35, %v370_v43 }
  0xb8   :  { %816 = vst [vmem:[%s1148_s3 + $0x8] sm:$0xff] %v789_v45  }
  0xb9   :  { %v458_v50 = vadd.f32 %v457_v44, %v414_v47 }
  0xbb   :  { %v500_v55 = vmul.f32 0.2, %v458_v50  ;;  %vm486_vm2 = vcmp.gt.f32.partialorder %v458_v50, 0.0 }
  0xbc   :  { %v371_v49 = vpop.f32.mrf.mxu3 }
  0xbd   :  { %v372_v51 = vadd.f32 %v1108_v24, %v371_v49  ;;  %v514_v59 = vsel %vm486_vm2, %v458_v50, %v500_v55 }
  0xbe   :  { %v459_v52 = vpop.f32.mrf.mxu2  ;;  %v403_v63 = vpop.f32.mrf.mxu0 }
  0xbf   :  { %v416_v53 = vadd.f32 %v415_v46, %v372_v51  ;;  %v418_v54 = vpop.f32.mrf.mxu1  ;;  %v404_v23 = vadd.f32 %v403_v63, %v360_v18 }
  0xc1   :  { %v460_v56 = vadd.f32 %v459_v52, %v416_v53 }
  0xc3   :  { %vm487_vm3 = vcmp.gt.f32.partialorder %v460_v56, 0.0  ;;  %v501_v57 = vmul.f32 0.2, %v460_v56 }
  0xc4   :  { %v374_v58 = vpop.f32.mrf.mxu3 }
  0xc5   :  { %v515_v60 = vsel %vm487_vm3, %v460_v56, %v501_v57  ;;  %v375_v61 = vadd.f32 %v1108_v24, %v374_v58 }
  0xc6   :  { %v462_v62 = vpop.f32.mrf.mxu2  ;;  %v794_v0 = vpack.c.bf16 %v515_v60, %v514_v59  ;;  %v405_v9 = vpop.f32.mrf.mxu0 }
  0xc7   :  { %v420_v1 = vpop.f32.mrf.mxu1  ;;  %v419_v2 = vadd.f32 %v418_v54, %v375_v61  ;;  %v406_v32 = vadd.f32 %v405_v9, %v362_v25 }
  0xc8   :  { %817 = vst [vmem:[%s1148_s3 + $0x10] sm:$0xff] %v794_v0  }
  0xc9   :  { %v463_v4 = vadd.f32 %v462_v62, %v419_v2 }
  0xcb   :  { %v502_v10 = vmul.f32 0.2, %v463_v4  ;;  %vm488_vm4 = vcmp.gt.f32.partialorder %v463_v4, 0.0 }
  0xcc   :  { %v376_v3 = vpop.f32.mrf.mxu3 }
  0xcd   :  { %v377_v5 = vadd.f32 %v1108_v24, %v376_v3  ;;  %v516_v14 = vsel %vm488_vm4, %v463_v4, %v502_v10 }
  0xce   :  { %v464_v6 = vpop.f32.mrf.mxu2 }
  0xcf   :  { %v421_v7 = vadd.f32 %v420_v1, %v377_v5  ;;  %v423_v8 = vpop.f32.mrf.mxu1 }
  0xd1   :  { %v465_v11 = vadd.f32 %v464_v6, %v421_v7 }
  0xd3   :  { %vm489_vm5 = vcmp.gt.f32.partialorder %v465_v11, 0.0  ;;  %v503_v12 = vmul.f32 0.2, %v465_v11 }
  0xd4   :  { %v379_v13 = vpop.f32.mrf.mxu3 }
  0xd5   :  { %v517_v15 = vsel %vm489_vm5, %v465_v11, %v503_v12  ;;  %v380_v16 = vadd.f32 %v1108_v24, %v379_v13 }
  0xd6   :  { %v467_v17 = vpop.f32.mrf.mxu2  ;;  %v799_v19 = vpack.c.bf16 %v517_v15, %v516_v14 }
  0xd7   :  { %v425_v20 = vpop.f32.mrf.mxu1  ;;  %v424_v21 = vadd.f32 %v423_v8, %v380_v16 }
  0xd8   :  { %818 = vst [vmem:[%s1148_s3 + $0x18] sm:$0xff] %v799_v19  }
  0xd9   :  { %v468_v27 = vadd.f32 %v467_v17, %v424_v21 }
  0xdb   :  { %v504_v34 = vmul.f32 0.2, %v468_v27  ;;  %vm490_vm6 = vcmp.gt.f32.partialorder %v468_v27, 0.0 }
  0xdc   :  { %v381_v26 = vpop.f32.mrf.mxu3 }
  0xdd   :  { %v382_v28 = vadd.f32 %v1108_v24, %v381_v26  ;;  %v518_v42 = vsel %vm490_vm6, %v468_v27, %v504_v34 }
  0xde   :  { %v447_v22 = vpop.f32.mrf.mxu0  ;;  %v469_v29 = vpop.f32.mrf.mxu2 }
  0xdf   :  { %v448_v30 = vadd.f32 %v447_v22, %v404_v23  ;;  %v426_v31 = vadd.f32 %v425_v20, %v382_v28  ;;  %v428_v33 = vpop.f32.mrf.mxu1 }
  0xe1   :  { %v470_v35 = vadd.f32 %v469_v29, %v426_v31  ;;  %v496_v37 = vmul.f32 0.2, %v448_v30  ;;  %vm482_vm7 = vcmp.gt.f32.partialorder %v448_v30, 0.0 }
  0xe3   :  { %vm491_vm8 = vcmp.gt.f32.partialorder %v470_v35, 0.0  ;;  %v505_v39 = vmul.f32 0.2, %v470_v35  ;;  %v510_v46 = vsel %vm482_vm7, %v448_v30, %v496_v37 }
  0xe4   :  { %v384_v41 = vpop.f32.mrf.mxu3 }
  0xe5   :  { %v519_v43 = vsel %vm491_vm8, %v470_v35, %v505_v39  ;;  %v385_v44 = vadd.f32 %v1108_v24, %v384_v41 }
  0xe6   :  { %v449_v36 = vpop.f32.mrf.mxu0  ;;  %v472_v45 = vpop.f32.mrf.mxu2  ;;  %v804_v47 = vpack.c.bf16 %v519_v43, %v518_v42 }
  0xe7   :  { %v450_v38 = vadd.f32 %v449_v36, %v406_v32  ;;  %v429_v50 = vadd.f32 %v428_v33, %v385_v44  ;;  %v430_v51 = vpop.f32.mrf.mxu1 }
  0xe8   :  { %819 = vst [vmem:[%s1148_s3 + $0x20] sm:$0xff] %v804_v47  }
  0xe9   :  { %vm483_vm9 = vcmp.gt.f32.partialorder %v450_v38, 0.0  ;;  %v497_v40 = vmul.f32 0.2, %v450_v38  ;;  %v473_v53 = vadd.f32 %v472_v45, %v429_v50 }
  0xeb   :  { %v511_v48 = vsel %vm483_vm9, %v450_v38, %v497_v40  ;;  %v506_v57 = vmul.f32 0.2, %v473_v53  ;;  %vm492_vm10 = vcmp.gt.f32.partialorder %v473_v53, 0.0 }
  0xec   :  { %v784_v49 = vpack.c.bf16 %v511_v48, %v510_v46  ;;  %v386_v52 = vpop.f32.mrf.mxu3 }
  0xed   :  { %v387_v54 = vadd.f32 %v1108_v24, %v386_v52  ;;  %v520_v62 = vsel %vm492_vm10, %v473_v53, %v506_v57 }
  0xee   :  { %785 = vst [vmem:[%s1148_s3] sm:$0xff] %v784_v49   ;;  %v474_v55 = vpop.f32.mrf.mxu2 }
  0xef   :  { %v431_v56 = vadd.f32 %v430_v51, %v387_v54  ;;  %v433_v60 = vpop.f32.mrf.mxu1 }
  0xf1   :  { %v475_v58 = vadd.f32 %v474_v55, %v431_v56 }
  0xf3   :  { %vm493_vm11 = vcmp.gt.f32.partialorder %v475_v58, 0.0  ;;  %v507_v59 = vmul.f32 0.2, %v475_v58 }
  0xf4   :  { %v389_v61 = vpop.f32.mrf.mxu3 }
  0xf5   :  { %v521_v63 = vsel %vm493_vm11, %v475_v58, %v507_v59  ;;  %v390_v0 = vadd.f32 %v1108_v24, %v389_v61 }
  0xf6   :  { %v809_v1 = vpack.c.bf16 %v521_v63, %v520_v62  ;;  %v477_v2 = vpop.f32.mrf.mxu2 }
  0xf7   :  { %v434_v3 = vadd.f32 %v433_v60, %v390_v0  ;;  %v435_v7 = vpop.f32.mrf.mxu1 }
  0xf8   :  { %820 = vst [vmem:[%s1148_s3 + $0x28] sm:$0xff] %v809_v1  }
  0xf9   :  { %v478_v5 = vadd.f32 %v477_v2, %v434_v3 }
  0xfb   :  { %v508_v10 = vmul.f32 0.2, %v478_v5  ;;  %vm494_vm12 = vcmp.gt.f32.partialorder %v478_v5, 0.0 }
  0xfc   :  { %v391_v4 = vpop.f32.mrf.mxu3 }
  0xfd   :  { %v392_v6 = vadd.f32 %v1108_v24, %v391_v4  ;;  %v522_v13 = vsel %vm494_vm12, %v478_v5, %v508_v10 }
  0xfe   :  { %v479_v9 = vpop.f32.mrf.mxu2 }
  0xff   :  { %v436_v8 = vadd.f32 %v435_v7, %v392_v6 }
 0x101   :  { %v480_v11 = vadd.f32 %v479_v9, %v436_v8 }
 0x103   :  { %vm495_vm13 = vcmp.gt.f32.partialorder %v480_v11, 0.0  ;;  %v509_v12 = vmul.f32 0.2, %v480_v11 }
 0x105   :  { %v523_v14 = vsel %vm495_vm13, %v480_v11, %v509_v12 }
 0x106   :  { %v814_v15 = vpack.c.bf16 %v523_v14, %v522_v13 }
 0x108   :  { %821 = vst [vmem:[%s1148_s3 + $0x30] sm:$0xff] %v814_v15  }

// kernel: vae_forward.10
= control target key start
LH: loop header
LB: loop body
LE: loop exit
PB: predicated region body
PF: predicated region fallthrough
CT: control target
= control target key end

     0   :  { %s4311_s1 = inlined_call_operand.vmem [shape: bf16[1664,256], index: 1, kind: input, shape index: {}]   ;;  %s4312_s0 = inlined_call_operand.vmem [shape: bf16[16,1664], index: 0, kind: input, shape index: {}]   ;;  %s4313_s2 = inlined_call_operand.vmem [shape: f32[1,256], index: 2, kind: input, shape index: {}]   ;;  %s4314_s4 = inlined_call_operand.vmem [shape: f32[16,128], index: 4, kind: output, shape index: {0}]   ;;  %s4315_s5 = inlined_call_operand.vmem [shape: f32[16,128], index: 5, kind: output, shape index: {1}]   ;;  %s4316_s3 = inlined_call_operand.vmem [shape: f32[16,128], index: 3, kind: input, shape index: {}]   ;;  %s4317_s6 = inlined_call_operand.vmem [shape: bf16[16,128], index: 6, kind: output, shape index: {2}]  }
   0x1   :  { %v1858_v0 = vld [vmem:[%s4311_s1 + $0x70] sm:$0xf]  ;;  %v2660_v1 = vld [vmem:[%s4311_s1 + $0x74] sm:$0xf0]  ;;  %v1850_v11 = vld [vmem:[%s4311_s1 + $0x60] sm:$0xf] }
   0x2   :  { %v1922_v2 = vld [vmem:[%s4311_s1 + $0xf0] sm:$0xf]  ;;  %v1859_v3 = vor.u32 %v2660_v1, %v1858_v0  ;;  %v2676_v4 = vld [vmem:[%s4311_s1 + $0xf4] sm:$0xf0]  ;;  %v2658_v13 = vld [vmem:[%s4311_s1 + $0x64] sm:$0xf0] }
   0x3   :  { %v1986_v5 = vld [vmem:[%s4311_s1 + $0x170] sm:$0xf]  ;;  %v2692_v6 = vld [vmem:[%s4311_s1 + $0x174] sm:$0xf0]  ;;  %v1923_v7 = vor.u32 %v2676_v4, %v1922_v2  ;;  %v1914_v14 = vld [vmem:[%s4311_s1 + $0xe0] sm:$0xf]  ;;  %v1851_v16 = vor.u32 %v2658_v13, %v1850_v11 }
   0x4   :  { %v1987_v8 = vor.u32 %v2692_v6, %v1986_v5  ;;  %v2050_v9 = vld [vmem:[%s4311_s1 + $0x1f0] sm:$0xf]  ;;  %v2708_v10 = vld [vmem:[%s4311_s1 + $0x1f4] sm:$0xf0]  ;;  %1354 = vmatpush.bf16.msra.mxu0 %v1859_v3  ;;  %v2674_v15 = vld [vmem:[%s4311_s1 + $0xe4] sm:$0xf0] }
   0x5   :  { %v2051_v12 = vor.u32 %v2708_v10, %v2050_v9  ;;  %1368 = vmatpush.bf16.msra.mxu1 %v1923_v7  ;;  %v1915_v17 = vor.u32 %v2674_v15, %v1914_v14  ;;  %v1978_v18 = vld [vmem:[%s4311_s1 + $0x160] sm:$0xf]  ;;  %v2690_v19 = vld [vmem:[%s4311_s1 + $0x164] sm:$0xf0]  ;;  %v1842_v23 = vld [vmem:[%s4311_s1 + $0x50] sm:$0xf] }
   0x6   :  { %1382 = vmatpush.bf16.msra.mxu2 %v1987_v8  ;;  %v2042_v20 = vld [vmem:[%s4311_s1 + $0x1e0] sm:$0xf]  ;;  %v1979_v21 = vor.u32 %v2690_v19, %v1978_v18  ;;  %v2706_v22 = vld [vmem:[%s4311_s1 + $0x1e4] sm:$0xf0]  ;;  %v2656_v24 = vld [vmem:[%s4311_s1 + $0x54] sm:$0xf0] }
   0x7   :  { %1396 = vmatpush.bf16.msra.mxu3 %v2051_v12  ;;  %v2043_v25 = vor.u32 %v2706_v22, %v2042_v20  ;;  %v1906_v26 = vld [vmem:[%s4311_s1 + $0xd0] sm:$0xf]  ;;  %v2672_v27 = vld [vmem:[%s4311_s1 + $0xd4] sm:$0xf0]  ;;  %v1843_v29 = vor.u32 %v2656_v24, %v1842_v23  ;;  %v1834_v35 = vld [vmem:[%s4311_s1 + $0x40] sm:$0xf] }
   0x8   :  { %v1970_v28 = vld [vmem:[%s4311_s1 + $0x150] sm:$0xf]  ;;  %1355 = vmatpush.bf16.msra.mxu0 %v1851_v16  ;;  %v2688_v30 = vld [vmem:[%s4311_s1 + $0x154] sm:$0xf0]  ;;  %v1907_v33 = vor.u32 %v2672_v27, %v1906_v26  ;;  %v2654_v36 = vld [vmem:[%s4311_s1 + $0x44] sm:$0xf0] }
   0x9   :  { %v2034_v31 = vld [vmem:[%s4311_s1 + $0x1d0] sm:$0xf]  ;;  %v2704_v32 = vld [vmem:[%s4311_s1 + $0x1d4] sm:$0xf0]  ;;  %1369 = vmatpush.bf16.msra.mxu1 %v1915_v17  ;;  %v1971_v34 = vor.u32 %v2688_v30, %v1970_v28  ;;  %v1898_v37 = vld [vmem:[%s4311_s1 + $0xc0] sm:$0xf]  ;;  %v1835_v44 = vor.u32 %v2654_v36, %v1834_v35 }
   0xa   :  { %1383 = vmatpush.bf16.msra.mxu2 %v1979_v21  ;;  %v2035_v38 = vor.u32 %v2704_v32, %v2034_v31  ;;  %v2670_v39 = vld [vmem:[%s4311_s1 + $0xc4] sm:$0xf0]  ;;  %v1962_v40 = vld [vmem:[%s4311_s1 + $0x140] sm:$0xf]  ;;  %v1826_v47 = vld [vmem:[%s4311_s1 + $0x30] sm:$0xf] }
   0xb   :  { %1397 = vmatpush.bf16.msra.mxu3 %v2043_v25  ;;  %v2686_v41 = vld [vmem:[%s4311_s1 + $0x144] sm:$0xf0]  ;;  %v2026_v42 = vld [vmem:[%s4311_s1 + $0x1c0] sm:$0xf]  ;;  %v1899_v45 = vor.u32 %v2670_v39, %v1898_v37  ;;  %v2652_v48 = vld [vmem:[%s4311_s1 + $0x34] sm:$0xf0] }
   0xc   :  { %v2702_v43 = vld [vmem:[%s4311_s1 + $0x1c4] sm:$0xf0]  ;;  %1356 = vmatpush.bf16.msra.mxu0 %v1843_v29  ;;  %v1963_v46 = vor.u32 %v2686_v41, %v1962_v40  ;;  %v1890_v49 = vld [vmem:[%s4311_s1 + $0xb0] sm:$0xf]  ;;  %v2668_v51 = vld [vmem:[%s4311_s1 + $0xb4] sm:$0xf0]  ;;  %v1827_v56 = vor.u32 %v2652_v48, %v1826_v47 }
   0xd   :  { %1370 = vmatpush.bf16.msra.mxu1 %v1907_v33  ;;  %v2027_v50 = vor.u32 %v2702_v43, %v2026_v42  ;;  %v1954_v52 = vld [vmem:[%s4311_s1 + $0x130] sm:$0xf]  ;;  %v2684_v53 = vld [vmem:[%s4311_s1 + $0x134] sm:$0xf0]  ;;  %v1891_v57 = vor.u32 %v2668_v51, %v1890_v49  ;;  %v1818_v59 = vld [vmem:[%s4311_s1 + $0x20] sm:$0xf] }
   0xe   :  { %1384 = vmatpush.bf16.msra.mxu2 %v1971_v34  ;;  %v2018_v54 = vld [vmem:[%s4311_s1 + $0x1b0] sm:$0xf]  ;;  %v2700_v55 = vld [vmem:[%s4311_s1 + $0x1b4] sm:$0xf0]  ;;  %v1955_v58 = vor.u32 %v2684_v53, %v1954_v52  ;;  %v2650_v60 = vld [vmem:[%s4311_s1 + $0x24] sm:$0xf0] }
   0xf   :  { %1398 = vmatpush.bf16.msra.mxu3 %v2035_v38  ;;  %v1882_v61 = vld [vmem:[%s4311_s1 + $0xa0] sm:$0xf]  ;;  %v2019_v62 = vor.u32 %v2700_v55, %v2018_v54  ;;  %v2666_v63 = vld [vmem:[%s4311_s1 + $0xa4] sm:$0xf0]  ;;  %v1819_v4 = vor.u32 %v2650_v60, %v1818_v59  ;;  %v1810_v7 = vld [vmem:[%s4311_s1 + $0x10] sm:$0xf] }
  0x10   :  { %1357 = vmatpush.bf16.msra.mxu0 %v1835_v44  ;;  %v1946_v0 = vld [vmem:[%s4311_s1 + $0x120] sm:$0xf]  ;;  %v2682_v1 = vld [vmem:[%s4311_s1 + $0x124] sm:$0xf0]  ;;  %v1883_v5 = vor.u32 %v2666_v63, %v1882_v61  ;;  %v2648_v8 = vld [vmem:[%s4311_s1 + $0x14] sm:$0xf0] }
  0x11   :  { %1371 = vmatpush.bf16.msra.mxu1 %v1899_v45  ;;  %v2010_v2 = vld [vmem:[%s4311_s1 + $0x1a0] sm:$0xf]  ;;  %v2698_v3 = vld [vmem:[%s4311_s1 + $0x1a4] sm:$0xf0]  ;;  %v1947_v6 = vor.u32 %v2682_v1, %v1946_v0  ;;  %v1874_v9 = vld [vmem:[%s4311_s1 + $0x90] sm:$0xf]  ;;  %v1811_v16 = vor.u32 %v2648_v8, %v1810_v7 }
  0x12   :  { %1385 = vmatpush.bf16.msra.mxu2 %v1963_v46  ;;  %v2011_v10 = vor.u32 %v2698_v3, %v2010_v2  ;;  %v2664_v11 = vld [vmem:[%s4311_s1 + $0x94] sm:$0xf0]  ;;  %v1938_v12 = vld [vmem:[%s4311_s1 + $0x110] sm:$0xf]  ;;  %v1802_v17 = vld [vmem:[%s4311_s1] sm:$0xf] }
  0x13   :  { %1399 = vmatpush.bf16.msra.mxu3 %v2027_v50  ;;  %v2680_v13 = vld [vmem:[%s4311_s1 + $0x114] sm:$0xf0]  ;;  %v2002_v14 = vld [vmem:[%s4311_s1 + $0x190] sm:$0xf]  ;;  %v2646_v18 = vld [vmem:[%s4311_s1 + $0x4] sm:$0xf0]  ;;  %v1875_v19 = vor.u32 %v2664_v11, %v1874_v9 }
  0x14   :  { %1358 = vmatpush.bf16.msra.mxu0 %v1827_v56  ;;  %v2696_v15 = vld [vmem:[%s4311_s1 + $0x194] sm:$0xf0]  ;;  %v1939_v20 = vor.u32 %v2680_v13, %v1938_v12  ;;  %v1866_v21 = vld [vmem:[%s4311_s1 + $0x80] sm:$0xf]  ;;  %v2662_v22 = vld [vmem:[%s4311_s1 + $0x84] sm:$0xf0]  ;;  %v1803_v31 = vor.u32 %v2646_v18, %v1802_v17 }
  0x15   :  { %1372 = vmatpush.bf16.msra.mxu1 %v1891_v57  ;;  %v1930_v23 = vld [vmem:[%s4311_s1 + $0x100] sm:$0xf]  ;;  %v2003_v24 = vor.u32 %v2696_v15, %v2002_v14  ;;  %v2678_v25 = vld [vmem:[%s4311_s1 + $0x104] sm:$0xf0]  ;;  %v2114_v26 = vld [vmem:[%s4311_s1 + $0x270] sm:$0xf]  ;;  %v1867_v35 = vor.u32 %v2662_v22, %v1866_v21 }
  0x16   :  { %1386 = vmatpush.bf16.msra.mxu2 %v1955_v58  ;;  %v2724_v27 = vld [vmem:[%s4311_s1 + $0x274] sm:$0xf0]  ;;  %v2178_v28 = vld [vmem:[%s4311_s1 + $0x2f0] sm:$0xf]  ;;  %v1994_v33 = vld [vmem:[%s4311_s1 + $0x180] sm:$0xf]  ;;  %v1931_v36 = vor.u32 %v2678_v25, %v1930_v23 }
  0x17   :  { %1400 = vmatpush.bf16.msra.mxu3 %v2019_v62  ;;  %v2740_v29 = vld [vmem:[%s4311_s1 + $0x2f4] sm:$0xf0]  ;;  %v2242_v30 = vld [vmem:[%s4311_s1 + $0x370] sm:$0xf]  ;;  %v2694_v34 = vld [vmem:[%s4311_s1 + $0x184] sm:$0xf0]  ;;  %v2115_v39 = vor.u32 %v2724_v27, %v2114_v26 }
  0x18   :  { %1359 = vmatpush.bf16.msra.mxu0 %v1819_v4  ;;  %v2756_v32 = vld [vmem:[%s4311_s1 + $0x374] sm:$0xf0]  ;;  %v2306_v37 = vld [vmem:[%s4311_s1 + $0x3f0] sm:$0xf]  ;;  %v2179_v40 = vor.u32 %v2740_v29, %v2178_v28  ;;  %v2106_v41 = vld [vmem:[%s4311_s1 + $0x260] sm:$0xf]  ;;  %v1995_v44 = vor.u32 %v2694_v34, %v1994_v33 }
  0x19   :  { %1373 = vmatpush.bf16.msra.mxu1 %v1883_v5  ;;  %v2772_v38 = vld [vmem:[%s4311_s1 + $0x3f4] sm:$0xf0]  ;;  %v2722_v42 = vld [vmem:[%s4311_s1 + $0x264] sm:$0xf0]  ;;  %v2243_v43 = vor.u32 %v2756_v32, %v2242_v30  ;;  %v2170_v45 = vld [vmem:[%s4311_s1 + $0x2e0] sm:$0xf] }
  0x1a   :  { %1387 = vmatpush.bf16.msra.mxu2 %v1947_v6  ;;  %v2738_v46 = vld [vmem:[%s4311_s1 + $0x2e4] sm:$0xf0]  ;;  %v2234_v47 = vld [vmem:[%s4311_s1 + $0x360] sm:$0xf]  ;;  %v2307_v48 = vor.u32 %v2772_v38, %v2306_v37  ;;  %v2098_v52 = vld [vmem:[%s4311_s1 + $0x250] sm:$0xf]  ;;  %v2107_v56 = vor.u32 %v2722_v42, %v2106_v41 }
  0x1b   :  { %1401 = vmatpush.bf16.msra.mxu3 %v2011_v10  ;;  %v2754_v49 = vld [vmem:[%s4311_s1 + $0x364] sm:$0xf0]  ;;  %v2298_v50 = vld [vmem:[%s4311_s1 + $0x3e0] sm:$0xf]  ;;  %v2638_v54 = vld [vmem:[%s4312_s0 + $0x30] sm:$0xf0]  ;;  %v2171_v57 = vor.u32 %v2738_v46, %v2170_v45 }
  0x1c   :  { %1360 = vmatpush.bf16.msra.mxu0 %v1811_v16  ;;  %v2770_v51 = vld [vmem:[%s4311_s1 + $0x3e4] sm:$0xf0]  ;;  %v1750_v53 = vld [vmem:[%s4312_s0] sm:$0xf]  ;;  %v2720_v58 = vld [vmem:[%s4311_s1 + $0x254] sm:$0xf0]  ;;  %v2235_v62 = vor.u32 %v2754_v49, %v2234_v47 }
  0x1d   :  { %1374 = vmatpush.bf16.msra.mxu1 %v1875_v19  ;;  %v1758_v55 = vld [vmem:[%s4312_s0 + $0x8] sm:$0xf]  ;;  %v2162_v59 = vld [vmem:[%s4311_s1 + $0x2d0] sm:$0xf]  ;;  %v3155_v60 = vor.u32 %v2638_v54, %v1750_v53  ;;  %v2639_v61 = vld [vmem:[%s4312_s0 + $0x38] sm:$0xf0]  ;;  %v2299_v3 = vor.u32 %v2770_v51, %v2298_v50  ;;  %v2099_v11 = vor.u32 %v2720_v58, %v2098_v52 }
  0x1e   :  { %1388 = vmatpush.bf16.msra.mxu2 %v1939_v20  ;;  %v2736_v63 = vld [vmem:[%s4311_s1 + $0x2d4] sm:$0xf0]  ;;  %v2226_v0 = vld [vmem:[%s4311_s1 + $0x350] sm:$0xf]  ;;  %v3169_v2 = vor.u32 %v2639_v61, %v1758_v55  ;;  %v2632_v5 = vld [vmem:[%s4312_s0 + $0x4] sm:$0xf] }
  0x1f   :  { %1402 = vmatpush.bf16.msra.mxu3 %v2003_v24  ;;  %v2752_v1 = vld [vmem:[%s4311_s1 + $0x354] sm:$0xf0]  ;;  %v2290_v4 = vld [vmem:[%s4311_s1 + $0x3d0] sm:$0xf]  ;;  %v2633_v9 = vld [vmem:[%s4312_s0 + $0xc] sm:$0xf]  ;;  %v2163_v12 = vor.u32 %v2736_v63, %v2162_v59 }
  0x20   :  { %1361 = vmatpush.bf16.msra.mxu0 %v1803_v31  ;;  %v1752_v6 = vld [vmem:[%s4312_s0 + $0x34] sm:$0xf0]  ;;  %v1760_v10 = vld [vmem:[%s4312_s0 + $0x3c] sm:$0xf0]  ;;  %v2227_v15 = vor.u32 %v2752_v1, %v2226_v0  ;;  %v2718_v16 = vld [vmem:[%s4311_s1 + $0x244] sm:$0xf0] }
  0x21   :  { %1375 = vmatpush.bf16.msra.mxu1 %v1867_v35  ;;  %v2768_v7 = vld [vmem:[%s4311_s1 + $0x3d4] sm:$0xf0]  ;;  %v3185_v8 = vor.u32 %v2632_v5, %v1752_v6  ;;  %v2090_v13 = vld [vmem:[%s4311_s1 + $0x240] sm:$0xf]  ;;  %v3196_v14 = vor.u32 %v2633_v9, %v1760_v10  ;;  %v2734_v18 = vld [vmem:[%s4311_s1 + $0x2c4] sm:$0xf0] }
  0x22   :  { %1389 = vmatpush.bf16.msra.mxu2 %v1931_v36  ;;  %v2154_v17 = vld [vmem:[%s4311_s1 + $0x2c0] sm:$0xf]  ;;  %v2291_v19 = vor.u32 %v2768_v7, %v2290_v4  ;;  %v2750_v21 = vld [vmem:[%s4311_s1 + $0x344] sm:$0xf0]  ;;  %v2091_v24 = vor.u32 %v2718_v16, %v2090_v13  ;;  %v2082_v26 = vld [vmem:[%s4311_s1 + $0x230] sm:$0xf] }
  0x23   :  { %1403 = vmatpush.bf16.msra.mxu3 %v1995_v44  ;;  %1362 = vmatmul.bf16.vlgmr.msra.gmra.mxu0 %v3155_v60  ;;  %v2218_v20 = vld [vmem:[%s4311_s1 + $0x340] sm:$0xf]  ;;  %v2766_v23 = vld [vmem:[%s4311_s1 + $0x3c4] sm:$0xf0]  ;;  %v2155_v25 = vor.u32 %v2734_v18, %v2154_v17  ;;  %v2716_v28 = vld [vmem:[%s4311_s1 + $0x234] sm:$0xf0] }
  0x24   :  { %1410 = vmatpush.bf16.msrb.mxu0 %v2115_v39  ;;  %1376 = vmatmul.bf16.vlgmr.msra.gmra.mxu1 %v3185_v8  ;;  %v2282_v22 = vld [vmem:[%s4311_s1 + $0x3c0] sm:$0xf]  ;;  %v2219_v27 = vor.u32 %v2750_v21, %v2218_v20  ;;  %v2146_v29 = vld [vmem:[%s4311_s1 + $0x2b0] sm:$0xf]  ;;  %v2732_v30 = vld [vmem:[%s4311_s1 + $0x2b4] sm:$0xf0]  ;;  %v2083_v36 = vor.u32 %v2716_v28, %v2082_v26 }
  0x25   :  { %1424 = vmatpush.bf16.msrb.mxu1 %v2179_v40  ;;  %1390 = vmatmul.bf16.vlgmr.msra.gmra.mxu2 %v3169_v2  ;;  %v2283_v31 = vor.u32 %v2766_v23, %v2282_v22  ;;  %v2210_v32 = vld [vmem:[%s4311_s1 + $0x330] sm:$0xf]  ;;  %v2748_v33 = vld [vmem:[%s4311_s1 + $0x334] sm:$0xf0]  ;;  %v2147_v37 = vor.u32 %v2732_v30, %v2146_v29  ;;  %v2074_v38 = vld [vmem:[%s4311_s1 + $0x220] sm:$0xf] }
  0x26   :  { %1438 = vmatpush.bf16.msrb.mxu2 %v2243_v43  ;;  %1404 = vmatmul.bf16.vlgmr.msra.gmra.mxu3 %v3196_v14  ;;  %v2274_v34 = vld [vmem:[%s4311_s1 + $0x3b0] sm:$0xf]  ;;  %v2764_v35 = vld [vmem:[%s4311_s1 + $0x3b4] sm:$0xf0]  ;;  %v2211_v39 = vor.u32 %v2748_v33, %v2210_v32  ;;  %v2714_v40 = vld [vmem:[%s4311_s1 + $0x224] sm:$0xf0] }
  0x27   :  { %1452 = vmatpush.bf16.msrb.mxu3 %v2307_v48  ;;  %v2138_v41 = vld [vmem:[%s4311_s1 + $0x2a0] sm:$0xf]  ;;  %v2730_v42 = vld [vmem:[%s4311_s1 + $0x2a4] sm:$0xf0]  ;;  %v2275_v43 = vor.u32 %v2764_v35, %v2274_v34  ;;  %v2075_v48 = vor.u32 %v2714_v40, %v2074_v38  ;;  %v2066_v50 = vld [vmem:[%s4311_s1 + $0x210] sm:$0xf] }
  0x28   :  { %1411 = vmatpush.bf16.msrb.mxu0 %v2107_v56  ;;  %v2202_v44 = vld [vmem:[%s4311_s1 + $0x320] sm:$0xf]  ;;  %v2746_v45 = vld [vmem:[%s4311_s1 + $0x324] sm:$0xf0]  ;;  %v2139_v49 = vor.u32 %v2730_v42, %v2138_v41  ;;  %v2712_v51 = vld [vmem:[%s4311_s1 + $0x214] sm:$0xf0] }
  0x29   :  { %1425 = vmatpush.bf16.msrb.mxu1 %v2171_v57  ;;  %v2266_v46 = vld [vmem:[%s4311_s1 + $0x3a0] sm:$0xf]  ;;  %v2762_v47 = vld [vmem:[%s4311_s1 + $0x3a4] sm:$0xf0]  ;;  %v2203_v52 = vor.u32 %v2746_v45, %v2202_v44  ;;  %v2130_v53 = vld [vmem:[%s4311_s1 + $0x290] sm:$0xf]  ;;  %v2067_v1 = vor.u32 %v2712_v51, %v2066_v50 }
  0x2a   :  { %1439 = vmatpush.bf16.msrb.mxu2 %v2235_v62  ;;  %v2728_v54 = vld [vmem:[%s4311_s1 + $0x294] sm:$0xf0]  ;;  %v2194_v55 = vld [vmem:[%s4311_s1 + $0x310] sm:$0xf]  ;;  %v2267_v56 = vor.u32 %v2762_v47, %v2266_v46  ;;  %v2058_v61 = vld [vmem:[%s4311_s1 + $0x200] sm:$0xf] }
  0x2b   :  { %1453 = vmatpush.bf16.msrb.mxu3 %v2299_v3  ;;  %v2744_v57 = vld [vmem:[%s4311_s1 + $0x314] sm:$0xf0]  ;;  %v2258_v58 = vld [vmem:[%s4311_s1 + $0x390] sm:$0xf]  ;;  %v2710_v62 = vld [vmem:[%s4311_s1 + $0x204] sm:$0xf0]  ;;  %v2131_v3 = vor.u32 %v2728_v54, %v2130_v53 }
  0x2c   :  { %1412 = vmatpush.bf16.msrb.mxu0 %v2099_v11  ;;  %v2760_v59 = vld [vmem:[%s4311_s1 + $0x394] sm:$0xf0]  ;;  %v2122_v63 = vld [vmem:[%s4311_s1 + $0x280] sm:$0xf]  ;;  %v2726_v0 = vld [vmem:[%s4311_s1 + $0x284] sm:$0xf0]  ;;  %v2195_v7 = vor.u32 %v2744_v57, %v2194_v55  ;;  %v2059_v20 = vor.u32 %v2710_v62, %v2058_v61 }
  0x2d   :  { %1426 = vmatpush.bf16.msrb.mxu1 %v2163_v12  ;;  %v2186_v4 = vld [vmem:[%s4311_s1 + $0x300] sm:$0xf]  ;;  %v2742_v5 = vld [vmem:[%s4311_s1 + $0x304] sm:$0xf0]  ;;  %v2370_v6 = vld [vmem:[%s4311_s1 + $0x470] sm:$0xf]  ;;  %v2259_v12 = vor.u32 %v2760_v59, %v2258_v58  ;;  %v2123_v21 = vor.u32 %v2726_v0, %v2122_v63 }
  0x2e   :  { %1440 = vmatpush.bf16.msrb.mxu2 %v2227_v15  ;;  %v2788_v9 = vld [vmem:[%s4311_s1 + $0x474] sm:$0xf0]  ;;  %v2434_v10 = vld [vmem:[%s4311_s1 + $0x4f0] sm:$0xf]  ;;  %v2250_v16 = vld [vmem:[%s4311_s1 + $0x380] sm:$0xf] }
  0x2f   :  { %1454 = vmatpush.bf16.msrb.mxu3 %v2291_v19  ;;  %v2804_v11 = vld [vmem:[%s4311_s1 + $0x4f4] sm:$0xf0]  ;;  %v2498_v13 = vld [vmem:[%s4311_s1 + $0x570] sm:$0xf]  ;;  %v2758_v17 = vld [vmem:[%s4311_s1 + $0x384] sm:$0xf0]  ;;  %v2371_v26 = vor.u32 %v2788_v9, %v2370_v6 }
  0x30   :  { %1413 = vmatpush.bf16.msrb.mxu0 %v2091_v24  ;;  %v2820_v15 = vld [vmem:[%s4311_s1 + $0x574] sm:$0xf0]  ;;  %v1766_v18 = vld [vmem:[%s4312_s0 + $0x10] sm:$0xf]  ;;  %v2640_v19 = vld [vmem:[%s4312_s0 + $0x40] sm:$0xf0]  ;;  %v2435_v30 = vor.u32 %v2804_v11, %v2434_v10  ;;  %v2251_v35 = vor.u32 %v2758_v17, %v2250_v16 }
  0x31   :  { %1427 = vmatpush.bf16.msrb.mxu1 %v2155_v25  ;;  %v1774_v22 = vld [vmem:[%s4312_s0 + $0x18] sm:$0xf]  ;;  %v2641_v23 = vld [vmem:[%s4312_s0 + $0x48] sm:$0xf0]  ;;  %v2562_v24 = vld [vmem:[%s4311_s1 + $0x5f0] sm:$0xf]  ;;  %v2187_v25 = vor.u32 %v2742_v5, %v2186_v4 }
  0x32   :  { %1441 = vmatpush.bf16.msrb.mxu2 %v2219_v27  ;;  %v2836_v27 = vld [vmem:[%s4311_s1 + $0x5f4] sm:$0xf0]  ;;  %v2634_v28 = vld [vmem:[%s4312_s0 + $0x14] sm:$0xf]  ;;  %v1768_v29 = vld [vmem:[%s4312_s0 + $0x44] sm:$0xf0]  ;;  %v3379_v40 = vor.u32 %v2641_v23, %v1774_v22 }
  0x33   :  { %1455 = vmatpush.bf16.msrb.mxu3 %v2283_v31  ;;  %v2499_v31 = vor.u32 %v2820_v15, %v2498_v13  ;;  %v2635_v32 = vld [vmem:[%s4312_s0 + $0x1c] sm:$0xf]  ;;  %v2362_v33 = vld [vmem:[%s4311_s1 + $0x460] sm:$0xf]  ;;  %v2786_v34 = vld [vmem:[%s4311_s1 + $0x464] sm:$0xf0]  ;;  %v2563_v41 = vor.u32 %v2836_v27, %v2562_v24  ;;  %v3387_v44 = vor.u32 %v2634_v28, %v1768_v29 }
  0x34   :  { %1414 = vmatpush.bf16.msrb.mxu0 %v2083_v36  ;;  %v3368_v36 = vor.u32 %v2640_v19, %v1766_v18  ;;  %v2426_v38 = vld [vmem:[%s4311_s1 + $0x4e0] sm:$0xf]  ;;  %v2363_v45 = vor.u32 %v2786_v34, %v2362_v33  ;;  %v2834_v47 = vld [vmem:[%s4311_s1 + $0x5e4] sm:$0xf0]  ;;  %v2354_v50 = vld [vmem:[%s4311_s1 + $0x450] sm:$0xf] }
  0x35   :  { %1428 = vmatpush.bf16.msrb.mxu1 %v2147_v37  ;;  %v1776_v37 = vld [vmem:[%s4312_s0 + $0x4c] sm:$0xf0]  ;;  %v2490_v42 = vld [vmem:[%s4311_s1 + $0x560] sm:$0xf]  ;;  %v2784_v51 = vld [vmem:[%s4311_s1 + $0x454] sm:$0xf0] }
  0x36   :  { %1442 = vmatpush.bf16.msrb.mxu2 %v2211_v39  ;;  %v2802_v39 = vld [vmem:[%s4311_s1 + $0x4e4] sm:$0xf0]  ;;  %v2554_v46 = vld [vmem:[%s4311_s1 + $0x5e0] sm:$0xf]  ;;  %v2418_v53 = vld [vmem:[%s4311_s1 + $0x4d0] sm:$0xf]  ;;  %v2355_v58 = vor.u32 %v2784_v51, %v2354_v50 }
  0x37   :  { %1456 = vmatpush.bf16.msrb.mxu3 %v2275_v43  ;;  %v2818_v43 = vld [vmem:[%s4311_s1 + $0x564] sm:$0xf0]  ;;  %v2800_v54 = vld [vmem:[%s4311_s1 + $0x4d4] sm:$0xf0]  ;;  %v2555_v55 = vor.u32 %v2834_v47, %v2554_v46  ;;  %v2546_v59 = vld [vmem:[%s4311_s1 + $0x5d0] sm:$0xf] }
  0x38   :  { %1415 = vmatpush.bf16.msrb.mxu0 %v2075_v48  ;;  %v3395_v48 = vor.u32 %v2635_v32, %v1776_v37  ;;  %v2816_v57 = vld [vmem:[%s4311_s1 + $0x554] sm:$0xf0]  ;;  %v2419_v62 = vor.u32 %v2800_v54, %v2418_v53  ;;  %v2346_v63 = vld [vmem:[%s4311_s1 + $0x440] sm:$0xf]  ;;  %v2782_v0 = vld [vmem:[%s4311_s1 + $0x444] sm:$0xf0] }
  0x39   :  { %1429 = vmatpush.bf16.msrb.mxu1 %v2139_v49  ;;  %v2427_v49 = vor.u32 %v2802_v39, %v2426_v38  ;;  %v2832_v61 = vld [vmem:[%s4311_s1 + $0x5d4] sm:$0xf0]  ;;  %v2798_v4 = vld [vmem:[%s4311_s1 + $0x4c4] sm:$0xf0]  ;;  %v2474_v6 = vld [vmem:[%s4311_s1 + $0x540] sm:$0xf]  ;;  %v2347_v9 = vor.u32 %v2782_v0, %v2346_v63 }
  0x3a   :  { %1443 = vmatpush.bf16.msrb.mxu2 %v2203_v52  ;;  %v2491_v52 = vor.u32 %v2818_v43, %v2490_v42  ;;  %v2547_v5 = vor.u32 %v2832_v61, %v2546_v59  ;;  %v2538_v10 = vld [vmem:[%s4311_s1 + $0x5c0] sm:$0xf]  ;;  %v2830_v11 = vld [vmem:[%s4311_s1 + $0x5c4] sm:$0xf0]  ;;  %v2338_v13 = vld [vmem:[%s4311_s1 + $0x430] sm:$0xf] }
  0x3b   :  { %1457 = vmatpush.bf16.msrb.mxu3 %v2267_v56  ;;  %v2482_v56 = vld [vmem:[%s4311_s1 + $0x550] sm:$0xf]  ;;  %v2780_v15 = vld [vmem:[%s4311_s1 + $0x434] sm:$0xf0]  ;;  %v2539_v19 = vor.u32 %v2830_v11, %v2538_v10  ;;  %v2778_v27 = vld [vmem:[%s4311_s1 + $0x424] sm:$0xf0] }
  0x3c   :  { %1416 = vmatpush.bf16.msrb.mxu0 %v2067_v1  ;;  %v2483_v1 = vor.u32 %v2816_v57, %v2482_v56  ;;  %v2402_v17 = vld [vmem:[%s4311_s1 + $0x4b0] sm:$0xf]  ;;  %v2796_v18 = vld [vmem:[%s4311_s1 + $0x4b4] sm:$0xf0]  ;;  %v2339_v22 = vor.u32 %v2780_v15, %v2338_v13  ;;  %v2394_v29 = vld [vmem:[%s4311_s1 + $0x4a0] sm:$0xf] }
  0x3d   :  { %1430 = vmatpush.bf16.msrb.mxu1 %v2131_v3  ;;  %v2410_v3 = vld [vmem:[%s4311_s1 + $0x4c0] sm:$0xf]  ;;  %v2530_v23 = vld [vmem:[%s4311_s1 + $0x5b0] sm:$0xf]  ;;  %v2828_v24 = vld [vmem:[%s4311_s1 + $0x5b4] sm:$0xf0] }
  0x3e   :  { %1444 = vmatpush.bf16.msrb.mxu2 %v2195_v7  ;;  %v2814_v7 = vld [vmem:[%s4311_s1 + $0x544] sm:$0xf0]  ;;  %v2458_v32 = vld [vmem:[%s4311_s1 + $0x520] sm:$0xf]  ;;  %v2322_v39 = vld [vmem:[%s4311_s1 + $0x410] sm:$0xf] }
  0x3f   :  { %1458 = vmatpush.bf16.msrb.mxu3 %v2259_v12  ;;  %v2411_v12 = vor.u32 %v2798_v4, %v2410_v3  ;;  %v2475_v16 = vor.u32 %v2814_v7, %v2474_v6  ;;  %v2810_v33 = vld [vmem:[%s4311_s1 + $0x524] sm:$0xf0]  ;;  %v2386_v42 = vld [vmem:[%s4311_s1 + $0x490] sm:$0xf]  ;;  %v2808_v47 = vld [vmem:[%s4311_s1 + $0x514] sm:$0xf0] }
  0x40   :  { %1417 = vmatpush.bf16.msrb.mxu0 %v2059_v20  ;;  %v2466_v20 = vld [vmem:[%s4311_s1 + $0x530] sm:$0xf]  ;;  %v2826_v37 = vld [vmem:[%s4311_s1 + $0x5a4] sm:$0xf0]  ;;  %v2459_v43 = vor.u32 %v2810_v33, %v2458_v32  ;;  %v2824_v51 = vld [vmem:[%s4311_s1 + $0x594] sm:$0xf0] }
  0x41   :  { %1431 = vmatpush.bf16.msrb.mxu1 %v2123_v21  ;;  %v2812_v21 = vld [vmem:[%s4311_s1 + $0x534] sm:$0xf0]  ;;  %v2450_v46 = vld [vmem:[%s4311_s1 + $0x510] sm:$0xf]  ;;  %v2774_v54 = vld [vmem:[%s4311_s1 + $0x404] sm:$0xf0] }
  0x42   :  { %1445 = vmatpush.bf16.msrb.mxu2 %v2187_v25  ;;  %v2403_v25 = vor.u32 %v2796_v18, %v2402_v17  ;;  %v2467_v28 = vor.u32 %v2812_v21, %v2466_v20  ;;  %v2514_v50 = vld [vmem:[%s4311_s1 + $0x590] sm:$0xf]  ;;  %v2790_v56 = vld [vmem:[%s4311_s1 + $0x484] sm:$0xf0]  ;;  %v2659_v63 = vld [vmem:[%s4311_s1 + $0x74] sm:$0xf]  ;;  %v2451_v0 = vor.u32 %v2808_v47, %v2450_v46 }
  0x43   :  { %1459 = vmatpush.bf16.msrb.mxu3 %v2251_v35  ;;  %1418 = vmatmul.bf16.vlgmr.msrb.gmra.mxu0 %v3368_v36  ;;  %v2522_v35 = vld [vmem:[%s4311_s1 + $0x5a0] sm:$0xf]  ;;  %v2806_v59 = vld [vmem:[%s4311_s1 + $0x504] sm:$0xf0]  ;;  %v2626_v61 = vld [vmem:[%s4311_s1 + $0x670] sm:$0xf] }
  0x44   :  { %1466 = vmatpush.bf16.msra.mxu0 %v2371_v26  ;;  %1432 = vmatmul.bf16.vlgmr.msrb.gmra.mxu1 %v3387_v44  ;;  %v2330_v26 = vld [vmem:[%s4311_s1 + $0x420] sm:$0xf]  ;;  %v2675_v3 = vld [vmem:[%s4311_s1 + $0xf4] sm:$0xf]  ;;  %v1924_v4 = vld [vmem:[%s4311_s1 + $0xf8] sm:$0xf0] }
  0x45   :  { %1480 = vmatpush.bf16.msra.mxu1 %v2435_v30  ;;  %1446 = vmatmul.bf16.vlgmr.msrb.gmra.mxu2 %v3379_v40  ;;  %v2794_v30 = vld [vmem:[%s4311_s1 + $0x4a4] sm:$0xf0]  ;;  %v2331_v34 = vor.u32 %v2778_v27, %v2330_v26  ;;  %v2506_v6 = vld [vmem:[%s4311_s1 + $0x580] sm:$0xf]  ;;  %v2642_v11 = vld [vmem:[%s4312_s0 + $0x50] sm:$0xf0] }
  0x46   :  { %1494 = vmatpush.bf16.msra.mxu2 %v2499_v31  ;;  %1460 = vmatmul.bf16.vlgmr.msrb.gmra.mxu3 %v3395_v48  ;;  %v2531_v31 = vor.u32 %v2828_v24, %v2530_v23  ;;  %v2395_v38 = vor.u32 %v2794_v30, %v2394_v29  ;;  %v2822_v7 = vld [vmem:[%s4311_s1 + $0x584] sm:$0xf0]  ;;  %v2643_v13 = vld [vmem:[%s4312_s0 + $0x58] sm:$0xf0]  ;;  %v2691_v17 = vld [vmem:[%s4311_s1 + $0x174] sm:$0xf] }
  0x47   :  { %1508 = vmatpush.bf16.msra.mxu3 %v2563_v41  ;;  %v2776_v41 = vld [vmem:[%s4311_s1 + $0x414] sm:$0xf0]  ;;  %v1988_v18 = vld [vmem:[%s4311_s1 + $0x178] sm:$0xf0]  ;;  %v2637_v23 = vld [vmem:[%s4312_s0 + $0x2c] sm:$0xf]  ;;  %v2507_v26 = vor.u32 %v2822_v7, %v2506_v6 }
  0x48   :  { %1467 = vmatpush.bf16.msra.mxu0 %v2363_v45  ;;  %v2792_v45 = vld [vmem:[%s4311_s1 + $0x494] sm:$0xf0]  ;;  %v2323_v53 = vor.u32 %v2776_v41, %v2322_v39  ;;  %v1792_v24 = vld [vmem:[%s4312_s0 + $0x5c] sm:$0xf0]  ;;  %v2657_v29 = vld [vmem:[%s4311_s1 + $0x64] sm:$0xf] }
  0x49   :  { %1481 = vmatpush.bf16.msra.mxu1 %v2427_v49  ;;  %v2523_v49 = vor.u32 %v2826_v37, %v2522_v35  ;;  %v2387_v57 = vor.u32 %v2792_v45, %v2386_v42  ;;  %v2618_v27 = vld [vmem:[%s4311_s1 + $0x660] sm:$0xf]  ;;  %v1852_v32 = vld [vmem:[%s4311_s1 + $0x68] sm:$0xf0]  ;;  %v2673_v33 = vld [vmem:[%s4311_s1 + $0xe4] sm:$0xf]  ;;  %v3623_v41 = vor.u32 %v2637_v23, %v1792_v24 }
  0x4a   :  { %1495 = vmatpush.bf16.msra.mxu2 %v2491_v52  ;;  %v2314_v52 = vld [vmem:[%s4311_s1 + $0x400] sm:$0xf]  ;;  %v1980_v39 = vld [vmem:[%s4311_s1 + $0x168] sm:$0xf0]  ;;  %v2610_v46 = vld [vmem:[%s4311_s1 + $0x650] sm:$0xf] }
  0x4b   :  { %1509 = vmatpush.bf16.msra.mxu3 %v2555_v55  ;;  %v2378_v55 = vld [vmem:[%s4311_s1 + $0x480] sm:$0xf]  ;;  %v2315_v10 = vor.u32 %v2774_v54, %v2314_v52  ;;  %v2848_v47 = vld [vmem:[%s4311_s1 + $0x654] sm:$0xf0]  ;;  %v2671_v52 = vld [vmem:[%s4311_s1 + $0xd4] sm:$0xf] }
  0x4c   :  { %1468 = vmatpush.bf16.msra.mxu0 %v2355_v58  ;;  %v2442_v58 = vld [vmem:[%s4311_s1 + $0x500] sm:$0xf]  ;;  %v2379_v15 = vor.u32 %v2790_v56, %v2378_v55  ;;  %v2687_v54 = vld [vmem:[%s4311_s1 + $0x154] sm:$0xf]  ;;  %v1972_v55 = vld [vmem:[%s4311_s1 + $0x158] sm:$0xf0]  ;;  %v2611_v56 = vor.u32 %v2848_v47, %v2610_v46 }
  0x4d   :  { %1482 = vmatpush.bf16.msra.mxu1 %v2419_v62  ;;  %v2852_v62 = vld [vmem:[%s4311_s1 + $0x674] sm:$0xf0]  ;;  %v2443_v20 = vor.u32 %v2806_v59, %v2442_v58  ;;  %v2602_v59 = vld [vmem:[%s4311_s1 + $0x640] sm:$0xf]  ;;  %v2842_v24 = vld [vmem:[%s4311_s1 + $0x624] sm:$0xf0] }
  0x4e   :  { %1496 = vmatpush.bf16.msra.mxu2 %v2483_v1  ;;  %v1860_v1 = vld [vmem:[%s4311_s1 + $0x78] sm:$0xf0]  ;;  %v2586_v23 = vld [vmem:[%s4311_s1 + $0x620] sm:$0xf]  ;;  %v2663_v47 = vld [vmem:[%s4311_s1 + $0x94] sm:$0xf] }
  0x4f   :  { %1510 = vmatpush.bf16.msra.mxu3 %v2547_v5  ;;  %v2515_v5 = vor.u32 %v2824_v51, %v2514_v50  ;;  %v1863_v21 = vor.u32 %v2659_v63, %v1860_v1  ;;  %v1844_v51 = vld [vmem:[%s4311_s1 + $0x58] sm:$0xf0]  ;;  %v1975_v63 = vor.u32 %v2687_v54, %v1972_v55  ;;  %v2669_v1 = vld [vmem:[%s4311_s1 + $0xc4] sm:$0xf]  ;;  %v2838_v54 = vld [vmem:[%s4311_s1 + $0x604] sm:$0xf0] }
  0x50   :  { %1469 = vmatpush.bf16.msra.mxu0 %v2347_v9  ;;  %v1782_v9 = vld [vmem:[%s4312_s0 + $0x20] sm:$0xf]  ;;  %v1812_v46 = vld [vmem:[%s4311_s1 + $0x18] sm:$0xf0]  ;;  %v2645_v55 = vld [vmem:[%s4311_s1 + $0x4] sm:$0xf] }
  0x51   :  { %1483 = vmatpush.bf16.msra.mxu1 %v2411_v12  ;;  %v1790_v12 = vld [vmem:[%s4312_s0 + $0x28] sm:$0xf]  ;;  %v3602_v30 = vor.u32 %v2642_v11, %v1782_v9  ;;  %v2844_v11 = vld [vmem:[%s4311_s1 + $0x634] sm:$0xf0] }
  0x52   :  { %1497 = vmatpush.bf16.msra.mxu2 %v2475_v16  ;;  %v2627_v16 = vor.u32 %v2852_v62, %v2626_v61  ;;  %v3613_v35 = vor.u32 %v2643_v13, %v1790_v12  ;;  %v2846_v61 = vld [vmem:[%s4311_s1 + $0x644] sm:$0xf0]  ;;  %v2653_v62 = vld [vmem:[%s4311_s1 + $0x44] sm:$0xf]  ;;  %v2651_v12 = vld [vmem:[%s4311_s1 + $0x34] sm:$0xf] }
  0x53   :  { %1511 = vmatpush.bf16.msra.mxu3 %v2539_v19  ;;  %v2636_v19 = vld [vmem:[%s4312_s0 + $0x24] sm:$0xf]  ;;  %v2603_v6 = vor.u32 %v2846_v61, %v2602_v59  ;;  %v1868_v61 = vld [vmem:[%s4311_s1 + $0x88] sm:$0xf0] }
  0x54   :  { %1470 = vmatpush.bf16.msra.mxu0 %v2339_v22  ;;  %v1784_v22 = vld [vmem:[%s4312_s0 + $0x54] sm:$0xf0]  ;;  %v2661_v59 = vld [vmem:[%s4311_s1 + $0x84] sm:$0xf] }
  0x55   :  { %1484 = vmatpush.bf16.msra.mxu1 %v2403_v25  ;;  %v1927_v25 = vor.u32 %v2675_v3, %v1924_v4  ;;  %v3615_v37 = vor.u32 %v2636_v19, %v1784_v22  ;;  %v1900_v3 = vld [vmem:[%s4311_s1 + $0xc8] sm:$0xf0]  ;;  %v2685_v4 = vld [vmem:[%s4311_s1 + $0x144] sm:$0xf]  ;;  %v1956_v19 = vld [vmem:[%s4311_s1 + $0x138] sm:$0xf0] }
  0x56   :  { %1498 = vmatpush.bf16.msra.mxu2 %v2467_v28  ;;  %v2850_v28 = vld [vmem:[%s4311_s1 + $0x664] sm:$0xf0]  ;;  %v1903_v9 = vor.u32 %v2669_v1, %v1900_v3  ;;  %v2723_v1 = vld [vmem:[%s4311_s1 + $0x274] sm:$0xf]  ;;  %v2116_v3 = vld [vmem:[%s4311_s1 + $0x278] sm:$0xf0] }
  0x57   :  { %1512 = vmatpush.bf16.msra.mxu3 %v2531_v31  ;;  %v1991_v31 = vor.u32 %v2691_v17, %v1988_v18  ;;  %v2619_v42 = vor.u32 %v2850_v28, %v2618_v27  ;;  %v1892_v17 = vld [vmem:[%s4311_s1 + $0xb8] sm:$0xf0]  ;;  %v2683_v18 = vld [vmem:[%s4311_s1 + $0x134] sm:$0xf]  ;;  %v1820_v27 = vld [vmem:[%s4311_s1 + $0x28] sm:$0xf0] }
  0x58   :  { %1471 = vmatpush.bf16.msra.mxu0 %v2331_v34  ;;  %v1916_v34 = vld [vmem:[%s4311_s1 + $0xe8] sm:$0xf0]  ;;  %v2665_v28 = vld [vmem:[%s4311_s1 + $0xa4] sm:$0xf] }
  0x59   :  { %1485 = vmatpush.bf16.msra.mxu1 %v2395_v38  ;;  %v2689_v38 = vld [vmem:[%s4311_s1 + $0x164] sm:$0xf]  ;;  %v1919_v45 = vor.u32 %v2673_v33, %v1916_v34  ;;  %v2587_v33 = vor.u32 %v2842_v24, %v2586_v23  ;;  %v2108_v24 = vld [vmem:[%s4311_s1 + $0x268] sm:$0xf0] }
  0x5a   :  { %1499 = vmatpush.bf16.msra.mxu2 %v2459_v43  ;;  %v1855_v43 = vor.u32 %v2657_v29, %v1852_v32  ;;  %v1983_v50 = vor.u32 %v2689_v38, %v1980_v39  ;;  %v1884_v29 = vld [vmem:[%s4311_s1 + $0xa8] sm:$0xf0]  ;;  %v2578_v39 = vld [vmem:[%s4311_s1 + $0x610] sm:$0xf]  ;;  %v2721_v23 = vld [vmem:[%s4311_s1 + $0x264] sm:$0xf] }
  0x5b   :  { %1513 = vmatpush.bf16.msra.mxu3 %v2523_v49  ;;  %v2655_v49 = vld [vmem:[%s4311_s1 + $0x54] sm:$0xf]  ;;  %v1948_v32 = vld [vmem:[%s4311_s1 + $0x128] sm:$0xf0]  ;;  %v1887_v38 = vor.u32 %v2665_v28, %v1884_v29  ;;  %v2753_v29 = vld [vmem:[%s4311_s1 + $0x364] sm:$0xf] }
  0x5c   :  { %1472 = vmatpush.bf16.msra.mxu0 %v2323_v53  ;;  %v1908_v53 = vld [vmem:[%s4311_s1 + $0xd8] sm:$0xf0]  ;;  %v2172_v28 = vld [vmem:[%s4311_s1 + $0x2e8] sm:$0xf0] }
  0x5d   :  { %1486 = vmatpush.bf16.msra.mxu1 %v2387_v57  ;;  %v1847_v57 = vor.u32 %v2655_v49, %v1844_v51  ;;  %v1911_v58 = vor.u32 %v2671_v52, %v1908_v53  ;;  %v1876_v49 = vld [vmem:[%s4311_s1 + $0x98] sm:$0xf0]  ;;  %v2570_v53 = vld [vmem:[%s4311_s1 + $0x600] sm:$0xf] }
  0x5e   :  { %1500 = vmatpush.bf16.msra.mxu2 %v2451_v0  ;;  %v1836_v0 = vld [vmem:[%s4311_s1 + $0x48] sm:$0xf0]  ;;  %v1940_v51 = vld [vmem:[%s4311_s1 + $0x118] sm:$0xf0] }
  0x5f   :  { %1514 = vmatpush.bf16.msra.mxu3 %v2515_v5  ;;  %v1964_v5 = vld [vmem:[%s4311_s1 + $0x148] sm:$0xf0]  ;;  %v1839_v7 = vor.u32 %v2653_v62, %v1836_v0  ;;  %v2052_v0 = vld [vmem:[%s4311_s1 + $0x1f8] sm:$0xf0] }
  0x60   :  { %1473 = vmatpush.bf16.msra.mxu0 %v2315_v10  ;;  %v2594_v10 = vld [vmem:[%s4311_s1 + $0x630] sm:$0xf]  ;;  %v1967_v13 = vor.u32 %v2685_v4, %v1964_v5  ;;  %v2739_v4 = vld [vmem:[%s4311_s1 + $0x2f4] sm:$0xf]  ;;  %v2180_v5 = vld [vmem:[%s4311_s1 + $0x2f8] sm:$0xf0] }
  0x61   :  { %1487 = vmatpush.bf16.msra.mxu1 %v2379_v15  ;;  %v1828_v15 = vld [vmem:[%s4311_s1 + $0x38] sm:$0xf0] }
  0x62   :  { %1501 = vmatpush.bf16.msra.mxu2 %v2443_v20  ;;  %v2595_v20 = vor.u32 %v2844_v11, %v2594_v10  ;;  %v1798_v10 = vld [vmem:[%s4312_s0 + $0x30] sm:$0xf] }
  0x63   :  { %1515 = vmatpush.bf16.msra.mxu3 %v2507_v26  ;;  %1474 = vmatmul.bf16.vlgmr.msra.gmra.mxu0 %v3602_v30  ;;  %v1959_v26 = vor.u32 %v2683_v18, %v1956_v19  ;;  %v2119_v18 = vor.u32 %v2723_v1, %v2116_v3  ;;  %v2705_v19 = vld [vmem:[%s4311_s1 + $0x1e4] sm:$0xf]  ;;  %v2020_v1 = vld [vmem:[%s4311_s1 + $0x1b8] sm:$0xf0]  ;;  %v2715_v3 = vld [vmem:[%s4311_s1 + $0x234] sm:$0xf] }
  0x64   :  { %1522 = vmatpush.bf16.msrb.mxu0 %v2627_v16  ;;  %1488 = vmatmul.bf16.vlgmr.msra.gmra.mxu1 %v3615_v37  ;;  %v2667_v16 = vld [vmem:[%s4311_s1 + $0xb4] sm:$0xf] }
  0x65   :  { %1536 = vmatpush.bf16.msrb.mxu1 %v1863_v21  ;;  %1502 = vmatmul.bf16.vlgmr.msra.gmra.mxu2 %v3613_v35  ;;  %v1831_v21 = vor.u32 %v2651_v12, %v1828_v15  ;;  %v1895_v22 = vor.u32 %v2667_v16, %v1892_v17  ;;  %v1871_v12 = vor.u32 %v2661_v59, %v1868_v61  ;;  %v2755_v15 = vld [vmem:[%s4311_s1 + $0x374] sm:$0xf]  ;;  %v2244_v16 = vld [vmem:[%s4311_s1 + $0x378] sm:$0xf0]  ;;  %v2749_v59 = vld [vmem:[%s4311_s1 + $0x344] sm:$0xf] }
  0x66   :  { %1550 = vmatpush.bf16.msrb.mxu2 %v1927_v25  ;;  %1516 = vmatmul.bf16.vlgmr.msra.gmra.mxu3 %v3623_v41  ;;  %v2649_v25 = vld [vmem:[%s4311_s1 + $0x24] sm:$0xf]  ;;  %v2220_v61 = vld [vmem:[%s4311_s1 + $0x348] sm:$0xf0] }
  0x67   :  { %1564 = vmatpush.bf16.msrb.mxu3 %v1991_v31  ;;  %v2681_v31 = vld [vmem:[%s4311_s1 + $0x124] sm:$0xf]  ;;  %v1823_v34 = vor.u32 %v2649_v25, %v1820_v27 }
  0x68   :  { %1523 = vmatpush.bf16.msrb.mxu0 %v2619_v42  ;;  %v2840_v42 = vld [vmem:[%s4311_s1 + $0x614] sm:$0xf0]  ;;  %v2737_v27 = vld [vmem:[%s4311_s1 + $0x2e4] sm:$0xf] }
  0x69   :  { %1537 = vmatpush.bf16.msrb.mxu1 %v1855_v43  ;;  %v2647_v43 = vld [vmem:[%s4311_s1 + $0x14] sm:$0xf]  ;;  %v2579_v52 = vor.u32 %v2840_v42, %v2578_v39  ;;  %v2036_v39 = vld [vmem:[%s4311_s1 + $0x1d8] sm:$0xf0] }
  0x6a   :  { %1551 = vmatpush.bf16.msrb.mxu2 %v1919_v45  ;;  %v1951_v45 = vor.u32 %v2681_v31, %v1948_v32  ;;  %v2236_v31 = vld [vmem:[%s4311_s1 + $0x368] sm:$0xf0]  ;;  %v2719_v42 = vld [vmem:[%s4311_s1 + $0x254] sm:$0xf] }
  0x6b   :  { %1565 = vmatpush.bf16.msrb.mxu3 %v1983_v50  ;;  %v2679_v50 = vld [vmem:[%s4311_s1 + $0x114] sm:$0xf] }
  0x6c   :  { %1524 = vmatpush.bf16.msrb.mxu0 %v2611_v56  ;;  %v1815_v56 = vor.u32 %v2647_v43, %v1812_v46  ;;  %v1943_v62 = vor.u32 %v2679_v50, %v1940_v51  ;;  %v2100_v43 = vld [vmem:[%s4311_s1 + $0x258] sm:$0xf0]  ;;  %v2735_v46 = vld [vmem:[%s4311_s1 + $0x2d4] sm:$0xf] }
  0x6d   :  { %1538 = vmatpush.bf16.msrb.mxu1 %v1847_v57  ;;  %v1879_v57 = vor.u32 %v2663_v47, %v1876_v49  ;;  %v2164_v47 = vld [vmem:[%s4311_s1 + $0x2d8] sm:$0xf0]  ;;  %v2751_v49 = vld [vmem:[%s4311_s1 + $0x354] sm:$0xf] }
  0x6e   :  { %1552 = vmatpush.bf16.msrb.mxu2 %v1911_v58  ;;  %v1804_v58 = vld [vmem:[%s4311_s1 + $0x8] sm:$0xf0]  ;;  %v2228_v50 = vld [vmem:[%s4311_s1 + $0x358] sm:$0xf0] }
  0x6f   :  { %1566 = vmatpush.bf16.msrb.mxu3 %v1975_v63  ;;  %v2707_v63 = vld [vmem:[%s4311_s1 + $0x1f4] sm:$0xf]  ;;  %v1807_v11 = vor.u32 %v2645_v55, %v1804_v58  ;;  %v2028_v55 = vld [vmem:[%s4311_s1 + $0x1c8] sm:$0xf0] }
  0x70   :  { %1525 = vmatpush.bf16.msrb.mxu0 %v2603_v6  ;;  %v2571_v6 = vor.u32 %v2838_v54, %v2570_v53  ;;  %v2055_v17 = vor.u32 %v2707_v63, %v2052_v0  ;;  %v2701_v53 = vld [vmem:[%s4311_s1 + $0x1c4] sm:$0xf]  ;;  %v2167_v54 = vor.u32 %v2735_v46, %v2164_v47  ;;  %v2156_v58 = vld [vmem:[%s4311_s1 + $0x2c8] sm:$0xf0]  ;;  %v2699_v63 = vld [vmem:[%s4311_s1 + $0x1b4] sm:$0xf] }
  0x71   :  { %1539 = vmatpush.bf16.msrb.mxu1 %v1839_v7  ;;  %v2677_v7 = vld [vmem:[%s4311_s1 + $0x104] sm:$0xf]  ;;  %v1996_v47 = vld [vmem:[%s4311_s1 + $0x188] sm:$0xf0] }
  0x72   :  { %1553 = vmatpush.bf16.msrb.mxu2 %v1903_v9  ;;  %v1932_v9 = vld [vmem:[%s4311_s1 + $0x108] sm:$0xf0]  ;;  %v2693_v46 = vld [vmem:[%s4311_s1 + $0x184] sm:$0xf] }
  0x73   :  { %1567 = vmatpush.bf16.msrb.mxu3 %v1967_v13  ;;  %v2644_v13 = vld [vmem:[%s4312_s0 + $0x60] sm:$0xf0] }
  0x74   :  { %1526 = vmatpush.bf16.msrb.mxu0 %v2595_v20  ;;  %v2183_v20 = vor.u32 %v2739_v4, %v2180_v5  ;;  %v3815_v25 = vor.u32 %v2644_v13, %v1798_v10  ;;  %v2084_v4 = vld [vmem:[%s4311_s1 + $0x238] sm:$0xf0]  ;;  %v2223_v5 = vor.u32 %v2749_v59, %v2220_v61  ;;  %v2697_v13 = vld [vmem:[%s4311_s1 + $0x1a4] sm:$0xf]  ;;  %v1999_v59 = vor.u32 %v2693_v46, %v1996_v47  ;;  %v2476_v46 = vld [vmem:[%s4311_s1 + $0x548] sm:$0xf0] }
  0x75   :  { %1540 = vmatpush.bf16.msrb.mxu1 %v1831_v21  ;;  %v1935_v21 = vor.u32 %v2677_v7, %v1932_v9  ;;  %v2148_v7 = vld [vmem:[%s4311_s1 + $0x2b8] sm:$0xf0]  ;;  %v2747_v9 = vld [vmem:[%s4311_s1 + $0x334] sm:$0xf] }
  0x76   :  { %1554 = vmatpush.bf16.msrb.mxu2 %v1895_v22  ;;  %v2044_v22 = vld [vmem:[%s4311_s1 + $0x1e8] sm:$0xf0]  ;;  %v2212_v10 = vld [vmem:[%s4311_s1 + $0x338] sm:$0xf0] }
  0x77   :  { %1568 = vmatpush.bf16.msrb.mxu3 %v1959_v26  ;;  %v2247_v26 = vor.u32 %v2755_v15, %v2244_v16  ;;  %v2047_v32 = vor.u32 %v2705_v19, %v2044_v22  ;;  %v2012_v16 = vld [vmem:[%s4311_s1 + $0x1a8] sm:$0xf0]  ;;  %v2215_v19 = vor.u32 %v2747_v9, %v2212_v10  ;;  %v2745_v22 = vld [vmem:[%s4311_s1 + $0x324] sm:$0xf] }
  0x78   :  { %1527 = vmatpush.bf16.msrb.mxu0 %v2587_v33  ;;  %v2111_v33 = vor.u32 %v2721_v23, %v2108_v24  ;;  %v2204_v23 = vld [vmem:[%s4311_s1 + $0x328] sm:$0xf0]  ;;  %v2015_v24 = vor.u32 %v2697_v13, %v2012_v16  ;;  %v2785_v10 = vld [vmem:[%s4311_s1 + $0x464] sm:$0xf] }
  0x79   :  { %1541 = vmatpush.bf16.msrb.mxu1 %v1823_v34  ;;  %v2703_v34 = vld [vmem:[%s4311_s1 + $0x1d4] sm:$0xf]  ;;  %v2801_v13 = vld [vmem:[%s4311_s1 + $0x4e4] sm:$0xf] }
  0x7a   :  { %1555 = vmatpush.bf16.msrb.mxu2 %v1887_v38  ;;  %v2175_v38 = vor.u32 %v2737_v27, %v2172_v28  ;;  %v2039_v51 = vor.u32 %v2703_v34, %v2036_v39  ;;  %v2695_v27 = vld [vmem:[%s4311_s1 + $0x194] sm:$0xf] }
  0x7b   :  { %1569 = vmatpush.bf16.msrb.mxu3 %v1951_v45  ;;  %v2239_v45 = vor.u32 %v2753_v29, %v2236_v31  ;;  %v2004_v29 = vld [vmem:[%s4311_s1 + $0x198] sm:$0xf0]  ;;  %v2711_v31 = vld [vmem:[%s4311_s1 + $0x214] sm:$0xf] }
  0x7c   :  { %1528 = vmatpush.bf16.msrb.mxu0 %v2579_v52  ;;  %v2103_v52 = vor.u32 %v2719_v42, %v2100_v43  ;;  %v2727_v34 = vld [vmem:[%s4311_s1 + $0x294] sm:$0xf]  ;;  %v2196_v42 = vld [vmem:[%s4311_s1 + $0x318] sm:$0xf0]  ;;  %v2007_v43 = vor.u32 %v2695_v27, %v2004_v29 }
  0x7d   :  { %1542 = vmatpush.bf16.msrb.mxu1 %v1815_v56  ;;  %v2231_v56 = vor.u32 %v2751_v49, %v2228_v50  ;;  %v2743_v39 = vld [vmem:[%s4311_s1 + $0x314] sm:$0xf]  ;;  %v2709_v49 = vld [vmem:[%s4311_s1 + $0x204] sm:$0xf] }
  0x7e   :  { %1556 = vmatpush.bf16.msrb.mxu2 %v1879_v57  ;;  %v2733_v57 = vld [vmem:[%s4311_s1 + $0x2c4] sm:$0xf]  ;;  %v2799_v27 = vld [vmem:[%s4311_s1 + $0x4d4] sm:$0xf] }
  0x7f   :  { %1570 = vmatpush.bf16.msrb.mxu3 %v1943_v62  ;;  %v2159_v0 = vor.u32 %v2733_v57, %v2156_v58  ;;  %v2803_v57 = vld [vmem:[%s4311_s1 + $0x4f4] sm:$0xf]  ;;  %v2436_v58 = vld [vmem:[%s4311_s1 + $0x4f8] sm:$0xf0] }
  0x80   :  { %1529 = vmatpush.bf16.msrb.mxu0 %v2571_v6  ;;  %v2731_v6 = vld [vmem:[%s4311_s1 + $0x2b4] sm:$0xf] }
  0x81   :  { %1543 = vmatpush.bf16.msrb.mxu1 %v1807_v11  ;;  %v2023_v11 = vor.u32 %v2699_v63, %v2020_v1  ;;  %v2151_v15 = vor.u32 %v2731_v6, %v2148_v7  ;;  %v2819_v1 = vld [vmem:[%s4311_s1 + $0x574] sm:$0xf]  ;;  %v2769_v6 = vld [vmem:[%s4311_s1 + $0x3e4] sm:$0xf]  ;;  %v2300_v7 = vld [vmem:[%s4311_s1 + $0x3e8] sm:$0xf0] }
  0x82   :  { %1557 = vmatpush.bf16.msrb.mxu2 %v1871_v12  ;;  %v2087_v12 = vor.u32 %v2715_v3, %v2084_v4  ;;  %v2500_v3 = vld [vmem:[%s4311_s1 + $0x578] sm:$0xf0]  ;;  %v2303_v16 = vor.u32 %v2769_v6, %v2300_v7  ;;  %v2815_v29 = vld [vmem:[%s4311_s1 + $0x554] sm:$0xf]  ;;  %v2460_v6 = vld [vmem:[%s4311_s1 + $0x528] sm:$0xf0] }
  0x83   :  { %1571 = vmatpush.bf16.msrb.mxu3 %v1935_v21  ;;  %1530 = vmatmul.bf16.vlgmr.msrb.gmra.mxu0 %v3815_v25  ;;  %v2140_v21 = vld [vmem:[%s4311_s1 + $0x2a8] sm:$0xf0] }
  0x84   :  { %1578 = vmatpush.bf16.msra.mxu0 %v2055_v17  ;;  %1544 = vmatmul.bf16.vlgmr.msrb.gmra.mxu1 %v3155_v60  ;;  %v2092_v60 = vld [vmem:[%s4311_s1 + $0x248] sm:$0xf0]  ;;  %v2713_v17 = vld [vmem:[%s4311_s1 + $0x224] sm:$0xf] }
  0x85   :  { %1592 = vmatpush.bf16.msra.mxu1 %v2119_v18  ;;  %1558 = vmatmul.bf16.vlgmr.msrb.gmra.mxu2 %v3185_v8  ;;  %v2717_v8 = vld [vmem:[%s4311_s1 + $0x244] sm:$0xf]  ;;  %v2076_v18 = vld [vmem:[%s4311_s1 + $0x228] sm:$0xf0] }
  0x86   :  { %1606 = vmatpush.bf16.msra.mxu2 %v2183_v20  ;;  %1572 = vmatmul.bf16.vlgmr.msrb.gmra.mxu3 %v3169_v2  ;;  %v2031_v2 = vor.u32 %v2701_v53, %v2028_v55  ;;  %v2095_v62 = vor.u32 %v2717_v8, %v2092_v60  ;;  %v2729_v20 = vld [vmem:[%s4311_s1 + $0x2a4] sm:$0xf]  ;;  %v2124_v53 = vld [vmem:[%s4311_s1 + $0x288] sm:$0xf0]  ;;  %v2771_v55 = vld [vmem:[%s4311_s1 + $0x3f4] sm:$0xf] }
  0x87   :  { %1620 = vmatpush.bf16.msra.mxu3 %v2247_v26  ;;  %v2079_v26 = vor.u32 %v2713_v17, %v2076_v18  ;;  %v2143_v28 = vor.u32 %v2729_v20, %v2140_v21  ;;  %v2308_v8 = vld [vmem:[%s4311_s1 + $0x3f8] sm:$0xf0]  ;;  %v2787_v60 = vld [vmem:[%s4311_s1 + $0x474] sm:$0xf]  ;;  %v2817_v17 = vld [vmem:[%s4311_s1 + $0x564] sm:$0xf] }
  0x88   :  { %1579 = vmatpush.bf16.msra.mxu0 %v2047_v32  ;;  %v2068_v32 = vld [vmem:[%s4311_s1 + $0x218] sm:$0xf0]  ;;  %v2492_v18 = vld [vmem:[%s4311_s1 + $0x568] sm:$0xf0]  ;;  %v2767_v20 = vld [vmem:[%s4311_s1 + $0x3d4] sm:$0xf] }
  0x89   :  { %1593 = vmatpush.bf16.msra.mxu1 %v2111_v33  ;;  %v2207_v33 = vor.u32 %v2745_v22, %v2204_v23  ;;  %v2292_v21 = vld [vmem:[%s4311_s1 + $0x3d8] sm:$0xf0]  ;;  %v2783_v23 = vld [vmem:[%s4311_s1 + $0x454] sm:$0xf] }
  0x8a   :  { %1607 = vmatpush.bf16.msra.mxu2 %v2175_v38  ;;  %v2132_v38 = vld [vmem:[%s4311_s1 + $0x298] sm:$0xf0] }
  0x8b   :  { %1621 = vmatpush.bf16.msra.mxu3 %v2239_v45  ;;  %v2071_v45 = vor.u32 %v2711_v31, %v2068_v32  ;;  %v2135_v50 = vor.u32 %v2727_v34, %v2132_v38  ;;  %v2765_v32 = vld [vmem:[%s4311_s1 + $0x3c4] sm:$0xf] }
  0x8c   :  { %1580 = vmatpush.bf16.msra.mxu0 %v2039_v51  ;;  %v2060_v51 = vld [vmem:[%s4311_s1 + $0x208] sm:$0xf0]  ;;  %v2781_v34 = vld [vmem:[%s4311_s1 + $0x444] sm:$0xf] }
  0x8d   :  { %1594 = vmatpush.bf16.msra.mxu1 %v2103_v52  ;;  %v2725_v52 = vld [vmem:[%s4311_s1 + $0x284] sm:$0xf]  ;;  %v2063_v61 = vor.u32 %v2709_v49, %v2060_v51  ;;  %v2763_v49 = vld [vmem:[%s4311_s1 + $0x3b4] sm:$0xf] }
  0x8e   :  { %1608 = vmatpush.bf16.msra.mxu2 %v2167_v54  ;;  %v2199_v54 = vor.u32 %v2743_v39, %v2196_v42  ;;  %v2127_v63 = vor.u32 %v2725_v52, %v2124_v53  ;;  %v2797_v39 = vld [vmem:[%s4311_s1 + $0x4c4] sm:$0xf]  ;;  %v2412_v42 = vld [vmem:[%s4311_s1 + $0x4c8] sm:$0xf0]  ;;  %v2779_v52 = vld [vmem:[%s4311_s1 + $0x434] sm:$0xf] }
  0x8f   :  { %1622 = vmatpush.bf16.msra.mxu3 %v2231_v56  ;;  %v2372_v56 = vld [vmem:[%s4311_s1 + $0x478] sm:$0xf0]  ;;  %v2415_v51 = vor.u32 %v2797_v39, %v2412_v42 }
  0x90   :  { %1581 = vmatpush.bf16.msra.mxu0 %v2031_v2  ;;  %v2741_v2 = vld [vmem:[%s4311_s1 + $0x304] sm:$0xf]  ;;  %v2375_v4 = vor.u32 %v2787_v60, %v2372_v56  ;;  %v2340_v53 = vld [vmem:[%s4311_s1 + $0x438] sm:$0xf0]  ;;  %v2811_v56 = vld [vmem:[%s4311_s1 + $0x534] sm:$0xf] }
  0x91   :  { %1595 = vmatpush.bf16.msra.mxu1 %v2095_v62  ;;  %v2188_v62 = vld [vmem:[%s4311_s1 + $0x308] sm:$0xf0] }
  0x92   :  { %1609 = vmatpush.bf16.msra.mxu2 %v2159_v0  ;;  %v2311_v0 = vor.u32 %v2771_v55, %v2308_v8  ;;  %v2191_v9 = vor.u32 %v2741_v2, %v2188_v62  ;;  %v2795_v55 = vld [vmem:[%s4311_s1 + $0x4b4] sm:$0xf]  ;;  %v2404_v8 = vld [vmem:[%s4311_s1 + $0x4b8] sm:$0xf0]  ;;  %v2777_v62 = vld [vmem:[%s4311_s1 + $0x424] sm:$0xf] }
  0x93   :  { %1623 = vmatpush.bf16.msra.mxu3 %v2223_v5  ;;  %v2439_v5 = vor.u32 %v2803_v57, %v2436_v58  ;;  %v2468_v57 = vld [vmem:[%s4311_s1 + $0x538] sm:$0xf0]  ;;  %v2343_v58 = vor.u32 %v2779_v52, %v2340_v53  ;;  %v2407_v2 = vor.u32 %v2795_v55, %v2404_v8  ;;  %v2831_v53 = vld [vmem:[%s4311_s1 + $0x5d4] sm:$0xf] }
  0x94   :  { %1582 = vmatpush.bf16.msra.mxu0 %v2023_v11  ;;  %v2364_v11 = vld [vmem:[%s4311_s1 + $0x468] sm:$0xf0]  ;;  %v2847_v55 = vld [vmem:[%s4311_s1 + $0x654] sm:$0xf]  ;;  %v2612_v8 = vld [vmem:[%s4311_s1 + $0x658] sm:$0xf0] }
  0x95   :  { %1596 = vmatpush.bf16.msra.mxu1 %v2087_v12  ;;  %v2503_v12 = vor.u32 %v2819_v1, %v2500_v3  ;;  %v2793_v1 = vld [vmem:[%s4311_s1 + $0x4a4] sm:$0xf]  ;;  %v2396_v3 = vld [vmem:[%s4311_s1 + $0x4a8] sm:$0xf0] }
  0x96   :  { %1610 = vmatpush.bf16.msra.mxu2 %v2151_v15  ;;  %v2428_v15 = vld [vmem:[%s4311_s1 + $0x4e8] sm:$0xf0] }
  0x97   :  { %1624 = vmatpush.bf16.msra.mxu3 %v2215_v19  ;;  %v2367_v19 = vor.u32 %v2785_v10, %v2364_v11  ;;  %v2431_v22 = vor.u32 %v2801_v13, %v2428_v15  ;;  %v2260_v10 = vld [vmem:[%s4311_s1 + $0x398] sm:$0xf0]  ;;  %v2399_v11 = vor.u32 %v2793_v1, %v2396_v3  ;;  %v2825_v3 = vld [vmem:[%s4311_s1 + $0x5a4] sm:$0xf] }
  0x98   :  { %1583 = vmatpush.bf16.msra.mxu0 %v2015_v24  ;;  %v2356_v24 = vld [vmem:[%s4311_s1 + $0x458] sm:$0xf0] }
  0x99   :  { %1597 = vmatpush.bf16.msra.mxu1 %v2079_v26  ;;  %v2495_v26 = vor.u32 %v2817_v17, %v2492_v18  ;;  %v2359_v31 = vor.u32 %v2783_v23, %v2356_v24  ;;  %v2324_v13 = vld [vmem:[%s4311_s1 + $0x418] sm:$0xf0]  ;;  %v2252_v23 = vld [vmem:[%s4311_s1 + $0x388] sm:$0xf0]  ;;  %v2773_v24 = vld [vmem:[%s4311_s1 + $0x404] sm:$0xf] }
  0x9a   :  { %1611 = vmatpush.bf16.msra.mxu2 %v2143_v28  ;;  %v2295_v28 = vor.u32 %v2767_v20, %v2292_v21  ;;  %v2388_v17 = vld [vmem:[%s4311_s1 + $0x498] sm:$0xf0]  ;;  %v2757_v21 = vld [vmem:[%s4311_s1 + $0x384] sm:$0xf] }
  0x9b   :  { %1625 = vmatpush.bf16.msra.mxu3 %v2207_v33  ;;  %v2452_v20 = vld [vmem:[%s4311_s1 + $0x518] sm:$0xf0] }
  0x9c   :  { %1584 = vmatpush.bf16.msra.mxu0 %v2007_v43 }
  0x9d   :  { %1598 = vmatpush.bf16.msra.mxu1 %v2071_v45  ;;  %v2813_v45 = vld [vmem:[%s4311_s1 + $0x544] sm:$0xf] }
  0x9e   :  { %1612 = vmatpush.bf16.msra.mxu2 %v2135_v50  ;;  %v2276_v50 = vld [vmem:[%s4311_s1 + $0x3b8] sm:$0xf0] }
  0x9f   :  { %1626 = vmatpush.bf16.msra.mxu3 %v2199_v54  ;;  %v2479_v54 = vor.u32 %v2813_v45, %v2476_v46  ;;  %v2279_v60 = vor.u32 %v2763_v49, %v2276_v50  ;;  %v2833_v45 = vld [vmem:[%s4311_s1 + $0x5e4] sm:$0xf]  ;;  %v2556_v46 = vld [vmem:[%s4311_s1 + $0x5e8] sm:$0xf0] }
  0xa0   :  { %1585 = vmatpush.bf16.msra.mxu0 %v1999_v59  ;;  %v2761_v59 = vld [vmem:[%s4311_s1 + $0x3a4] sm:$0xf]  ;;  %v2620_v50 = vld [vmem:[%s4311_s1 + $0x668] sm:$0xf0] }
  0xa1   :  { %1599 = vmatpush.bf16.msra.mxu1 %v2063_v61  ;;  %v2268_v61 = vld [vmem:[%s4311_s1 + $0x3a8] sm:$0xf0]  ;;  %v2849_v49 = vld [vmem:[%s4311_s1 + $0x664] sm:$0xf] }
  0xa2   :  { %1613 = vmatpush.bf16.msra.mxu2 %v2127_v63  ;;  %v2332_v63 = vld [vmem:[%s4311_s1 + $0x428] sm:$0xf0]  ;;  %v2623_v52 = vor.u32 %v2849_v49, %v2620_v50 }
  0xa3   :  { %1627 = vmatpush.bf16.msra.mxu3 %v2191_v9  ;;  %1586 = vmatmul.bf16.vlgmr.msra.gmra.mxu0 %v3196_v14  ;;  %v2420_v14 = vld [vmem:[%s4311_s1 + $0x4d8] sm:$0xf0]  ;;  %v2335_v7 = vor.u32 %v2777_v62, %v2332_v63  ;;  %v2759_v9 = vld [vmem:[%s4311_s1 + $0x394] sm:$0xf] }
  0xa4   :  { %1634 = vmatpush.bf16.msrb.mxu0 %v2311_v0  ;;  %1600 = vmatmul.bf16.vlgmr.msra.gmra.mxu1 %v3368_v36  ;;  %v2284_v36 = vld [vmem:[%s4311_s1 + $0x3c8] sm:$0xf0]  ;;  %v2423_v33 = vor.u32 %v2799_v27, %v2420_v14  ;;  %v2471_v0 = vor.u32 %v2811_v56, %v2468_v57  ;;  %v2263_v18 = vor.u32 %v2759_v9, %v2260_v10  ;;  %v2789_v14 = vld [vmem:[%s4311_s1 + $0x484] sm:$0xf]  ;;  %v2596_v62 = vld [vmem:[%s4311_s1 + $0x638] sm:$0xf0] }
  0xa5   :  { %1648 = vmatpush.bf16.msrb.mxu1 %v2375_v4  ;;  %1614 = vmatmul.bf16.vlgmr.msra.gmra.mxu2 %v3387_v44  ;;  %v2484_v44 = vld [vmem:[%s4311_s1 + $0x558] sm:$0xf0]  ;;  %v2287_v43 = vor.u32 %v2765_v32, %v2284_v36  ;;  %v2271_v4 = vor.u32 %v2761_v59, %v2268_v61  ;;  %v2851_v32 = vld [vmem:[%s4311_s1 + $0x674] sm:$0xf]  ;;  %v2615_v56 = vor.u32 %v2847_v55, %v2612_v8  ;;  %v2540_v57 = vld [vmem:[%s4311_s1 + $0x5c8] sm:$0xf0] }
  0xa6   :  { %1662 = vmatpush.bf16.msrb.mxu2 %v2439_v5  ;;  %1628 = vmatmul.bf16.vlgmr.msra.gmra.mxu3 %v3379_v40  ;;  %v2348_v40 = vld [vmem:[%s4311_s1 + $0x448] sm:$0xf0]  ;;  %v2487_v38 = vor.u32 %v2815_v29, %v2484_v44  ;;  %v2809_v5 = vld [vmem:[%s4311_s1 + $0x524] sm:$0xf]  ;;  %v2564_v29 = vld [vmem:[%s4311_s1 + $0x5f8] sm:$0xf0] }
  0xa7   :  { %1676 = vmatpush.bf16.msrb.mxu3 %v2503_v12  ;;  %v2351_v47 = vor.u32 %v2781_v34, %v2348_v40  ;;  %v2775_v12 = vld [vmem:[%s4311_s1 + $0x414] sm:$0xf]  ;;  %v2463_v15 = vor.u32 %v2809_v5, %v2460_v6  ;;  %v2628_v36 = vld [vmem:[%s4311_s1 + $0x678] sm:$0xf0]  ;;  %v2805_v34 = vld [vmem:[%s4311_s1 + $0x504] sm:$0xf] }
  0xa8   :  { %1635 = vmatpush.bf16.msrb.mxu0 %v2303_v16  ;;  %v2791_v16 = vld [vmem:[%s4311_s1 + $0x494] sm:$0xf]  ;;  %v2444_v40 = vld [vmem:[%s4311_s1 + $0x508] sm:$0xf0]  ;;  %v2532_v61 = vld [vmem:[%s4311_s1 + $0x5b8] sm:$0xf0] }
  0xa9   :  { %1649 = vmatpush.bf16.msrb.mxu1 %v2367_v19  ;;  %v2807_v19 = vld [vmem:[%s4311_s1 + $0x514] sm:$0xf]  ;;  %v2391_v27 = vor.u32 %v2791_v16, %v2388_v17  ;;  %v2841_v5 = vld [vmem:[%s4311_s1 + $0x624] sm:$0xf]  ;;  %v2588_v6 = vld [vmem:[%s4311_s1 + $0x628] sm:$0xf0] }
  0xaa   :  { %1663 = vmatpush.bf16.msrb.mxu2 %v2431_v22  ;;  %v2327_v22 = vor.u32 %v2775_v12, %v2324_v13  ;;  %v2455_v44 = vor.u32 %v2807_v19, %v2452_v20  ;;  %v2827_v59 = vld [vmem:[%s4311_s1 + $0x5b4] sm:$0xf]  ;;  %v2591_v9 = vor.u32 %v2841_v5, %v2588_v6  ;;  %v2580_v13 = vld [vmem:[%s4311_s1 + $0x618] sm:$0xf0]  ;;  %v4264_v17 = vld [vmem:[%s4313_s2] sm:$0x3] }
  0xab   :  { %1677 = vmatpush.bf16.msrb.mxu3 %v2495_v26  ;;  %v2316_v26 = vld [vmem:[%s4311_s1 + $0x408] sm:$0xf0]  ;;  %v2535_v63 = vor.u32 %v2827_v59, %v2532_v61  ;;  %v2823_v10 = vld [vmem:[%s4311_s1 + $0x594] sm:$0xf]  ;;  %v2821_v20 = vld [vmem:[%s4311_s1 + $0x584] sm:$0xf] }
  0xac   :  { %1636 = vmatpush.bf16.msrb.mxu0 %v2295_v28  ;;  %v2835_v28 = vld [vmem:[%s4311_s1 + $0x5f4] sm:$0xf] }
  0xad   :  { %1650 = vmatpush.bf16.msrb.mxu1 %v2359_v31  ;;  %v2380_v31 = vld [vmem:[%s4311_s1 + $0x488] sm:$0xf0]  ;;  %v2567_v39 = vor.u32 %v2835_v28, %v2564_v29  ;;  %v2839_v12 = vld [vmem:[%s4311_s1 + $0x614] sm:$0xf] }
  0xae   :  { %1664 = vmatpush.bf16.msrb.mxu2 %v2423_v33  ;;  %v2255_v33 = vor.u32 %v2757_v21, %v2252_v23  ;;  %v2383_v42 = vor.u32 %v2789_v14, %v2380_v31  ;;  %v2583_v19 = vor.u32 %v2839_v12, %v2580_v13  ;;  %v2508_v21 = vld [vmem:[%s4311_s1 + $0x588] sm:$0xf0]  ;;  %v1405_v14 = vpop.f32.mrf.mxu3 }
  0xaf   :  { %1678 = vmatpush.bf16.msrb.mxu3 %v2487_v38  ;;  %v2319_v38 = vor.u32 %v2773_v24, %v2316_v26  ;;  %v2572_v23 = vld [vmem:[%s4311_s1 + $0x608] sm:$0xf0]  ;;  %v244_v26 = vperm.slane %v4264_v17, 0 }
  0xb0   :  { %1637 = vmatpush.bf16.msrb.mxu0 %v2287_v43  ;;  %v2631_v43 = vor.u32 %v2851_v32, %v2628_v36 }
  0xb1   :  { %1651 = vmatpush.bf16.msrb.mxu1 %v2351_v47  ;;  %v2447_v47 = vor.u32 %v2805_v34, %v2444_v40 }
  0xb2   :  { %1665 = vmatpush.bf16.msrb.mxu2 %v2415_v51  ;;  %v2559_v51 = vor.u32 %v2833_v45, %v2556_v46 }
  0xb3   :  { %1679 = vmatpush.bf16.msrb.mxu3 %v2479_v54  ;;  %v2548_v54 = vld [vmem:[%s4311_s1 + $0x5d8] sm:$0xf0] }
  0xb4   :  { %1638 = vmatpush.bf16.msrb.mxu0 %v2279_v60  ;;  %v2551_v60 = vor.u32 %v2831_v53, %v2548_v54 }
  0xb5   :  { %1652 = vmatpush.bf16.msrb.mxu1 %v2343_v58 }
  0xb6   :  { %1666 = vmatpush.bf16.msrb.mxu2 %v2407_v2  ;;  %v2843_v2 = vld [vmem:[%s4311_s1 + $0x634] sm:$0xf] }
  0xb7   :  { %1680 = vmatpush.bf16.msrb.mxu3 %v2471_v0  ;;  %v1363_v0 = vpop.f32.mrf.mxu0  ;;  %v2599_v1 = vor.u32 %v2843_v2, %v2596_v62 }
  0xb8   :  { %1639 = vmatpush.bf16.msrb.mxu0 %v2271_v4  ;;  %v2524_v4 = vld [vmem:[%s4311_s1 + $0x5a8] sm:$0xf0]  ;;  %v1364_v29 = vadd.f32 %v1363_v0, %v244_v26 }
  0xb9   :  { %1653 = vmatpush.bf16.msrb.mxu1 %v2335_v7  ;;  %v2527_v7 = vor.u32 %v2825_v3, %v2524_v4 }
  0xba   :  { %1667 = vmatpush.bf16.msrb.mxu2 %v2399_v11  ;;  %v2516_v11 = vld [vmem:[%s4311_s1 + $0x598] sm:$0xf0] }
  0xbb   :  { %1681 = vmatpush.bf16.msrb.mxu3 %v2463_v15  ;;  %v1377_v15 = vpop.f32.mrf.mxu1  ;;  %v2519_v16 = vor.u32 %v2823_v10, %v2516_v11 }
  0xbc   :  { %1640 = vmatpush.bf16.msrb.mxu0 %v2263_v18  ;;  %v1391_v18 = vpop.f32.mrf.mxu2  ;;  %v1378_v32 = vadd.f32 %v1377_v15, %v1364_v29 }
  0xbd   :  { %1654 = vmatpush.bf16.msrb.mxu1 %v2327_v22  ;;  %v2837_v22 = vld [vmem:[%s4311_s1 + $0x604] sm:$0xf] }
  0xbe   :  { %1668 = vmatpush.bf16.msrb.mxu2 %v2391_v27  ;;  %v2511_v27 = vor.u32 %v2821_v20, %v2508_v21  ;;  %v2575_v28 = vor.u32 %v2837_v22, %v2572_v23  ;;  %v1392_v34 = vadd.f32 %v1391_v18, %v1378_v32 }
  0xbf   :  { %1682 = vmatpush.bf16.msrb.mxu3 %v2455_v44  ;;  %v1365_v24 = vpop.f32.mrf.mxu0 }
  0xc0   :  { %1641 = vmatpush.bf16.msrb.mxu0 %v2255_v33  ;;  %v1407_v33 = vpop.f32.mrf.mxu3 }
  0xc1   :  { %1655 = vmatpush.bf16.msrb.mxu1 %v2319_v38  ;;  %v1366_v38 = vadd.f32 %v1365_v24, %v244_v26 }
  0xc2   :  { %1669 = vmatpush.bf16.msrb.mxu2 %v2383_v42 }
  0xc3   :  { %1683 = vmatpush.bf16.msrb.mxu3 %v2447_v47  ;;  %1642 = vmatmul.bf16.vlgmr.msrb.gmra.mxu0 %v3395_v48  ;;  %v2829_v48 = vld [vmem:[%s4311_s1 + $0x5c4] sm:$0xf]  ;;  %v1379_v44 = vpop.f32.mrf.mxu1 }
  0xc4   :  { %1690 = vmatpush.bf16.msra.mxu0 %v2567_v39  ;;  %1656 = vmatmul.bf16.vlgmr.msrb.gmra.mxu1 %v3602_v30  ;;  %v2845_v30 = vld [vmem:[%s4311_s1 + $0x644] sm:$0xf]  ;;  %v1393_v31 = vpop.f32.mrf.mxu2  ;;  %v1406_v39 = vadd.f32 %v1405_v14, %v1392_v34  ;;  %v1380_v45 = vadd.f32 %v1379_v44, %v1366_v38 }
  0xc5   :  { %1704 = vmatpush.bf16.msra.mxu1 %v2631_v43  ;;  %1670 = vmatmul.bf16.vlgmr.msrb.gmra.mxu2 %v3615_v37  ;;  %v2604_v37 = vld [vmem:[%s4311_s1 + $0x648] sm:$0xf0] }
  0xc6   :  { %1684 = vmatmul.bf16.vlgmr.msrb.gmra.mxu3 %v3613_v35  ;;  %v2543_v35 = vor.u32 %v2829_v48, %v2540_v57  ;;  %v2607_v58 = vor.u32 %v2845_v30, %v2604_v37  ;;  %v1394_v49 = vadd.f32 %v1393_v31, %v1380_v45 }
  0xc7   :  { %v1419_v36 = vpop.f32.mrf.mxu0 }
  0xc8   :  { %1691 = vmatpush.bf16.msra.mxu0 %v2559_v51  ;;  %v1420_v46 = vadd.f32 %v1419_v36, %v1406_v39 }
  0xc9   :  { %1705 = vmatpush.bf16.msra.mxu1 %v2623_v52  ;;  %v1461_v47 = vpop.f32.mrf.mxu3 }
  0xcb   :  { %v1433_v40 = vpop.f32.mrf.mxu1 }
  0xcc   :  { %1692 = vmatpush.bf16.msra.mxu0 %v2551_v60  ;;  %v1447_v42 = vpop.f32.mrf.mxu2  ;;  %v1434_v50 = vadd.f32 %v1433_v40, %v1420_v46 }
  0xcd   :  { %1706 = vmatpush.bf16.msra.mxu1 %v2615_v56 }
  0xce   :  { %v1448_v54 = vadd.f32 %v1447_v42, %v1434_v50 }
  0xcf   :  { %v1421_v43 = vpop.f32.mrf.mxu0 }
  0xd0   :  { %1693 = vmatpush.bf16.msra.mxu0 %v2543_v35  ;;  %v1462_v8 = vadd.f32 %v1461_v47, %v1448_v54 }
  0xd1   :  { %1707 = vmatpush.bf16.msra.mxu1 %v2607_v58 }
  0xd3   :  { %v1435_v51 = vpop.f32.mrf.mxu1 }
  0xd4   :  { %1694 = vmatpush.bf16.msra.mxu0 %v2535_v63  ;;  %v1449_v52 = vpop.f32.mrf.mxu2 }
  0xd5   :  { %1708 = vmatpush.bf16.msra.mxu1 %v2599_v1 }
  0xd8   :  { %1695 = vmatpush.bf16.msra.mxu0 %v2527_v7 }
  0xd9   :  { %1709 = vmatpush.bf16.msra.mxu1 %v2591_v9 }
  0xdc   :  { %1696 = vmatpush.bf16.msra.mxu0 %v2519_v16  ;;  %v245_v16 = vperm.slane %v4264_v17, 1 }
  0xdd   :  { %1710 = vmatpush.bf16.msra.mxu1 %v2583_v19 }
  0xe0   :  { %1697 = vmatpush.bf16.msra.mxu0 %v2511_v27  ;;  %v1475_v53 = vpop.f32.mrf.mxu0 }
  0xe1   :  { %1711 = vmatpush.bf16.msra.mxu1 %v2575_v28  ;;  %v1489_v60 = vpop.f32.mrf.mxu1  ;;  %v1476_v48 = vadd.f32 %v1475_v53, %v1462_v8 }
  0xe3   :  { %1698 = vmatmul.bf16.vlgmr.msra.gmra.mxu0 %v3623_v41  ;;  %v1408_v41 = vadd.f32 %v1407_v33, %v1394_v49  ;;  %v1490_v35 = vadd.f32 %v1489_v60, %v1476_v48 }
  0xe4   :  { %1712 = vmatmul.bf16.vlgmr.msra.gmra.mxu1 %v3815_v25  ;;  %v1463_v25 = vpop.f32.mrf.mxu3 }
  0xe5   :  { %v1422_v55 = vadd.f32 %v1421_v43, %v1408_v41 }
  0xe7   :  { %v1436_v56 = vadd.f32 %v1435_v51, %v1422_v55 }
  0xe8   :  { %v1503_v57 = vpop.f32.mrf.mxu2  ;;  %v1477_v37 = vpop.f32.mrf.mxu0 }
  0xe9   :  { %v1450_v30 = vadd.f32 %v1449_v52, %v1436_v56  ;;  %v1504_v61 = vadd.f32 %v1503_v57, %v1490_v35  ;;  %v1491_v62 = vpop.f32.mrf.mxu1 }
  0xeb   :  { %v1464_v59 = vadd.f32 %v1463_v25, %v1450_v30 }
  0xec   :  { %v1517_v58 = vpop.f32.mrf.mxu3 }
  0xed   :  { %v1478_v2 = vadd.f32 %v1477_v37, %v1464_v59  ;;  %v1518_v63 = vadd.f32 %v1517_v58, %v1504_v61 }
  0xef   :  { %v1492_v3 = vadd.f32 %v1491_v62, %v1478_v2 }
  0xf0   :  { %v1505_v0 = vpop.f32.mrf.mxu2 }
  0xf1   :  { %v1506_v5 = vadd.f32 %v1505_v0, %v1492_v3  ;;  %v1719_v3 = vld [vmem:[%s4316_s3 + $0x8] sm:$0xff] }
  0xf4   :  { %v1519_v6 = vpop.f32.mrf.mxu3 }
  0xf5   :  { %v1520_v7 = vadd.f32 %v1519_v6, %v1506_v5 }
 0x100   :  { %v1531_v1 = vpop.f32.mrf.mxu0 }
 0x101   :  { %v4281_v4 = vadd.f32 %v1531_v1, %v1518_v63  ;;  %v1545_v11 = vpop.f32.mrf.mxu1  ;;  %v1718_v1 = vld [vmem:[%s4316_s3] sm:$0xff] }
 0x102   :  { %v1546_v19 = vadd.f32 %v1545_v11, %v245_v16 }
 0x103   :  { %1728 = vst [vmem:[%s4314_s4] sm:$0xff] %v4281_v4 }
 0x108   :  { %v1533_v9 = vpop.f32.mrf.mxu0  ;;  %v1559_v12 = vpop.f32.mrf.mxu2 }
 0x109   :  { %v4287_v10 = vadd.f32 %v1533_v9, %v1520_v7  ;;  %v1547_v13 = vpop.f32.mrf.mxu1  ;;  %v1573_v15 = vpop.f32.mrf.mxu3  ;;  %v1560_v23 = vadd.f32 %v1559_v12, %v1546_v19 }
 0x10a   :  { %v1548_v14 = vadd.f32 %v1547_v13, %v245_v16 }
 0x10b   :  { %1729 = vst [vmem:[%s4314_s4 + $0x8] sm:$0xff] %v4287_v10  ;;  %v1574_v24 = vadd.f32 %v1573_v15, %v1560_v23 }
 0x110   :  { %v1561_v18 = vpop.f32.mrf.mxu2 }
 0x111   :  { %v1575_v22 = vpop.f32.mrf.mxu3  ;;  %v1562_v31 = vadd.f32 %v1561_v18, %v1548_v14 }
 0x113   :  { %v1576_v34 = vadd.f32 %v1575_v22, %v1562_v31 }
 0x120   :  { %v1587_v20 = vpop.f32.mrf.mxu0 }
 0x121   :  { %v1601_v21 = vpop.f32.mrf.mxu1  ;;  %v1588_v28 = vadd.f32 %v1587_v20, %v1574_v24 }
 0x123   :  { %v1602_v32 = vadd.f32 %v1601_v21, %v1588_v28 }
 0x128   :  { %v1615_v26 = vpop.f32.mrf.mxu2  ;;  %v1589_v27 = vpop.f32.mrf.mxu0 }
 0x129   :  { %v1603_v29 = vpop.f32.mrf.mxu1  ;;  %v1629_v44 = vpop.f32.mrf.mxu3  ;;  %v1616_v40 = vadd.f32 %v1615_v26, %v1602_v32  ;;  %v1590_v38 = vadd.f32 %v1589_v27, %v1576_v34 }
 0x12b   :  { %v1630_v42 = vadd.f32 %v1629_v44, %v1616_v40  ;;  %v1604_v43 = vadd.f32 %v1603_v29, %v1590_v38 }
 0x130   :  { %v1617_v36 = vpop.f32.mrf.mxu2 }
 0x131   :  { %v1631_v39 = vpop.f32.mrf.mxu3  ;;  %v1618_v47 = vadd.f32 %v1617_v36, %v1604_v43 }
 0x133   :  { %v1632_v53 = vadd.f32 %v1631_v39, %v1618_v47 }
 0x140   :  { %v1643_v33 = vpop.f32.mrf.mxu0 }
 0x141   :  { %v1657_v17 = vpop.f32.mrf.mxu1  ;;  %v1644_v45 = vadd.f32 %v1643_v33, %v1630_v42 }
 0x143   :  { %v1658_v50 = vadd.f32 %v1657_v17, %v1644_v45 }
 0x148   :  { %v1671_v46 = vpop.f32.mrf.mxu2  ;;  %v1645_v49 = vpop.f32.mrf.mxu0 }
 0x149   :  { %v1659_v51 = vpop.f32.mrf.mxu1  ;;  %v1685_v52 = vpop.f32.mrf.mxu3  ;;  %v1672_v41 = vadd.f32 %v1671_v46, %v1658_v50  ;;  %v1646_v54 = vadd.f32 %v1645_v49, %v1632_v53 }
 0x14b   :  { %v1686_v55 = vadd.f32 %v1685_v52, %v1672_v41  ;;  %v1660_v60 = vadd.f32 %v1659_v51, %v1646_v54 }
 0x150   :  { %v1673_v25 = vpop.f32.mrf.mxu2 }
 0x151   :  { %v1674_v57 = vadd.f32 %v1673_v25, %v1660_v60  ;;  %v1687_v37 = vpop.f32.mrf.mxu3 }
 0x153   :  { %v1688_v35 = vadd.f32 %v1687_v37, %v1674_v57 }
 0x160   :  { %v1699_v8 = vpop.f32.mrf.mxu0 }
 0x161   :  { %v1700_v56 = vadd.f32 %v1699_v8, %v1686_v55  ;;  %v1713_v48 = vpop.f32.mrf.mxu1 }
 0x163   :  { %v1714_v30 = vadd.f32 %v1713_v48, %v1700_v56 }
 0x165   :  { %1730 = vst [vmem:[%s4315_s5] sm:$0xff] %v1714_v30  ;;  %v1720_v58 = vmul.f32 1.442695, %v1714_v30 }
 0x167   :  { %2858 = vpow2.f32 %v1720_v58 }
 0x168   :  { %v1701_v59 = vpop.f32.mrf.mxu0 }
 0x169   :  { %v1702_v61 = vadd.f32 %v1701_v59, %v1688_v35  ;;  %v1715_v2 = vpop.f32.mrf.mxu1 }
 0x16b   :  { %v1716_v62 = vadd.f32 %v1715_v2, %v1702_v61 }
 0x16d   :  { %v1722_v63 = vmul.f32 1.442695, %v1716_v62  ;;  %1731 = vst [vmem:[%s4315_s5 + $0x8] sm:$0xff] %v1716_v62  ;;  %v2859_v0 = vpop.eup %2858 }
 0x16e   :  { %v1724_v5 = vmul.f32 %v2859_v0, %v1718_v1 }
 0x16f   :  { %2860 = vpow2.f32 %v1722_v63 }
 0x170   :  { %v1726_v9 = vadd.f32 %v1724_v5, %v4281_v4 }
 0x175   :  { %v2861_v6 = vpop.eup %2860 }
 0x176   :  { %v1725_v7 = vmul.f32 %v2861_v6, %v1719_v3 }
 0x178   :  { %v1727_v11 = vadd.f32 %v1725_v7, %v4287_v10 }
 0x17a   :  { %v2856_v12 = vpack.c.bf16 %v1727_v11, %v1726_v9 }
 0x17c   :  { %2857 = vst [vmem:[%s4317_s6] sm:$0xff] %v2856_v12  }

// kernel: vae_forward.11
= control target key start
LH: loop header
LB: loop body
LE: loop exit
PB: predicated region body
PF: predicated region fallthrough
CT: control target
= control target key end

     0   :  { %s2141_s1 = inlined_call_operand.vmem [shape: bf16[128,1664], index: 1, kind: input, shape index: {}]   ;;  %s2142_s0 = inlined_call_operand.vmem [shape: bf16[16,128], index: 0, kind: input, shape index: {}]   ;;  %s2143_s2 = inlined_call_operand.vmem [shape: f32[1,1664], index: 2, kind: input, shape index: {}]   ;;  %s2144_s3 = inlined_call_operand.vmem [shape: bf16[16,1664], index: 3, kind: output, shape index: {}]  }
   0x1   :  { %v1276_v0 = vld [vmem:[%s2141_s1 + $0x2d8] sm:$0xf]  ;;  %v1424_v1 = vld [vmem:[%s2141_s1 + $0x308] sm:$0xf0]  ;;  %v1224_v2 = vld [vmem:[%s2141_s1 + $0x270] sm:$0xf] }
   0x2   :  { %v1277_v3 = vor.u32 %v1424_v1, %v1276_v0  ;;  %v1411_v4 = vld [vmem:[%s2141_s1 + $0x2a0] sm:$0xf0]  ;;  %v1418_v5 = vld [vmem:[%s2141_s1 + $0x2dc] sm:$0xf]  ;;  %v1278_v6 = vld [vmem:[%s2141_s1 + $0x30c] sm:$0xf0] }
   0x3   :  { %v1281_v7 = vor.u32 %v1418_v5, %v1278_v6  ;;  %v1405_v8 = vld [vmem:[%s2141_s1 + $0x274] sm:$0xf]  ;;  %v1225_v9 = vor.u32 %v1411_v4, %v1224_v2  ;;  %v1172_v10 = vld [vmem:[%s2141_s1 + $0x208] sm:$0xf]  ;;  %v1398_v11 = vld [vmem:[%s2141_s1 + $0x238] sm:$0xf0] }
   0x4   :  { %692 = vmatpush.bf16.msra.mxu0 %v1277_v3  ;;  %v1226_v12 = vld [vmem:[%s2141_s1 + $0x2a4] sm:$0xf0]  ;;  %v1392_v14 = vld [vmem:[%s2141_s1 + $0x20c] sm:$0xf]  ;;  %v1174_v15 = vld [vmem:[%s2141_s1 + $0x23c] sm:$0xf0]  ;;  %v1173_v22 = vor.u32 %v1398_v11, %v1172_v10 }
   0x5   :  { %706 = vmatpush.bf16.msra.mxu1 %v1281_v7  ;;  %v1229_v13 = vor.u32 %v1405_v8, %v1226_v12  ;;  %v1284_v16 = vld [vmem:[%s2141_s1 + $0x2e0] sm:$0xf]  ;;  %v1425_v17 = vld [vmem:[%s2141_s1 + $0x310] sm:$0xf0]  ;;  %v1419_v18 = vld [vmem:[%s2141_s1 + $0x2e4] sm:$0xf]  ;;  %v1177_v27 = vor.u32 %v1392_v14, %v1174_v15 }
   0x6   :  { %v1286_v19 = vld [vmem:[%s2141_s1 + $0x314] sm:$0xf0]  ;;  %v1285_v20 = vor.u32 %v1425_v17, %v1284_v16  ;;  %v1120_v23 = vld [vmem:[%s2141_s1 + $0x1a0] sm:$0xf]  ;;  %v1412_v25 = vld [vmem:[%s2141_s1 + $0x2a8] sm:$0xf0] }
   0x7   :  { %v1289_v21 = vor.u32 %v1419_v18, %v1286_v19  ;;  %v1232_v24 = vld [vmem:[%s2141_s1 + $0x278] sm:$0xf]  ;;  %v1385_v26 = vld [vmem:[%s2141_s1 + $0x1d0] sm:$0xf0]  ;;  %v1406_v29 = vld [vmem:[%s2141_s1 + $0x27c] sm:$0xf] }
   0x8   :  { %693 = vmatpush.bf16.msra.mxu0 %v1225_v9  ;;  %720 = vmatpush.bf16.msra.mxu2 %v1285_v20  ;;  %v1233_v28 = vor.u32 %v1412_v25, %v1232_v24  ;;  %v1234_v30 = vld [vmem:[%s2141_s1 + $0x2ac] sm:$0xf0]  ;;  %v1379_v31 = vld [vmem:[%s2141_s1 + $0x1a4] sm:$0xf]  ;;  %v1122_v32 = vld [vmem:[%s2141_s1 + $0x1d4] sm:$0xf0]  ;;  %v1121_v37 = vor.u32 %v1385_v26, %v1120_v23 }
   0x9   :  { %707 = vmatpush.bf16.msra.mxu1 %v1229_v13  ;;  %734 = vmatpush.bf16.msra.mxu3 %v1289_v21  ;;  %v1237_v33 = vor.u32 %v1406_v29, %v1234_v30  ;;  %v1180_v34 = vld [vmem:[%s2141_s1 + $0x210] sm:$0xf]  ;;  %v1399_v35 = vld [vmem:[%s2141_s1 + $0x240] sm:$0xf0]  ;;  %v1393_v36 = vld [vmem:[%s2141_s1 + $0x214] sm:$0xf]  ;;  %v1125_v41 = vor.u32 %v1379_v31, %v1122_v32 }
   0xa   :  { %v1182_v38 = vld [vmem:[%s2141_s1 + $0x244] sm:$0xf0]  ;;  %v1068_v39 = vld [vmem:[%s2141_s1 + $0x138] sm:$0xf]  ;;  %v1372_v40 = vld [vmem:[%s2141_s1 + $0x168] sm:$0xf0]  ;;  %v1181_v43 = vor.u32 %v1399_v35, %v1180_v34 }
   0xb   :  { %v1366_v42 = vld [vmem:[%s2141_s1 + $0x13c] sm:$0xf]  ;;  %v1070_v44 = vld [vmem:[%s2141_s1 + $0x16c] sm:$0xf0]  ;;  %v1185_v45 = vor.u32 %v1393_v36, %v1182_v38  ;;  %v1128_v46 = vld [vmem:[%s2141_s1 + $0x1a8] sm:$0xf]  ;;  %v1069_v50 = vor.u32 %v1372_v40, %v1068_v39 }
   0xc   :  { %694 = vmatpush.bf16.msra.mxu0 %v1173_v22  ;;  %721 = vmatpush.bf16.msra.mxu2 %v1233_v28  ;;  %v1386_v47 = vld [vmem:[%s2141_s1 + $0x1d8] sm:$0xf0]  ;;  %v1380_v48 = vld [vmem:[%s2141_s1 + $0x1ac] sm:$0xf]  ;;  %v1130_v49 = vld [vmem:[%s2141_s1 + $0x1dc] sm:$0xf0]  ;;  %v1073_v53 = vor.u32 %v1366_v42, %v1070_v44 }
   0xd   :  { %708 = vmatpush.bf16.msra.mxu1 %v1177_v27  ;;  %735 = vmatpush.bf16.msra.mxu3 %v1237_v33  ;;  %v1016_v51 = vld [vmem:[%s2141_s1 + $0xd0] sm:$0xf]  ;;  %v1359_v52 = vld [vmem:[%s2141_s1 + $0x100] sm:$0xf0]  ;;  %v1353_v54 = vld [vmem:[%s2141_s1 + $0xd4] sm:$0xf]  ;;  %v1129_v55 = vor.u32 %v1386_v47, %v1128_v46  ;;  %v1133_v57 = vor.u32 %v1380_v48, %v1130_v49 }
   0xe   :  { %v1018_v56 = vld [vmem:[%s2141_s1 + $0x104] sm:$0xf0]  ;;  %v1076_v58 = vld [vmem:[%s2141_s1 + $0x140] sm:$0xf]  ;;  %v1373_v59 = vld [vmem:[%s2141_s1 + $0x170] sm:$0xf0]  ;;  %v1017_v62 = vor.u32 %v1359_v52, %v1016_v51 }
   0xf   :  { %v1367_v60 = vld [vmem:[%s2141_s1 + $0x144] sm:$0xf]  ;;  %v1078_v61 = vld [vmem:[%s2141_s1 + $0x174] sm:$0xf0]  ;;  %v964_v63 = vld [vmem:[%s2141_s1 + $0x68] sm:$0xf]  ;;  %v1021_v1 = vor.u32 %v1353_v54, %v1018_v56  ;;  %v1077_v3 = vor.u32 %v1373_v59, %v1076_v58 }
  0x10   :  { %695 = vmatpush.bf16.msra.mxu0 %v1121_v37  ;;  %722 = vmatpush.bf16.msra.mxu2 %v1181_v43  ;;  %v1346_v0 = vld [vmem:[%s2141_s1 + $0x98] sm:$0xf0]  ;;  %v1340_v2 = vld [vmem:[%s2141_s1 + $0x6c] sm:$0xf]  ;;  %v966_v4 = vld [vmem:[%s2141_s1 + $0x9c] sm:$0xf0]  ;;  %v1081_v5 = vor.u32 %v1367_v60, %v1078_v61 }
  0x11   :  { %709 = vmatpush.bf16.msra.mxu1 %v1125_v41  ;;  %736 = vmatpush.bf16.msra.mxu3 %v1185_v45  ;;  %v1024_v6 = vld [vmem:[%s2141_s1 + $0xd8] sm:$0xf]  ;;  %v1360_v7 = vld [vmem:[%s2141_s1 + $0x108] sm:$0xf0]  ;;  %v1354_v8 = vld [vmem:[%s2141_s1 + $0xdc] sm:$0xf]  ;;  %v965_v10 = vor.u32 %v1346_v0, %v964_v63  ;;  %v969_v13 = vor.u32 %v1340_v2, %v966_v4 }
  0x12   :  { %v1026_v9 = vld [vmem:[%s2141_s1 + $0x10c] sm:$0xf0]  ;;  %v912_v11 = vld [vmem:[%s2141_s1] sm:$0xf]  ;;  %v1333_v12 = vld [vmem:[%s2141_s1 + $0x30] sm:$0xf0]  ;;  %v1025_v16 = vor.u32 %v1360_v7, %v1024_v6 }
  0x13   :  { %v1292_v14 = vld [vmem:[%s2141_s1 + $0x2e8] sm:$0xf]  ;;  %v1426_v15 = vld [vmem:[%s2141_s1 + $0x318] sm:$0xf0]  ;;  %v1327_v17 = vld [vmem:[%s2141_s1 + $0x4] sm:$0xf]  ;;  %v1029_v20 = vor.u32 %v1354_v8, %v1026_v9  ;;  %v913_v24 = vor.u32 %v1333_v12, %v912_v11 }
  0x14   :  { %696 = vmatpush.bf16.msra.mxu0 %v1069_v50  ;;  %723 = vmatpush.bf16.msra.mxu2 %v1129_v55  ;;  %v914_v18 = vld [vmem:[%s2141_s1 + $0x34] sm:$0xf0]  ;;  %v1420_v19 = vld [vmem:[%s2141_s1 + $0x2ec] sm:$0xf]  ;;  %v1294_v21 = vld [vmem:[%s2141_s1 + $0x31c] sm:$0xf0]  ;;  %v1293_v27 = vor.u32 %v1426_v15, %v1292_v14 }
  0x15   :  { %710 = vmatpush.bf16.msra.mxu1 %v1073_v53  ;;  %737 = vmatpush.bf16.msra.mxu3 %v1133_v57  ;;  %v972_v22 = vld [vmem:[%s2141_s1 + $0x70] sm:$0xf]  ;;  %v1347_v23 = vld [vmem:[%s2141_s1 + $0xa0] sm:$0xf0]  ;;  %v1341_v25 = vld [vmem:[%s2141_s1 + $0x74] sm:$0xf]  ;;  %v917_v28 = vor.u32 %v1327_v17, %v914_v18  ;;  %v1297_v31 = vor.u32 %v1420_v19, %v1294_v21 }
  0x16   :  { %v974_v26 = vld [vmem:[%s2141_s1 + $0xa4] sm:$0xf0]  ;;  %v1240_v29 = vld [vmem:[%s2141_s1 + $0x280] sm:$0xf]  ;;  %v1413_v30 = vld [vmem:[%s2141_s1 + $0x2b0] sm:$0xf0]  ;;  %v973_v34 = vor.u32 %v1347_v23, %v972_v22 }
  0x17   :  { %v1407_v32 = vld [vmem:[%s2141_s1 + $0x284] sm:$0xf]  ;;  %v1242_v33 = vld [vmem:[%s2141_s1 + $0x2b4] sm:$0xf0]  ;;  %v920_v35 = vld [vmem:[%s2141_s1 + $0x8] sm:$0xf]  ;;  %v977_v36 = vor.u32 %v1341_v25, %v974_v26  ;;  %v1241_v43 = vor.u32 %v1413_v30, %v1240_v29 }
  0x18   :  { %697 = vmatpush.bf16.msra.mxu0 %v1017_v62  ;;  %724 = vmatpush.bf16.msra.mxu2 %v1077_v3  ;;  %v1334_v37 = vld [vmem:[%s2141_s1 + $0x38] sm:$0xf0]  ;;  %v1328_v38 = vld [vmem:[%s2141_s1 + $0xc] sm:$0xf]  ;;  %v1667_v39 = vld [vmem:[%s2142_s0] sm:$0xff]  ;;  %v1245_v48 = vor.u32 %v1407_v32, %v1242_v33 }
  0x19   :  { %711 = vmatpush.bf16.msra.mxu1 %v1021_v1  ;;  %738 = vmatpush.bf16.msra.mxu3 %v1081_v5  ;;  %v922_v40 = vld [vmem:[%s2141_s1 + $0x3c] sm:$0xf0]  ;;  %v1300_v41 = vld [vmem:[%s2141_s1 + $0x2f0] sm:$0xf]  ;;  %v1427_v42 = vld [vmem:[%s2141_s1 + $0x320] sm:$0xf0]  ;;  %v921_v49 = vor.u32 %v1334_v37, %v920_v35 }
  0x1a   :  { %v1421_v44 = vld [vmem:[%s2141_s1 + $0x2f4] sm:$0xf]  ;;  %v1302_v45 = vld [vmem:[%s2141_s1 + $0x324] sm:$0xf0]  ;;  %v1188_v46 = vld [vmem:[%s2141_s1 + $0x218] sm:$0xf]  ;;  %v925_v52 = vor.u32 %v1328_v38, %v922_v40  ;;  %v1301_v53 = vor.u32 %v1427_v42, %v1300_v41 }
  0x1b   :  { %v1400_v47 = vld [vmem:[%s2141_s1 + $0x248] sm:$0xf0]  ;;  %v1394_v50 = vld [vmem:[%s2141_s1 + $0x21c] sm:$0xf]  ;;  %v1190_v51 = vld [vmem:[%s2141_s1 + $0x24c] sm:$0xf0]  ;;  %v1305_v54 = vor.u32 %v1421_v44, %v1302_v45 }
  0x1c   :  { %698 = vmatpush.bf16.msra.mxu0 %v965_v10  ;;  %725 = vmatpush.bf16.msra.mxu2 %v1025_v16  ;;  %v1248_v55 = vld [vmem:[%s2141_s1 + $0x288] sm:$0xf]  ;;  %v1414_v56 = vld [vmem:[%s2141_s1 + $0x2b8] sm:$0xf0]  ;;  %v1189_v57 = vor.u32 %v1400_v47, %v1188_v46  ;;  %v1408_v58 = vld [vmem:[%s2141_s1 + $0x28c] sm:$0xf]  ;;  %v1193_v62 = vor.u32 %v1394_v50, %v1190_v51 }
  0x1d   :  { %712 = vmatpush.bf16.msra.mxu1 %v969_v13  ;;  %739 = vmatpush.bf16.msra.mxu3 %v1029_v20  ;;  %v1250_v59 = vld [vmem:[%s2141_s1 + $0x2bc] sm:$0xf0]  ;;  %v1136_v60 = vld [vmem:[%s2141_s1 + $0x1b0] sm:$0xf]  ;;  %v1387_v61 = vld [vmem:[%s2141_s1 + $0x1e0] sm:$0xf0]  ;;  %v1249_v1 = vor.u32 %v1414_v56, %v1248_v55 }
  0x1e   :  { %v1381_v63 = vld [vmem:[%s2141_s1 + $0x1b4] sm:$0xf]  ;;  %v1138_v0 = vld [vmem:[%s2141_s1 + $0x1e4] sm:$0xf0]  ;;  %v1253_v2 = vor.u32 %v1408_v58, %v1250_v59  ;;  %v1196_v3 = vld [vmem:[%s2141_s1 + $0x220] sm:$0xf]  ;;  %v1137_v5 = vor.u32 %v1387_v61, %v1136_v60 }
  0x1f   :  { %v1401_v4 = vld [vmem:[%s2141_s1 + $0x250] sm:$0xf0]  ;;  %v1395_v6 = vld [vmem:[%s2141_s1 + $0x224] sm:$0xf]  ;;  %v1198_v7 = vld [vmem:[%s2141_s1 + $0x254] sm:$0xf0]  ;;  %v1141_v10 = vor.u32 %v1381_v63, %v1138_v0 }
  0x20   :  { %699 = vmatpush.bf16.msra.mxu0 %v913_v24  ;;  %726 = vmatpush.bf16.msra.mxu2 %v973_v34  ;;  %v1084_v8 = vld [vmem:[%s2141_s1 + $0x148] sm:$0xf]  ;;  %v1374_v9 = vld [vmem:[%s2141_s1 + $0x178] sm:$0xf0]  ;;  %v1368_v11 = vld [vmem:[%s2141_s1 + $0x14c] sm:$0xf]  ;;  %v1197_v13 = vor.u32 %v1401_v4, %v1196_v3  ;;  %v1201_v14 = vor.u32 %v1395_v6, %v1198_v7 }
  0x21   :  { %713 = vmatpush.bf16.msra.mxu1 %v917_v28  ;;  %740 = vmatpush.bf16.msra.mxu3 %v977_v36  ;;  %v1086_v12 = vld [vmem:[%s2141_s1 + $0x17c] sm:$0xf0]  ;;  %v1144_v15 = vld [vmem:[%s2141_s1 + $0x1b8] sm:$0xf]  ;;  %v1388_v16 = vld [vmem:[%s2141_s1 + $0x1e8] sm:$0xf0]  ;;  %v1085_v17 = vor.u32 %v1374_v9, %v1084_v8 }
  0x22   :  { %v1382_v18 = vld [vmem:[%s2141_s1 + $0x1bc] sm:$0xf]  ;;  %v1146_v19 = vld [vmem:[%s2141_s1 + $0x1ec] sm:$0xf0]  ;;  %v1032_v20 = vld [vmem:[%s2141_s1 + $0xe0] sm:$0xf]  ;;  %v1089_v22 = vor.u32 %v1368_v11, %v1086_v12  ;;  %v1145_v25 = vor.u32 %v1388_v16, %v1144_v15 }
  0x23   :  { %700 = vmatmul.bf16.vlgmr.msra.gmra.mxu0 %v1667_v39  ;;  %v1361_v21 = vld [vmem:[%s2141_s1 + $0x110] sm:$0xf0]  ;;  %v1355_v23 = vld [vmem:[%s2141_s1 + $0xe4] sm:$0xf]  ;;  %v1034_v24 = vld [vmem:[%s2141_s1 + $0x114] sm:$0xf0]  ;;  %v1149_v26 = vor.u32 %v1382_v18, %v1146_v19 }
  0x24   :  { %748 = vmatpush.bf16.msrb.mxu0 %v1293_v27  ;;  %714 = vmatmul.bf16.vlgmr.msra.gmra.mxu1 %v1667_v39  ;;  %v1092_v27 = vld [vmem:[%s2141_s1 + $0x150] sm:$0xf]  ;;  %v1375_v28 = vld [vmem:[%s2141_s1 + $0x180] sm:$0xf0]  ;;  %v1033_v29 = vor.u32 %v1361_v21, %v1032_v20  ;;  %v1369_v30 = vld [vmem:[%s2141_s1 + $0x154] sm:$0xf]  ;;  %v1037_v34 = vor.u32 %v1355_v23, %v1034_v24 }
  0x25   :  { %762 = vmatpush.bf16.msrb.mxu1 %v1297_v31  ;;  %727 = vmatpush.bf16.msra.mxu2 %v921_v49  ;;  %v1094_v31 = vld [vmem:[%s2141_s1 + $0x184] sm:$0xf0]  ;;  %v980_v32 = vld [vmem:[%s2141_s1 + $0x78] sm:$0xf]  ;;  %v1348_v33 = vld [vmem:[%s2141_s1 + $0xa8] sm:$0xf0]  ;;  %v1093_v37 = vor.u32 %v1375_v28, %v1092_v27 }
  0x26   :  { %741 = vmatpush.bf16.msra.mxu3 %v925_v52  ;;  %v1342_v35 = vld [vmem:[%s2141_s1 + $0x7c] sm:$0xf]  ;;  %v982_v36 = vld [vmem:[%s2141_s1 + $0xac] sm:$0xf0]  ;;  %v1097_v38 = vor.u32 %v1369_v30, %v1094_v31  ;;  %v1040_v40 = vld [vmem:[%s2141_s1 + $0xe8] sm:$0xf]  ;;  %v981_v42 = vor.u32 %v1348_v33, %v980_v32 }
  0x27   :  { %v1362_v41 = vld [vmem:[%s2141_s1 + $0x118] sm:$0xf0]  ;;  %v1356_v44 = vld [vmem:[%s2141_s1 + $0xec] sm:$0xf]  ;;  %v1042_v45 = vld [vmem:[%s2141_s1 + $0x11c] sm:$0xf0]  ;;  %v985_v47 = vor.u32 %v1342_v35, %v982_v36 }
  0x28   :  { %749 = vmatpush.bf16.msrb.mxu0 %v1241_v43  ;;  %728 = vmatmul.bf16.vlgmr.msra.gmra.mxu2 %v1667_v39  ;;  %v928_v43 = vld [vmem:[%s2141_s1 + $0x10] sm:$0xf]  ;;  %v1335_v46 = vld [vmem:[%s2141_s1 + $0x40] sm:$0xf0]  ;;  %v1428_v49 = vld [vmem:[%s2141_s1 + $0x328] sm:$0xf0]  ;;  %v1045_v55 = vor.u32 %v1356_v44, %v1042_v45 }
  0x29   :  { %763 = vmatpush.bf16.msrb.mxu1 %v1245_v48  ;;  %776 = vmatpush.bf16.msrb.mxu2 %v1301_v53  ;;  %v1308_v48 = vld [vmem:[%s2141_s1 + $0x2f8] sm:$0xf]  ;;  %v1329_v50 = vld [vmem:[%s2141_s1 + $0x14] sm:$0xf]  ;;  %v930_v51 = vld [vmem:[%s2141_s1 + $0x44] sm:$0xf0]  ;;  %v1041_v53 = vor.u32 %v1362_v41, %v1040_v40  ;;  %v929_v58 = vor.u32 %v1335_v46, %v928_v43 }
  0x2a   :  { %790 = vmatpush.bf16.msrb.mxu3 %v1305_v54  ;;  %v1422_v52 = vld [vmem:[%s2141_s1 + $0x2fc] sm:$0xf]  ;;  %v1310_v54 = vld [vmem:[%s2141_s1 + $0x32c] sm:$0xf0]  ;;  %v988_v56 = vld [vmem:[%s2141_s1 + $0x80] sm:$0xf]  ;;  %v1309_v61 = vor.u32 %v1428_v49, %v1308_v48 }
  0x2b   :  { %742 = vmatmul.bf16.vlgmr.msra.gmra.mxu3 %v1667_v39  ;;  %v1343_v59 = vld [vmem:[%s2141_s1 + $0x84] sm:$0xf]  ;;  %v990_v60 = vld [vmem:[%s2141_s1 + $0xb4] sm:$0xf0]  ;;  %v1256_v63 = vld [vmem:[%s2141_s1 + $0x290] sm:$0xf] }
  0x2c   :  { %750 = vmatpush.bf16.msrb.mxu0 %v1189_v57  ;;  %v1349_v57 = vld [vmem:[%s2141_s1 + $0xb0] sm:$0xf0]  ;;  %v1415_v0 = vld [vmem:[%s2141_s1 + $0x2c0] sm:$0xf0]  ;;  %v1258_v3 = vld [vmem:[%s2141_s1 + $0x2c4] sm:$0xf0] }
  0x2d   :  { %764 = vmatpush.bf16.msrb.mxu1 %v1193_v62  ;;  %777 = vmatpush.bf16.msrb.mxu2 %v1249_v1  ;;  %v933_v62 = vor.u32 %v1329_v50, %v930_v51  ;;  %v1313_v1 = vor.u32 %v1422_v52, %v1310_v54  ;;  %v989_v4 = vor.u32 %v1349_v57, %v988_v56  ;;  %v936_v6 = vld [vmem:[%s2141_s1 + $0x18] sm:$0xf]  ;;  %v1336_v7 = vld [vmem:[%s2141_s1 + $0x48] sm:$0xf0]  ;;  %v1330_v8 = vld [vmem:[%s2141_s1 + $0x1c] sm:$0xf] }
  0x2e   :  { %791 = vmatpush.bf16.msrb.mxu3 %v1253_v2  ;;  %v1409_v2 = vld [vmem:[%s2141_s1 + $0x294] sm:$0xf]  ;;  %v938_v9 = vld [vmem:[%s2141_s1 + $0x4c] sm:$0xf0]  ;;  %v1257_v12 = vor.u32 %v1415_v0, %v1256_v63  ;;  %v1204_v15 = vld [vmem:[%s2141_s1 + $0x228] sm:$0xf]  ;;  %v937_v18 = vor.u32 %v1336_v7, %v936_v6 }
  0x2f   :  { %v1429_v11 = vld [vmem:[%s2141_s1 + $0x330] sm:$0xf0]  ;;  %v1402_v16 = vld [vmem:[%s2141_s1 + $0x258] sm:$0xf0]  ;;  %v1396_v19 = vld [vmem:[%s2141_s1 + $0x22c] sm:$0xf]  ;;  %v941_v21 = vor.u32 %v1330_v8, %v938_v9 }
  0x30   :  { %751 = vmatpush.bf16.msrb.mxu0 %v1137_v5  ;;  %v993_v5 = vor.u32 %v1343_v59, %v990_v60  ;;  %v1206_v20 = vld [vmem:[%s2141_s1 + $0x25c] sm:$0xf0]  ;;  %v1264_v24 = vld [vmem:[%s2141_s1 + $0x298] sm:$0xf]  ;;  %v1410_v27 = vld [vmem:[%s2141_s1 + $0x29c] sm:$0xf] }
  0x31   :  { %765 = vmatpush.bf16.msrb.mxu1 %v1141_v10  ;;  %778 = vmatpush.bf16.msrb.mxu2 %v1197_v13  ;;  %v1316_v10 = vld [vmem:[%s2141_s1 + $0x300] sm:$0xf]  ;;  %v1423_v13 = vld [vmem:[%s2141_s1 + $0x304] sm:$0xf]  ;;  %v1266_v28 = vld [vmem:[%s2141_s1 + $0x2cc] sm:$0xf0]  ;;  %v1209_v31 = vor.u32 %v1396_v19, %v1206_v20 }
  0x32   :  { %792 = vmatpush.bf16.msrb.mxu3 %v1201_v14  ;;  %v1318_v14 = vld [vmem:[%s2141_s1 + $0x334] sm:$0xf0]  ;;  %v1389_v30 = vld [vmem:[%s2141_s1 + $0x1f0] sm:$0xf0]  ;;  %v1383_v32 = vld [vmem:[%s2141_s1 + $0x1c4] sm:$0xf]  ;;  %v1269_v35 = vor.u32 %v1410_v27, %v1266_v28 }
  0x33   :  { %v1321_v23 = vor.u32 %v1423_v13, %v1318_v14  ;;  %v1154_v33 = vld [vmem:[%s2141_s1 + $0x1f4] sm:$0xf0]  ;;  %v1212_v36 = vld [vmem:[%s2141_s1 + $0x230] sm:$0xf]  ;;  %v1397_v40 = vld [vmem:[%s2141_s1 + $0x234] sm:$0xf] }
  0x34   :  { %752 = vmatpush.bf16.msrb.mxu0 %v1085_v17  ;;  %v1261_v17 = vor.u32 %v1409_v2, %v1258_v3  ;;  %v1214_v41 = vld [vmem:[%s2141_s1 + $0x264] sm:$0xf0]  ;;  %v1376_v43 = vld [vmem:[%s2141_s1 + $0x188] sm:$0xf0]  ;;  %v1157_v44 = vor.u32 %v1383_v32, %v1154_v33  ;;  %v1370_v45 = vld [vmem:[%s2141_s1 + $0x15c] sm:$0xf] }
  0x35   :  { %766 = vmatpush.bf16.msrb.mxu1 %v1089_v22  ;;  %779 = vmatpush.bf16.msrb.mxu2 %v1145_v25  ;;  %v1317_v22 = vor.u32 %v1429_v11, %v1316_v10  ;;  %v1416_v25 = vld [vmem:[%s2141_s1 + $0x2c8] sm:$0xf0]  ;;  %v1102_v46 = vld [vmem:[%s2141_s1 + $0x18c] sm:$0xf0]  ;;  %v1217_v48 = vor.u32 %v1397_v40, %v1214_v41  ;;  %v1160_v49 = vld [vmem:[%s2141_s1 + $0x1c8] sm:$0xf] }
  0x36   :  { %793 = vmatpush.bf16.msrb.mxu3 %v1149_v26  ;;  %v1205_v26 = vor.u32 %v1402_v16, %v1204_v15  ;;  %v1390_v50 = vld [vmem:[%s2141_s1 + $0x1f8] sm:$0xf0]  ;;  %v1384_v52 = vld [vmem:[%s2141_s1 + $0x1cc] sm:$0xf]  ;;  %v1048_v54 = vld [vmem:[%s2141_s1 + $0xf0] sm:$0xf]  ;;  %v1105_v56 = vor.u32 %v1370_v45, %v1102_v46 }
  0x37   :  { %v1357_v57 = vld [vmem:[%s2141_s1 + $0xf4] sm:$0xf]  ;;  %v1161_v59 = vor.u32 %v1390_v50, %v1160_v49  ;;  %v1371_v0 = vld [vmem:[%s2141_s1 + $0x164] sm:$0xf]  ;;  %v996_v2 = vld [vmem:[%s2141_s1 + $0x88] sm:$0xf] }
  0x38   :  { %753 = vmatpush.bf16.msrb.mxu0 %v1033_v29  ;;  %v1152_v29 = vld [vmem:[%s2141_s1 + $0x1c0] sm:$0xf]  ;;  %v1350_v3 = vld [vmem:[%s2141_s1 + $0xb8] sm:$0xf0]  ;;  %v1056_v9 = vld [vmem:[%s2141_s1 + $0xf8] sm:$0xf] }
  0x39   :  { %767 = vmatpush.bf16.msrb.mxu1 %v1037_v34  ;;  %780 = vmatpush.bf16.msrb.mxu2 %v1093_v37  ;;  %v1265_v34 = vor.u32 %v1416_v25, %v1264_v24  ;;  %v1403_v37 = vld [vmem:[%s2141_s1 + $0x260] sm:$0xf0]  ;;  %v998_v6 = vld [vmem:[%s2141_s1 + $0xbc] sm:$0xf0]  ;;  %v1364_v10 = vld [vmem:[%s2141_s1 + $0x128] sm:$0xf0]  ;;  %v997_v11 = vor.u32 %v1350_v3, %v996_v2 }
  0x3a   :  { %794 = vmatpush.bf16.msrb.mxu3 %v1097_v38  ;;  %v1153_v38 = vor.u32 %v1389_v30, %v1152_v29  ;;  %v1058_v13 = vld [vmem:[%s2141_s1 + $0x12c] sm:$0xf0]  ;;  %v944_v14 = vld [vmem:[%s2141_s1 + $0x20] sm:$0xf]  ;;  %v1337_v15 = vld [vmem:[%s2141_s1 + $0x50] sm:$0xf0] }
  0x3b   :  { %v1331_v19 = vld [vmem:[%s2141_s1 + $0x24] sm:$0xf]  ;;  %v946_v20 = vld [vmem:[%s2141_s1 + $0x54] sm:$0xf0]  ;;  %v945_v25 = vor.u32 %v1337_v15, %v944_v14  ;;  %v1006_v27 = vld [vmem:[%s2141_s1 + $0xc4] sm:$0xf0] }
  0x3c   :  { %754 = vmatpush.bf16.msrb.mxu0 %v981_v42  ;;  %v1100_v42 = vld [vmem:[%s2141_s1 + $0x158] sm:$0xf]  ;;  %v1351_v24 = vld [vmem:[%s2141_s1 + $0xc0] sm:$0xf0]  ;;  %v949_v29 = vor.u32 %v1331_v19, %v946_v20  ;;  %v1272_v30 = vld [vmem:[%s2141_s1 + $0x2a0] sm:$0xf] }
  0x3d   :  { %768 = vmatpush.bf16.msrb.mxu1 %v985_v47  ;;  %781 = vmatpush.bf16.msrb.mxu2 %v1041_v53  ;;  %v1213_v47 = vor.u32 %v1403_v37, %v1212_v36  ;;  %v1101_v51 = vor.u32 %v1376_v43, %v1100_v42  ;;  %v1162_v53 = vld [vmem:[%s2141_s1 + $0x1fc] sm:$0xf0]  ;;  %v1332_v36 = vld [vmem:[%s2141_s1 + $0x2c] sm:$0xf]  ;;  %v1220_v40 = vld [vmem:[%s2141_s1 + $0x238] sm:$0xf] }
  0x3e   :  { %795 = vmatpush.bf16.msrb.mxu3 %v1045_v55  ;;  %v1363_v55 = vld [vmem:[%s2141_s1 + $0x120] sm:$0xf0]  ;;  %v1165_v60 = vor.u32 %v1384_v52, %v1162_v53  ;;  %v954_v37 = vld [vmem:[%s2141_s1 + $0x5c] sm:$0xf0]  ;;  %v1404_v41 = vld [vmem:[%s2141_s1 + $0x268] sm:$0xf0] }
  0x3f   :  { %v1049_v63 = vor.u32 %v1363_v55, %v1048_v54  ;;  %v957_v43 = vor.u32 %v1332_v36, %v954_v37  ;;  %v1168_v45 = vld [vmem:[%s2141_s1 + $0x1d0] sm:$0xf]  ;;  %v1391_v46 = vld [vmem:[%s2141_s1 + $0x200] sm:$0xf0]  ;;  %v1378_v49 = vld [vmem:[%s2141_s1 + $0x198] sm:$0xf0] }
  0x40   :  { %755 = vmatpush.bf16.msrb.mxu0 %v929_v58  ;;  %v1050_v58 = vld [vmem:[%s2141_s1 + $0x124] sm:$0xf0]  ;;  %v1365_v52 = vld [vmem:[%s2141_s1 + $0x130] sm:$0xf0]  ;;  %v1012_v54 = vld [vmem:[%s2141_s1 + $0x98] sm:$0xf] }
  0x41   :  { %769 = vmatpush.bf16.msrb.mxu1 %v933_v62  ;;  %782 = vmatpush.bf16.msrb.mxu2 %v989_v4  ;;  %v1377_v62 = vld [vmem:[%s2141_s1 + $0x190] sm:$0xf0]  ;;  %v1053_v4 = vor.u32 %v1357_v57, %v1050_v58  ;;  %v1352_v55 = vld [vmem:[%s2141_s1 + $0xc8] sm:$0xf0]  ;;  %v960_v57 = vld [vmem:[%s2141_s1 + $0x30] sm:$0xf] }
  0x42   :  { %796 = vmatpush.bf16.msrb.mxu3 %v993_v5  ;;  %v1344_v5 = vld [vmem:[%s2141_s1 + $0x8c] sm:$0xf]  ;;  %v1339_v58 = vld [vmem:[%s2141_s1 + $0x60] sm:$0xf0] }
  0x43   :  { %756 = vmatmul.bf16.vlgmr.msrb.gmra.mxu0 %v1667_v39  ;;  %v1001_v16 = vor.u32 %v1344_v5, %v998_v6 }
  0x44   :  { %804 = vmatpush.bf16.msra.mxu0 %v1309_v61  ;;  %770 = vmatmul.bf16.vlgmr.msrb.gmra.mxu1 %v1667_v39  ;;  %v1108_v61 = vld [vmem:[%s2141_s1 + $0x160] sm:$0xf] }
  0x45   :  { %818 = vmatpush.bf16.msra.mxu1 %v1313_v1  ;;  %783 = vmatpush.bf16.msrb.mxu2 %v937_v18  ;;  %v1110_v1 = vld [vmem:[%s2141_s1 + $0x194] sm:$0xf0]  ;;  %v1109_v7 = vor.u32 %v1377_v62, %v1108_v61  ;;  %v1430_v18 = vld [vmem:[%s2141_s1 + $0x338] sm:$0xf0] }
  0x46   :  { %797 = vmatpush.bf16.msrb.mxu3 %v941_v21  ;;  %v1113_v8 = vor.u32 %v1371_v0, %v1110_v1  ;;  %v1057_v21 = vor.u32 %v1364_v10, %v1056_v9 }
  0x48   :  { %805 = vmatpush.bf16.msra.mxu0 %v1257_v12  ;;  %784 = vmatmul.bf16.vlgmr.msrb.gmra.mxu2 %v1667_v39  ;;  %v1358_v12 = vld [vmem:[%s2141_s1 + $0xfc] sm:$0xf] }
  0x49   :  { %819 = vmatpush.bf16.msra.mxu1 %v1261_v17  ;;  %832 = vmatpush.bf16.msra.mxu2 %v1317_v22  ;;  %v1324_v17 = vld [vmem:[%s2141_s1 + $0x308] sm:$0xf]  ;;  %v1061_v22 = vor.u32 %v1358_v12, %v1058_v13 }
  0x4a   :  { %846 = vmatpush.bf16.msra.mxu3 %v1321_v23  ;;  %v1004_v23 = vld [vmem:[%s2141_s1 + $0x90] sm:$0xf]  ;;  %v1325_v28 = vor.u32 %v1430_v18, %v1324_v17 }
  0x4b   :  { %798 = vmatmul.bf16.vlgmr.msrb.gmra.mxu3 %v1667_v39  ;;  %v1005_v32 = vor.u32 %v1351_v24, %v1004_v23 }
  0x4c   :  { %806 = vmatpush.bf16.msra.mxu0 %v1205_v26  ;;  %v1345_v26 = vld [vmem:[%s2141_s1 + $0x94] sm:$0xf] }
  0x4d   :  { %820 = vmatpush.bf16.msra.mxu1 %v1209_v31  ;;  %833 = vmatpush.bf16.msra.mxu2 %v1265_v34  ;;  %v1417_v31 = vld [vmem:[%s2141_s1 + $0x2d0] sm:$0xf0]  ;;  %v1009_v33 = vor.u32 %v1345_v26, %v1006_v27  ;;  %v952_v34 = vld [vmem:[%s2141_s1 + $0x28] sm:$0xf] }
  0x4e   :  { %847 = vmatpush.bf16.msra.mxu3 %v1269_v35  ;;  %v1338_v35 = vld [vmem:[%s2141_s1 + $0x58] sm:$0xf0] }
  0x4f   :  { %v953_v42 = vor.u32 %v1338_v35, %v952_v34 }
  0x50   :  { %807 = vmatpush.bf16.msra.mxu0 %v1153_v38  ;;  %v1273_v38 = vor.u32 %v1417_v31, %v1272_v30 }
  0x51   :  { %821 = vmatpush.bf16.msra.mxu1 %v1157_v44  ;;  %834 = vmatpush.bf16.msra.mxu2 %v1213_v47  ;;  %v1221_v44 = vor.u32 %v1404_v41, %v1220_v40  ;;  %v1169_v47 = vor.u32 %v1391_v46, %v1168_v45 }
  0x52   :  { %848 = vmatpush.bf16.msra.mxu3 %v1217_v48  ;;  %v1116_v48 = vld [vmem:[%s2141_s1 + $0x168] sm:$0xf] }
  0x53   :  { %v1117_v50 = vor.u32 %v1378_v49, %v1116_v48 }
  0x54   :  { %808 = vmatpush.bf16.msra.mxu0 %v1101_v51  ;;  %v1064_v51 = vld [vmem:[%s2141_s1 + $0x100] sm:$0xf] }
  0x55   :  { %822 = vmatpush.bf16.msra.mxu1 %v1105_v56  ;;  %835 = vmatpush.bf16.msra.mxu2 %v1161_v59  ;;  %v1065_v53 = vor.u32 %v1365_v52, %v1064_v51  ;;  %v1013_v56 = vor.u32 %v1352_v55, %v1012_v54  ;;  %v961_v59 = vor.u32 %v1339_v58, %v960_v57 }
  0x56   :  { %849 = vmatpush.bf16.msra.mxu3 %v1165_v60  ;;  %v128_v60 = vld [vmem:[%s2143_s2] sm:$0xff] }
  0x57   :  { %v132_v61 = vperm.slane %v128_v60, 0  ;;  %v133_v62 = vperm.slane %v128_v60, 1  ;;  %v136_v20 = vperm.slane %v128_v60, 4  ;;  %v138_v30 = vperm.slane %v128_v60, 6 }
  0x58   :  { %809 = vmatpush.bf16.msra.mxu0 %v1049_v63 }
  0x59   :  { %823 = vmatpush.bf16.msra.mxu1 %v1053_v4  ;;  %836 = vmatpush.bf16.msra.mxu2 %v1109_v7  ;;  %v134_v7 = vperm.slane %v128_v60, 2 }
  0x5a   :  { %850 = vmatpush.bf16.msra.mxu3 %v1113_v8  ;;  %v135_v8 = vperm.slane %v128_v60, 3 }
  0x5c   :  { %810 = vmatpush.bf16.msra.mxu0 %v997_v11 }
  0x5d   :  { %824 = vmatpush.bf16.msra.mxu1 %v1001_v16  ;;  %837 = vmatpush.bf16.msra.mxu2 %v1057_v21  ;;  %v137_v21 = vperm.slane %v128_v60, 5 }
  0x5e   :  { %851 = vmatpush.bf16.msra.mxu3 %v1061_v22 }
  0x60   :  { %811 = vmatpush.bf16.msra.mxu0 %v945_v25 }
  0x61   :  { %825 = vmatpush.bf16.msra.mxu1 %v949_v29  ;;  %838 = vmatpush.bf16.msra.mxu2 %v1005_v32  ;;  %v139_v32 = vperm.slane %v128_v60, 7 }
  0x62   :  { %852 = vmatpush.bf16.msra.mxu3 %v1009_v33 }
  0x63   :  { %812 = vmatmul.bf16.vlgmr.msra.gmra.mxu0 %v1667_v39 }
  0x64   :  { %860 = vmatpush.bf16.msrb.mxu0 %v1325_v28  ;;  %826 = vmatmul.bf16.vlgmr.msra.gmra.mxu1 %v1667_v39 }
  0x65   :  { %839 = vmatpush.bf16.msra.mxu2 %v953_v42 }
  0x66   :  { %853 = vmatpush.bf16.msra.mxu3 %v957_v43 }
  0x68   :  { %861 = vmatpush.bf16.msrb.mxu0 %v1273_v38  ;;  %840 = vmatmul.bf16.vlgmr.msra.gmra.mxu2 %v1667_v39 }
  0x69   :  { %854 = vmatmul.bf16.vlgmr.msra.gmra.mxu3 %v1667_v39 }
  0x6c   :  { %862 = vmatpush.bf16.msrb.mxu0 %v1221_v44  ;;  %v129_v44 = vld [vmem:[%s2143_s2 + $0x8] sm:$0x1f] }
  0x6d   :  { %v140_v46 = vperm.slane %v129_v44, 0  ;;  %v143_v58 = vperm.slane %v129_v44, 3 }
  0x70   :  { %863 = vmatpush.bf16.msrb.mxu0 %v1169_v47  ;;  %v141_v47 = vperm.slane %v129_v44, 1 }
  0x74   :  { %864 = vmatpush.bf16.msrb.mxu0 %v1117_v50 }
  0x78   :  { %865 = vmatpush.bf16.msrb.mxu0 %v1065_v53 }
  0x7c   :  { %866 = vmatpush.bf16.msrb.mxu0 %v1013_v56  ;;  %v142_v56 = vperm.slane %v129_v44, 2 }
  0x80   :  { %867 = vmatpush.bf16.msrb.mxu0 %v961_v59 }
  0x83   :  { %868 = vmatmul.bf16.vlgmr.msrb.gmra.mxu0 %v1667_v39 }
  0xa0   :  { %v701_v63 = vpop.f32.mrf.mxu0 }
  0xa1   :  { %v702_v0 = vadd.f32 %v701_v63, %v132_v61  ;;  %v715_v1 = vpop.f32.mrf.mxu1 }
  0xa2   :  { %v716_v2 = vadd.f32 %v715_v1, %v133_v62 }
  0xa4   :  { %v874_v3 = vpack.c.bf16 %v716_v2, %v702_v0 }
  0xa6   :  { %888 = vst [vmem:[%s2144_s3] sm:$0xff] %v874_v3 }
  0xa8   :  { %v703_v4 = vpop.f32.mrf.mxu0 }
  0xa9   :  { %v704_v5 = vadd.f32 %v703_v4, %v132_v61  ;;  %v717_v6 = vpop.f32.mrf.mxu1 }
  0xaa   :  { %v718_v39 = vadd.f32 %v717_v6, %v133_v62  ;;  %v144_v6 = vperm.slane %v129_v44, 4 }
  0xab   :  { %v729_v10 = vpop.f32.mrf.mxu2 }
  0xac   :  { %v881_v9 = vpack.c.bf16 %v718_v39, %v704_v5  ;;  %v730_v11 = vadd.f32 %v729_v10, %v134_v7 }
  0xae   :  { %v743_v12 = vpop.f32.mrf.mxu3  ;;  %895 = vst [vmem:[%s2144_s3 + $0x34] sm:$0xff] %v881_v9 }
  0xaf   :  { %v744_v13 = vadd.f32 %v743_v12, %v135_v8 }
  0xb1   :  { %v875_v14 = vpack.c.bf16 %v744_v13, %v730_v11 }
  0xb3   :  { %889 = vst [vmem:[%s2144_s3 + $0x8] sm:$0xff] %v875_v14  ;;  %v731_v15 = vpop.f32.mrf.mxu2 }
  0xb4   :  { %v732_v16 = vadd.f32 %v731_v15, %v134_v7 }
  0xb6   :  { %v745_v17 = vpop.f32.mrf.mxu3 }
  0xb7   :  { %v746_v18 = vadd.f32 %v745_v17, %v135_v8 }
  0xb9   :  { %v882_v19 = vpack.c.bf16 %v746_v18, %v732_v16 }
  0xbb   :  { %896 = vst [vmem:[%s2144_s3 + $0x3c] sm:$0xff] %v882_v19 }
  0xc0   :  { %v757_v22 = vpop.f32.mrf.mxu0 }
  0xc1   :  { %v758_v23 = vadd.f32 %v757_v22, %v136_v20  ;;  %v771_v24 = vpop.f32.mrf.mxu1 }
  0xc2   :  { %v772_v25 = vadd.f32 %v771_v24, %v137_v21 }
  0xc4   :  { %v876_v26 = vpack.c.bf16 %v772_v25, %v758_v23 }
  0xc6   :  { %890 = vst [vmem:[%s2144_s3 + $0x10] sm:$0xff] %v876_v26 }
  0xc8   :  { %v759_v27 = vpop.f32.mrf.mxu0 }
  0xc9   :  { %v760_v28 = vadd.f32 %v759_v27, %v136_v20  ;;  %v773_v29 = vpop.f32.mrf.mxu1 }
  0xca   :  { %v774_v31 = vadd.f32 %v773_v29, %v137_v21 }
  0xcb   :  { %v785_v34 = vpop.f32.mrf.mxu2 }
  0xcc   :  { %v883_v33 = vpack.c.bf16 %v774_v31, %v760_v28  ;;  %v786_v35 = vadd.f32 %v785_v34, %v138_v30 }
  0xce   :  { %v799_v36 = vpop.f32.mrf.mxu3  ;;  %897 = vst [vmem:[%s2144_s3 + $0x44] sm:$0xff] %v883_v33 }
  0xcf   :  { %v800_v37 = vadd.f32 %v799_v36, %v139_v32 }
  0xd1   :  { %v877_v38 = vpack.c.bf16 %v800_v37, %v786_v35 }
  0xd3   :  { %891 = vst [vmem:[%s2144_s3 + $0x18] sm:$0xff] %v877_v38  ;;  %v787_v40 = vpop.f32.mrf.mxu2 }
  0xd4   :  { %v788_v41 = vadd.f32 %v787_v40, %v138_v30 }
  0xd6   :  { %v801_v42 = vpop.f32.mrf.mxu3 }
  0xd7   :  { %v802_v43 = vadd.f32 %v801_v42, %v139_v32 }
  0xd9   :  { %v884_v45 = vpack.c.bf16 %v802_v43, %v788_v41 }
  0xdb   :  { %898 = vst [vmem:[%s2144_s3 + $0x4c] sm:$0xff] %v884_v45 }
  0xe0   :  { %v813_v48 = vpop.f32.mrf.mxu0 }
  0xe1   :  { %v814_v49 = vadd.f32 %v813_v48, %v140_v46  ;;  %v827_v50 = vpop.f32.mrf.mxu1 }
  0xe2   :  { %v828_v51 = vadd.f32 %v827_v50, %v141_v47 }
  0xe4   :  { %v878_v52 = vpack.c.bf16 %v828_v51, %v814_v49 }
  0xe6   :  { %892 = vst [vmem:[%s2144_s3 + $0x20] sm:$0xff] %v878_v52 }
  0xe8   :  { %v815_v53 = vpop.f32.mrf.mxu0 }
  0xe9   :  { %v816_v54 = vadd.f32 %v815_v53, %v140_v46  ;;  %v829_v55 = vpop.f32.mrf.mxu1 }
  0xea   :  { %v830_v57 = vadd.f32 %v829_v55, %v141_v47 }
  0xeb   :  { %v841_v60 = vpop.f32.mrf.mxu2 }
  0xec   :  { %v885_v59 = vpack.c.bf16 %v830_v57, %v816_v54  ;;  %v842_v61 = vadd.f32 %v841_v60, %v142_v56  ;;  %v855_v62 = vpop.f32.mrf.mxu3 }
  0xed   :  { %v856_v63 = vadd.f32 %v855_v62, %v143_v58 }
  0xee   :  { %899 = vst [vmem:[%s2144_s3 + $0x54] sm:$0xff] %v885_v59 }
  0xef   :  { %v879_v0 = vpack.c.bf16 %v856_v63, %v842_v61 }
  0xf1   :  { %893 = vst [vmem:[%s2144_s3 + $0x28] sm:$0xff] %v879_v0 }
  0xf3   :  { %v843_v1 = vpop.f32.mrf.mxu2 }
  0xf4   :  { %v844_v2 = vadd.f32 %v843_v1, %v142_v56  ;;  %v857_v3 = vpop.f32.mrf.mxu3 }
  0xf5   :  { %v858_v4 = vadd.f32 %v857_v3, %v143_v58 }
  0xf7   :  { %v886_v5 = vpack.c.bf16 %v858_v4, %v844_v2 }
  0xf9   :  { %900 = vst [vmem:[%s2144_s3 + $0x5c] sm:$0xff] %v886_v5 }
 0x100   :  { %v869_v7 = vpop.f32.mrf.mxu0 }
 0x101   :  { %v870_v39 = vadd.f32 %v869_v7, %v144_v6 }
 0x103   :  { %v880_v8 = vpack.c.bf16 %v870_v39, %v870_v39 }
 0x105   :  { %894 = vst [vmem:[%s2144_s3 + $0x30] sm:$0xf] %v880_v8 }
 0x108   :  { %v871_v9 = vpop.f32.mrf.mxu0 }
 0x109   :  { %v872_v10 = vadd.f32 %v871_v9, %v144_v6 }
 0x10b   :  { %v887_v11 = vpack.c.bf16 %v872_v10, %v872_v10 }
 0x10d   :  { %901 = vst [vmem:[%s2144_s3 + $0x64] sm:$0xf] %v887_v11 }

// kernel: tile.13
= control target key start
LH: loop header
LB: loop body
LE: loop exit
PB: predicated region body
PF: predicated region fallthrough
CT: control target
= control target key end

     0   :  { %s22_s0 = inlined_call_operand.vmem [shape: f32[16], index: 0, kind: input, shape index: {}]   ;;  %s23_s1 = inlined_call_operand.vmem [shape: f32[4,16], index: 1, kind: output, shape index: {}]  }
   0x1   :  { %v4_v0 = vld [vmem:[%s22_s0] ss:$0 sm:$0xff] }
   0x2   :  { %5 = vst [vmem:[%s23_s1] sm:$0xf] %v4_v0 }

// kernel: tile.14
= control target key start
LH: loop header
LB: loop body
LE: loop exit
PB: predicated region body
PF: predicated region fallthrough
CT: control target
= control target key end

     0   :  { %s37_s8 = smov 16   ;;  %s38_s9 = smov 32   ;;  %vm7_vm0 = vcmask 130048   ;;  %vm13_vm1 = vcmask 523648   ;;  %vm19_vm2 = vcmask 392448   ;;  %vm25_vm3 = vcmask 261248   ;;  %s55_s0 = inlined_call_operand.vmem [shape: f32[4,16], index: 0, kind: input, shape index: {}]   ;;  %s56_s1 = inlined_call_operand.vmem [shape: f32[1,64], index: 1, kind: output, shape index: {}]  }
   0x1   :  { %v4_v0 = vld [vmem:[%s55_s0] sm:$0xf]  ;;  %s36_s0 = smov 48  }
   0x2   :  { %5 = vst [vmem:[#allocation1] sm:$0xf] %v4_v0 }
   0x9   :  { %v10_v1 = vld [vmem:[#allocation1 + $0x3] sm:$0x1]   ;;  %v22_v2 = vld [vmem:[#allocation1 + $0x1] sm:$0x1]   ;;  %v16_v3 = vld [vmem:[#allocation1 + $0x2] sm:$0x1]  }
   0xa   :  { %11 = vrot.lane.b32.xlu0 %v10_v1, %s36_s0  ;;  %23 = vrot.lane.b32.xlu1 %v22_v2, %s37_s8  ;;  %v6_v4 = vld [vmem:[#allocation1] sm:$0x1]  }
   0xb   :  { %8 = vst.msk [vmem:[#allocation0] sm:$0x1] %vm7_vm0, %v6_v4  }
  0x12   :  { %17 = vrot.lane.b32.xlu0 %v16_v3, %s38_s9 }
  0x7c   :  { %v12_v5 = vpop.permute.xlu0 %11   ;;  %v24_v6 = vpop.permute.xlu1 %23  }
  0x7d   :  { %14 = vst.msk [vmem:[#allocation0] sm:$0x1] %vm13_vm1, %v12_v5  }
  0x84   :  { %v18_v7 = vpop.permute.xlu0 %17  }
  0x85   :  { %20 = vst.msk [vmem:[#allocation0] sm:$0x1] %vm19_vm2, %v18_v7  }
  0x86   :  { %26 = vst.msk [vmem:[#allocation0] sm:$0x1] %vm25_vm3, %v24_v6  }
  0x8d   :  { %v29_v8 = vld [vmem:[#allocation0] sm:$0x1] }
  0x8e   :  { %32 = vst [vmem:[%s56_s1] sm:$0x1] %v29_v8 }

// kernel: vae_forward.12
= control target key start
LH: loop header
LB: loop body
LE: loop exit
PB: predicated region body
PF: predicated region fallthrough
CT: control target
= control target key end

     0   :  { %s1117_s1 = inlined_call_operand.vmem [shape: bf16[384,128], index: 1, kind: input, shape index: {}]   ;;  %s1118_s0 = inlined_call_operand.vmem [shape: bf16[112,384], index: 0, kind: input, shape index: {}]   ;;  %s1119_s2 = inlined_call_operand.vmem [shape: f32[1,128], index: 2, kind: input, shape index: {}]   ;;  %s1120_s3 = inlined_call_operand.vmem [shape: bf16[112,128], index: 3, kind: output, shape index: {}]  }
   0x1   :  { %v736_v0 = vld [vmem:[%s1117_s1 + $0x38] sm:$0xff]  ;;  %v735_v3 = vld [vmem:[%s1117_s1 + $0x30] sm:$0xff]  ;;  %v734_v6 = vld [vmem:[%s1117_s1 + $0x28] sm:$0xff] }
   0x2   :  { %v845_v1 = vld [vmem:[%s1117_s1 + $0x78] sm:$0xff]  ;;  %350 = vmatpush.bf16.msra.mxu0 %v736_v0  ;;  %794 = vmatpush.bf16.msra.mxu3 %v736_v0  ;;  %v860_v4 = vld [vmem:[%s1117_s1 + $0x70] sm:$0xff]  ;;  %v742_v7 = vld [vmem:[%s1117_s1 + $0x68] sm:$0xff] }
   0x3   :  { %v850_v2 = vld [vmem:[%s1117_s1 + $0xb8] sm:$0xff]  ;;  %802 = vmatpush.bf16.msra.mxu1 %v845_v1  ;;  %v865_v5 = vld [vmem:[%s1117_s1 + $0xb0] sm:$0xff]  ;;  %v878_v8 = vld [vmem:[%s1117_s1 + $0xa8] sm:$0xff] }
   0x4   :  { %810 = vmatpush.bf16.msra.mxu2 %v850_v2  ;;  %v733_v9 = vld [vmem:[%s1117_s1 + $0x20] sm:$0xff]  ;;  %v732_v12 = vld [vmem:[%s1117_s1 + $0x18] sm:$0xff]  ;;  %v731_v15 = vld [vmem:[%s1117_s1 + $0x10] sm:$0xff] }
   0x5   :  { %v741_v10 = vld [vmem:[%s1117_s1 + $0x60] sm:$0xff]  ;;  %v740_v13 = vld [vmem:[%s1117_s1 + $0x58] sm:$0xff]  ;;  %v739_v16 = vld [vmem:[%s1117_s1 + $0x50] sm:$0xff] }
   0x6   :  { %351 = vmatpush.bf16.msra.mxu0 %v735_v3  ;;  %795 = vmatpush.bf16.msra.mxu3 %v735_v3  ;;  %v890_v11 = vld [vmem:[%s1117_s1 + $0xa0] sm:$0xff]  ;;  %v902_v14 = vld [vmem:[%s1117_s1 + $0x98] sm:$0xff]  ;;  %v914_v17 = vld [vmem:[%s1117_s1 + $0x90] sm:$0xff] }
   0x7   :  { %803 = vmatpush.bf16.msra.mxu1 %v860_v4  ;;  %v730_v18 = vld [vmem:[%s1117_s1 + $0x8] sm:$0xff]  ;;  %v729_v21 = vld [vmem:[%s1117_s1] sm:$0xff]  ;;  %v542_v24 = vld [vmem:[%s1118_s0 + $0x18] sm:$0xf] }
   0x8   :  { %811 = vmatpush.bf16.msra.mxu2 %v865_v5  ;;  %v738_v19 = vld [vmem:[%s1117_s1 + $0x48] sm:$0xff]  ;;  %v737_v22 = vld [vmem:[%s1117_s1 + $0x40] sm:$0xff]  ;;  %v711_v26 = vld [vmem:[%s1118_s0 + $0x1c] sm:$0xf] }
   0x9   :  { %v926_v20 = vld [vmem:[%s1117_s1 + $0x88] sm:$0xff]  ;;  %v937_v23 = vld [vmem:[%s1117_s1 + $0x80] sm:$0xff]  ;;  %v554_v36 = vld [vmem:[%s1118_s0 + $0x30] sm:$0xf] }
   0xa   :  { %352 = vmatpush.bf16.msra.mxu0 %v734_v6  ;;  %796 = vmatpush.bf16.msra.mxu3 %v734_v6  ;;  %v712_v25 = vld [vmem:[%s1118_s0 + $0x20] sm:$0xf0]  ;;  %v530_v27 = vld [vmem:[%s1118_s0] sm:$0xf]  ;;  %v709_v28 = vld [vmem:[%s1118_s0 + $0x8] sm:$0xf0] }
   0xb   :  { %804 = vmatpush.bf16.msra.mxu1 %v742_v7  ;;  %v544_v29 = vld [vmem:[%s1118_s0 + $0x24] sm:$0xf0]  ;;  %v550_v30 = vld [vmem:[%s1118_s0 + $0x20] sm:$0xf]  ;;  %v713_v31 = vld [vmem:[%s1118_s0 + $0x28] sm:$0xf0]  ;;  %v543_v32 = vor.u32 %v712_v25, %v542_v24  ;;  %v531_v33 = vor.u32 %v709_v28, %v530_v27 }
   0xc   :  { %812 = vmatpush.bf16.msra.mxu2 %v878_v8  ;;  %v547_v34 = vor.u32 %v711_v26, %v544_v29  ;;  %v551_v35 = vor.u32 %v713_v31, %v550_v30  ;;  %v715_v37 = vld [vmem:[%s1118_s0 + $0x38] sm:$0xf0]  ;;  %v714_v38 = vld [vmem:[%s1118_s0 + $0x34] sm:$0xf]  ;;  %v556_v39 = vld [vmem:[%s1118_s0 + $0x3c] sm:$0xf0] }
   0xd   :  { %v562_v40 = vld [vmem:[%s1118_s0 + $0x38] sm:$0xf]  ;;  %v716_v41 = vld [vmem:[%s1118_s0 + $0x40] sm:$0xf0]  ;;  %v555_v42 = vor.u32 %v715_v37, %v554_v36  ;;  %v559_v43 = vor.u32 %v714_v38, %v556_v39  ;;  %v532_v46 = vld [vmem:[%s1118_s0 + $0xc] sm:$0xf0] }
   0xe   :  { %353 = vmatpush.bf16.msra.mxu0 %v733_v9  ;;  %797 = vmatpush.bf16.msra.mxu3 %v733_v9  ;;  %v563_v44 = vor.u32 %v716_v41, %v562_v40  ;;  %v708_v45 = vld [vmem:[%s1118_s0 + $0x4] sm:$0xf]  ;;  %v566_v47 = vld [vmem:[%s1118_s0 + $0x48] sm:$0xf]  ;;  %v718_v48 = vld [vmem:[%s1118_s0 + $0x50] sm:$0xf0] }
   0xf   :  { %805 = vmatpush.bf16.msra.mxu1 %v741_v10  ;;  %v717_v49 = vld [vmem:[%s1118_s0 + $0x4c] sm:$0xf]  ;;  %v568_v50 = vld [vmem:[%s1118_s0 + $0x54] sm:$0xf0]  ;;  %v574_v51 = vld [vmem:[%s1118_s0 + $0x50] sm:$0xf]  ;;  %v535_v53 = vor.u32 %v708_v45, %v532_v46  ;;  %v567_v54 = vor.u32 %v718_v48, %v566_v47 }
  0x10   :  { %813 = vmatpush.bf16.msra.mxu2 %v890_v11  ;;  %v719_v52 = vld [vmem:[%s1118_s0 + $0x58] sm:$0xf0]  ;;  %v571_v55 = vor.u32 %v717_v49, %v568_v50  ;;  %v578_v57 = vld [vmem:[%s1118_s0 + $0x60] sm:$0xf]  ;;  %v721_v58 = vld [vmem:[%s1118_s0 + $0x68] sm:$0xf0] }
  0x11   :  { %v575_v56 = vor.u32 %v719_v52, %v574_v51  ;;  %v720_v59 = vld [vmem:[%s1118_s0 + $0x64] sm:$0xf]  ;;  %v580_v60 = vld [vmem:[%s1118_s0 + $0x6c] sm:$0xf0]  ;;  %v586_v61 = vld [vmem:[%s1118_s0 + $0x68] sm:$0xf]  ;;  %v579_v63 = vor.u32 %v721_v58, %v578_v57 }
  0x12   :  { %354 = vmatpush.bf16.msra.mxu0 %v732_v12  ;;  %798 = vmatpush.bf16.msra.mxu3 %v732_v12  ;;  %v722_v62 = vld [vmem:[%s1118_s0 + $0x70] sm:$0xf0]  ;;  %v583_v0 = vor.u32 %v720_v59, %v580_v60  ;;  %v724_v6 = vld [vmem:[%s1118_s0 + $0x80] sm:$0xf0]  ;;  %v598_v9 = vld [vmem:[%s1118_s0 + $0x80] sm:$0xf] }
  0x13   :  { %806 = vmatpush.bf16.msra.mxu1 %v740_v13  ;;  %v710_v3 = vld [vmem:[%s1118_s0 + $0x10] sm:$0xf0]  ;;  %v1080_v24 = vld [vmem:[%s1119_s2] ss:$0 sm:$0xff] }
  0x14   :  { %814 = vmatpush.bf16.msra.mxu2 %v902_v14 }
  0x16   :  { %355 = vmatpush.bf16.msra.mxu0 %v731_v15  ;;  %799 = vmatpush.bf16.msra.mxu3 %v731_v15  ;;  %v727_v15 = vld [vmem:[%s1118_s0 + $0x98] sm:$0xf0] }
  0x17   :  { %807 = vmatpush.bf16.msra.mxu1 %v739_v16 }
  0x18   :  { %815 = vmatpush.bf16.msra.mxu2 %v914_v17 }
  0x1a   :  { %356 = vmatpush.bf16.msra.mxu0 %v730_v18  ;;  %800 = vmatpush.bf16.msra.mxu3 %v730_v18  ;;  %v610_v18 = vld [vmem:[%s1118_s0 + $0x98] sm:$0xf] }
  0x1b   :  { %808 = vmatpush.bf16.msra.mxu1 %v738_v19 }
  0x1c   :  { %816 = vmatpush.bf16.msra.mxu2 %v926_v20 }
  0x1e   :  { %357 = vmatpush.bf16.msra.mxu0 %v729_v21  ;;  %801 = vmatpush.bf16.msra.mxu3 %v729_v21 }
  0x1f   :  { %809 = vmatpush.bf16.msra.mxu1 %v737_v22 }
  0x20   :  { %817 = vmatpush.bf16.msra.mxu2 %v937_v23 }
  0x21   :  { %363 = vmatmul.bf16.vlgmr.msra.gmra.mxu3 %v543_v32  ;;  %358 = vmatmul.bf16.vlgmr.msra.gmra.mxu0 %v531_v33 }
  0x22   :  { %394 = vmatpush.bf16.msrb.mxu0 %v845_v1  ;;  %407 = vmatmul.bf16.vlgmr.msra.gmra.mxu1 %v547_v34  ;;  %v587_v1 = vor.u32 %v722_v62, %v586_v61 }
  0x23   :  { %451 = vmatmul.bf16.vlgmr.msra.gmra.mxu2 %v551_v35 }
  0x26   :  { %395 = vmatpush.bf16.msrb.mxu0 %v860_v4 }
  0x2a   :  { %396 = vmatpush.bf16.msrb.mxu0 %v742_v7  ;;  %v723_v7 = vld [vmem:[%s1118_s0 + $0x7c] sm:$0xf] }
  0x2e   :  { %397 = vmatpush.bf16.msrb.mxu0 %v741_v10  ;;  %v725_v10 = vld [vmem:[%s1118_s0 + $0x88] sm:$0xf0] }
  0x31   :  { %368 = vmatmul.bf16.gmra.mxu3 %v555_v42 }
  0x32   :  { %398 = vmatpush.bf16.msrb.mxu0 %v740_v13  ;;  %412 = vmatmul.bf16.gmra.mxu1 %v559_v43  ;;  %v599_v13 = vor.u32 %v725_v10, %v598_v9 }
  0x33   :  { %456 = vmatmul.bf16.gmra.mxu2 %v563_v44 }
  0x36   :  { %399 = vmatpush.bf16.msrb.mxu0 %v739_v16  ;;  %v726_v16 = vld [vmem:[%s1118_s0 + $0x94] sm:$0xf] }
  0x3a   :  { %400 = vmatpush.bf16.msrb.mxu0 %v738_v19  ;;  %v728_v19 = vld [vmem:[%s1118_s0 + $0xa0] sm:$0xf0] }
  0x3e   :  { %401 = vmatpush.bf16.msrb.mxu0 %v737_v22  ;;  %v611_v22 = vor.u32 %v728_v19, %v610_v18 }
  0x41   :  { %402 = vmatmul.bf16.vlgmr.msrb.gmra.mxu0 %v535_v53  ;;  %373 = vmatmul.bf16.gmra.mxu3 %v567_v54 }
  0x42   :  { %438 = vmatpush.bf16.msra.mxu0 %v850_v2  ;;  %417 = vmatmul.bf16.gmra.mxu1 %v571_v55  ;;  %v538_v2 = vld [vmem:[%s1118_s0 + $0x8] sm:$0xf] }
  0x43   :  { %461 = vmatmul.bf16.gmra.mxu2 %v575_v56  ;;  %v539_v4 = vor.u32 %v710_v3, %v538_v2 }
  0x46   :  { %439 = vmatpush.bf16.msra.mxu0 %v865_v5  ;;  %v590_v5 = vld [vmem:[%s1118_s0 + $0x78] sm:$0xf] }
  0x4a   :  { %440 = vmatpush.bf16.msra.mxu0 %v878_v8  ;;  %v592_v8 = vld [vmem:[%s1118_s0 + $0x84] sm:$0xf0] }
  0x4b   :  { %v595_v12 = vor.u32 %v723_v7, %v592_v8 }
  0x4e   :  { %441 = vmatpush.bf16.msra.mxu0 %v890_v11  ;;  %v591_v11 = vor.u32 %v724_v6, %v590_v5 }
  0x51   :  { %378 = vmatmul.bf16.gmra.mxu3 %v579_v63 }
  0x52   :  { %442 = vmatpush.bf16.msra.mxu0 %v902_v14  ;;  %422 = vmatmul.bf16.gmra.mxu1 %v583_v0  ;;  %v602_v14 = vld [vmem:[%s1118_s0 + $0x90] sm:$0xf] }
  0x53   :  { %466 = vmatmul.bf16.gmra.mxu2 %v587_v1 }
  0x56   :  { %443 = vmatpush.bf16.msra.mxu0 %v914_v17  ;;  %v604_v17 = vld [vmem:[%s1118_s0 + $0x9c] sm:$0xf0] }
  0x57   :  { %v607_v21 = vor.u32 %v726_v16, %v604_v17 }
  0x5a   :  { %444 = vmatpush.bf16.msra.mxu0 %v926_v20  ;;  %v603_v20 = vor.u32 %v727_v15, %v602_v14 }
  0x5e   :  { %445 = vmatpush.bf16.msra.mxu0 %v937_v23 }
  0x61   :  { %446 = vmatmul.bf16.vlgmr.msra.gmra.mxu0 %v539_v4  ;;  %383 = vmatmul.bf16.gmra.mxu3 %v591_v11 }
  0x62   :  { %427 = vmatmul.bf16.gmra.mxu1 %v595_v12 }
  0x63   :  { %471 = vmatmul.bf16.gmra.mxu2 %v599_v13 }
  0x71   :  { %388 = vmatmul.bf16.gmra.mxu3 %v603_v20 }
  0x72   :  { %432 = vmatmul.bf16.gmra.mxu1 %v607_v21 }
  0x73   :  { %476 = vmatmul.bf16.gmra.mxu2 %v611_v22 }
  0x9e   :  { %v359_v37 = vpop.f32.mrf.mxu0 }
  0x9f   :  { %v408_v23 = vpop.f32.mrf.mxu1  ;;  %v360_v14 = vadd.f32 %v1080_v24, %v359_v37 }
  0xa4   :  { %v364_v25 = vpop.f32.mrf.mxu3 }
  0xa5   :  { %v365_v27 = vadd.f32 %v1080_v24, %v364_v25 }
  0xa6   :  { %v452_v26 = vpop.f32.mrf.mxu2  ;;  %v361_v46 = vpop.f32.mrf.mxu0 }
  0xa7   :  { %v410_v28 = vpop.f32.mrf.mxu1  ;;  %v409_v29 = vadd.f32 %v408_v23, %v365_v27  ;;  %v362_v17 = vadd.f32 %v1080_v24, %v361_v46 }
  0xa9   :  { %v453_v33 = vadd.f32 %v452_v26, %v409_v29 }
  0xab   :  { %v484_v38 = vmax.f32 %v453_v33, 0.0 }
  0xac   :  { %v366_v30 = vpop.f32.mrf.mxu3 }
  0xad   :  { %v367_v31 = vadd.f32 %v1080_v24, %v366_v30 }
  0xae   :  { %v454_v32 = vpop.f32.mrf.mxu2 }
  0xaf   :  { %v411_v34 = vadd.f32 %v410_v28, %v367_v31  ;;  %v413_v35 = vpop.f32.mrf.mxu1 }
  0xb1   :  { %v455_v36 = vadd.f32 %v454_v32, %v411_v34 }
  0xb3   :  { %v485_v39 = vmax.f32 %v455_v36, 0.0 }
  0xb4   :  { %v369_v40 = vpop.f32.mrf.mxu3 }
  0xb5   :  { %v761_v41 = vpack.c.bf16 %v485_v39, %v484_v38  ;;  %v370_v43 = vadd.f32 %v1080_v24, %v369_v40 }
  0xb6   :  { %v457_v42 = vpop.f32.mrf.mxu2 }
  0xb7   :  { %788 = vst [vmem:[%s1120_s3 + $0x8] sm:$0xff] %v761_v41   ;;  %v415_v44 = vpop.f32.mrf.mxu1  ;;  %v414_v45 = vadd.f32 %v413_v35, %v370_v43 }
  0xb9   :  { %v458_v50 = vadd.f32 %v457_v42, %v414_v45 }
  0xbb   :  { %v486_v54 = vmax.f32 %v458_v50, 0.0 }
  0xbc   :  { %v371_v47 = vpop.f32.mrf.mxu3 }
  0xbd   :  { %v372_v48 = vadd.f32 %v1080_v24, %v371_v47 }
  0xbe   :  { %v459_v49 = vpop.f32.mrf.mxu2  ;;  %v403_v59 = vpop.f32.mrf.mxu0 }
  0xbf   :  { %v416_v51 = vadd.f32 %v415_v44, %v372_v48  ;;  %v418_v52 = vpop.f32.mrf.mxu1  ;;  %v404_v18 = vadd.f32 %v403_v59, %v360_v14 }
  0xc1   :  { %v460_v53 = vadd.f32 %v459_v49, %v416_v51 }
  0xc3   :  { %v487_v55 = vmax.f32 %v460_v53, 0.0 }
  0xc4   :  { %v374_v56 = vpop.f32.mrf.mxu3 }
  0xc5   :  { %v766_v57 = vpack.c.bf16 %v487_v55, %v486_v54  ;;  %v375_v60 = vadd.f32 %v1080_v24, %v374_v56 }
  0xc6   :  { %v462_v58 = vpop.f32.mrf.mxu2  ;;  %v405_v5 = vpop.f32.mrf.mxu0 }
  0xc7   :  { %789 = vst [vmem:[%s1120_s3 + $0x10] sm:$0xff] %v766_v57   ;;  %v420_v61 = vpop.f32.mrf.mxu1  ;;  %v419_v62 = vadd.f32 %v418_v52, %v375_v60  ;;  %v406_v25 = vadd.f32 %v405_v5, %v362_v17 }
  0xc9   :  { %v463_v2 = vadd.f32 %v462_v58, %v419_v62 }
  0xcb   :  { %v488_v7 = vmax.f32 %v463_v2, 0.0 }
  0xcc   :  { %v376_v63 = vpop.f32.mrf.mxu3 }
  0xcd   :  { %v377_v0 = vadd.f32 %v1080_v24, %v376_v63 }
  0xce   :  { %v464_v1 = vpop.f32.mrf.mxu2 }
  0xcf   :  { %v421_v3 = vadd.f32 %v420_v61, %v377_v0  ;;  %v423_v4 = vpop.f32.mrf.mxu1 }
  0xd1   :  { %v465_v6 = vadd.f32 %v464_v1, %v421_v3 }
  0xd3   :  { %v489_v8 = vmax.f32 %v465_v6, 0.0 }
  0xd4   :  { %v379_v9 = vpop.f32.mrf.mxu3 }
  0xd5   :  { %v771_v10 = vpack.c.bf16 %v489_v8, %v488_v7  ;;  %v380_v12 = vadd.f32 %v1080_v24, %v379_v9 }
  0xd6   :  { %v467_v11 = vpop.f32.mrf.mxu2 }
  0xd7   :  { %790 = vst [vmem:[%s1120_s3 + $0x18] sm:$0xff] %v771_v10   ;;  %v425_v13 = vpop.f32.mrf.mxu1  ;;  %v424_v16 = vadd.f32 %v423_v4, %v380_v12 }
  0xd9   :  { %v468_v22 = vadd.f32 %v467_v11, %v424_v16 }
  0xdb   :  { %v490_v31 = vmax.f32 %v468_v22, 0.0 }
  0xdc   :  { %v381_v19 = vpop.f32.mrf.mxu3 }
  0xdd   :  { %v382_v20 = vadd.f32 %v1080_v24, %v381_v19 }
  0xde   :  { %v447_v15 = vpop.f32.mrf.mxu0  ;;  %v469_v21 = vpop.f32.mrf.mxu2 }
  0xdf   :  { %v426_v23 = vadd.f32 %v425_v13, %v382_v20  ;;  %v448_v26 = vadd.f32 %v447_v15, %v404_v18  ;;  %v428_v27 = vpop.f32.mrf.mxu1 }
  0xe1   :  { %v470_v28 = vadd.f32 %v469_v21, %v426_v23  ;;  %v482_v33 = vmax.f32 %v448_v26, 0.0 }
  0xe3   :  { %v491_v32 = vmax.f32 %v470_v28, 0.0 }
  0xe4   :  { %v384_v35 = vpop.f32.mrf.mxu3 }
  0xe5   :  { %v776_v36 = vpack.c.bf16 %v491_v32, %v490_v31  ;;  %v385_v39 = vadd.f32 %v1080_v24, %v384_v35 }
  0xe6   :  { %v449_v29 = vpop.f32.mrf.mxu0  ;;  %v472_v37 = vpop.f32.mrf.mxu2 }
  0xe7   :  { %v450_v30 = vadd.f32 %v449_v29, %v406_v25  ;;  %791 = vst [vmem:[%s1120_s3 + $0x20] sm:$0xff] %v776_v36   ;;  %v430_v40 = vpop.f32.mrf.mxu1  ;;  %v429_v41 = vadd.f32 %v428_v27, %v385_v39 }
  0xe9   :  { %v483_v34 = vmax.f32 %v450_v30, 0.0  ;;  %v473_v45 = vadd.f32 %v472_v37, %v429_v41 }
  0xeb   :  { %v756_v38 = vpack.c.bf16 %v483_v34, %v482_v33  ;;  %v492_v48 = vmax.f32 %v473_v45, 0.0 }
  0xec   :  { %v386_v42 = vpop.f32.mrf.mxu3 }
  0xed   :  { %757 = vst [vmem:[%s1120_s3] sm:$0xff] %v756_v38   ;;  %v387_v43 = vadd.f32 %v1080_v24, %v386_v42 }
  0xee   :  { %v474_v44 = vpop.f32.mrf.mxu2 }
  0xef   :  { %v431_v46 = vadd.f32 %v430_v40, %v387_v43  ;;  %v433_v50 = vpop.f32.mrf.mxu1 }
  0xf1   :  { %v475_v47 = vadd.f32 %v474_v44, %v431_v46 }
  0xf3   :  { %v493_v49 = vmax.f32 %v475_v47, 0.0 }
  0xf4   :  { %v389_v51 = vpop.f32.mrf.mxu3 }
  0xf5   :  { %v781_v52 = vpack.c.bf16 %v493_v49, %v492_v48  ;;  %v390_v54 = vadd.f32 %v1080_v24, %v389_v51 }
  0xf6   :  { %v477_v53 = vpop.f32.mrf.mxu2 }
  0xf7   :  { %792 = vst [vmem:[%s1120_s3 + $0x28] sm:$0xff] %v781_v52   ;;  %v434_v55 = vadd.f32 %v433_v50, %v390_v54  ;;  %v435_v58 = vpop.f32.mrf.mxu1 }
  0xf9   :  { %v478_v59 = vadd.f32 %v477_v53, %v434_v55 }
  0xfb   :  { %v494_v63 = vmax.f32 %v478_v59, 0.0 }
  0xfc   :  { %v391_v56 = vpop.f32.mrf.mxu3 }
  0xfd   :  { %v392_v57 = vadd.f32 %v1080_v24, %v391_v56 }
  0xfe   :  { %v479_v61 = vpop.f32.mrf.mxu2 }
  0xff   :  { %v436_v60 = vadd.f32 %v435_v58, %v392_v57 }
 0x101   :  { %v480_v62 = vadd.f32 %v479_v61, %v436_v60 }
 0x103   :  { %v495_v0 = vmax.f32 %v480_v62, 0.0 }
 0x105   :  { %v786_v1 = vpack.c.bf16 %v495_v0, %v494_v63 }
 0x107   :  { %793 = vst [vmem:[%s1120_s3 + $0x30] sm:$0xff] %v786_v1  }

// kernel: vae_forward.13
= control target key start
LH: loop header
LB: loop body
LE: loop exit
PB: predicated region body
PF: predicated region fallthrough
CT: control target
= control target key end

     0   :  { %s1361_s12 = smov 0   ;;  %s1570_s0 = inlined_call_operand.vmem [shape: bf16[512,256], index: 0, kind: input, shape index: {}]   ;;  %s1571_s1 = inlined_call_operand.vmem [shape: bf16[256,128], index: 1, kind: input, shape index: {}]   ;;  %s1572_s2 = inlined_call_operand.vmem [shape: f32[1,128], index: 2, kind: input, shape index: {}]   ;;  %s1573_s3 = inlined_call_operand.vmem [shape: f32[512,128], index: 3, kind: output, shape index: {}]  }
   0x1 LB: > { %s927_s13 = sadd.s32 4294967295, %s1339_s12   ;;  %p931_p0 = scmp.ge.s32.totalorder %s1339_s12, 1  ;;  %s1339_s12 = sphi %s1361_s12, %s13_s12  }
   0x2   : > { %p139_p1 = scmp.lt.s32.totalorder %s1339_s12, 3 }
   0x4   : > { %p140_p2 = pnand %p931_p0, %p139_p1 }
   0x5   : > { %s932_s26 = sshll.u32 (!%p140_p2), %s927_s13, 5 }
   0x6   : > { %143 = sbr.rel (%p140_p2) target bundleno = 320 (0x140), region = 32  ;;  %p165_p3 = scmp.lt.s32.totalorder (!%p140_p2), %s932_s26, 63 }
   0xb   : > { %v1171_v0 = vld [vmem:[%s1571_s1 + $0x38] sm:$0xff]  ;;  %v1170_v2 = vld [vmem:[%s1571_s1 + $0x30] sm:$0xff]  ;;  %v1169_v4 = vld [vmem:[%s1571_s1 + $0x28] sm:$0xff]  ;;  %s1575_s26 = smov (!%p165_p3, %s932_s26), 63 }
   0xc   : > { %v1179_v1 = vld [vmem:[%s1571_s1 + $0x78] sm:$0xff]  ;;  %501 = vmatpush.bf16.msra.mxu0 %v1171_v0  ;;  %1180 = vmatpush.bf16.msra.mxu2 %v1171_v0  ;;  %v1178_v3 = vld [vmem:[%s1571_s1 + $0x70] sm:$0xff]  ;;  %v1177_v5 = vld [vmem:[%s1571_s1 + $0x68] sm:$0xff]  ;;  %s1131_s13 = sshll.u32 %s1575_s26, 3 }
   0xd   : > { %590 = vmatpush.bf16.msra.mxu1 %v1179_v1  ;;  %1188 = vmatpush.bf16.msra.mxu3 %v1179_v1  ;;  %v1168_v6 = vld [vmem:[%s1571_s1 + $0x20] sm:$0xff]  ;;  %v1167_v8 = vld [vmem:[%s1571_s1 + $0x18] sm:$0xff]  ;;  %v1166_v10 = vld [vmem:[%s1571_s1 + $0x10] sm:$0xff]  ;;  %s1416_s18 = scalar_lea.vmem %s1570_s0, %s1131_s13  ;;  %s1506_s30 = scalar_lea.vmem %s1573_s3, %s1131_s13 }
   0xe   : > { %v1176_v7 = vld [vmem:[%s1571_s1 + $0x60] sm:$0xff]  ;;  %v1175_v9 = vld [vmem:[%s1571_s1 + $0x58] sm:$0xff]  ;;  %v1174_v11 = vld [vmem:[%s1571_s1 + $0x50] sm:$0xff] }
   0xf   : > { %v1165_v12 = vld [vmem:[%s1571_s1 + $0x8] sm:$0xff]  ;;  %v1164_v14 = vld [vmem:[%s1571_s1] sm:$0xff]  ;;  %v947_v28 = vld [vmem:[%s1416_s18 + $0x10] sm:$0xf] }
  0x10   : > { %502 = vmatpush.bf16.msra.mxu0 %v1170_v2  ;;  %1181 = vmatpush.bf16.msra.mxu2 %v1170_v2  ;;  %v1173_v13 = vld [vmem:[%s1571_s1 + $0x48] sm:$0xff]  ;;  %v1172_v15 = vld [vmem:[%s1571_s1 + $0x40] sm:$0xff]  ;;  %v1135_v29 = vld [vmem:[%s1416_s18 + $0x14] sm:$0xf0] }
  0x11   : > { %591 = vmatpush.bf16.msra.mxu1 %v1178_v3  ;;  %1189 = vmatpush.bf16.msra.mxu3 %v1178_v3  ;;  %v939_v16 = vld [vmem:[%s1416_s18] sm:$0xf]  ;;  %v1133_v17 = vld [vmem:[%s1416_s18 + $0x4] sm:$0xf0]  ;;  %v1132_v20 = vld [vmem:[%s1416_s18 + $0x4] sm:$0xf]  ;;  %v948_v36 = vor.u32 %v1135_v29, %v947_v28 }
  0x12   : > { %v1003_v18 = vld [vmem:[%s1416_s18 + $0x80] sm:$0xf]  ;;  %v1149_v19 = vld [vmem:[%s1416_s18 + $0x84] sm:$0xf0]  ;;  %v941_v21 = vld [vmem:[%s1416_s18 + $0x8] sm:$0xf0]  ;;  %v940_v24 = vor.u32 %v1133_v17, %v939_v16 }
  0x13   : > { %v1148_v22 = vld [vmem:[%s1416_s18 + $0x84] sm:$0xf]  ;;  %v1005_v23 = vld [vmem:[%s1416_s18 + $0x88] sm:$0xf0]  ;;  %v1004_v25 = vor.u32 %v1149_v19, %v1003_v18  ;;  %v944_v26 = vor.u32 %v1132_v20, %v941_v21  ;;  %v1011_v30 = vld [vmem:[%s1416_s18 + $0x90] sm:$0xf] }
  0x14   : > { %503 = vmatpush.bf16.msra.mxu0 %v1169_v4  ;;  %1182 = vmatpush.bf16.msra.mxu2 %v1169_v4  ;;  %v1008_v27 = vor.u32 %v1148_v22, %v1005_v23  ;;  %v1151_v31 = vld [vmem:[%s1416_s18 + $0x94] sm:$0xf0]  ;;  %v1134_v32 = vld [vmem:[%s1416_s18 + $0x14] sm:$0xf]  ;;  %v949_v33 = vld [vmem:[%s1416_s18 + $0x18] sm:$0xf0] }
  0x15   : > { %592 = vmatpush.bf16.msra.mxu1 %v1177_v5  ;;  %1190 = vmatpush.bf16.msra.mxu3 %v1177_v5  ;;  %v1150_v34 = vld [vmem:[%s1416_s18 + $0x94] sm:$0xf]  ;;  %v1013_v35 = vld [vmem:[%s1416_s18 + $0x98] sm:$0xf0]  ;;  %v1012_v37 = vor.u32 %v1151_v31, %v1011_v30  ;;  %v952_v38 = vor.u32 %v1134_v32, %v949_v33  ;;  %v955_v40 = vld [vmem:[%s1416_s18 + $0x20] sm:$0xf] }
  0x16   : > { %v1016_v39 = vor.u32 %v1150_v34, %v1013_v35  ;;  %v1137_v41 = vld [vmem:[%s1416_s18 + $0x24] sm:$0xf0]  ;;  %v1019_v42 = vld [vmem:[%s1416_s18 + $0xa0] sm:$0xf]  ;;  %v1136_v44 = vld [vmem:[%s1416_s18 + $0x24] sm:$0xf] }
  0x17   : > { %v1153_v43 = vld [vmem:[%s1416_s18 + $0xa4] sm:$0xf0]  ;;  %v957_v45 = vld [vmem:[%s1416_s18 + $0x28] sm:$0xf0]  ;;  %v1152_v46 = vld [vmem:[%s1416_s18 + $0xa4] sm:$0xf]  ;;  %v956_v48 = vor.u32 %v1137_v41, %v955_v40 }
  0x18   : > { %504 = vmatpush.bf16.msra.mxu0 %v1168_v6  ;;  %1183 = vmatpush.bf16.msra.mxu2 %v1168_v6  ;;  %v1021_v47 = vld [vmem:[%s1416_s18 + $0xa8] sm:$0xf0]  ;;  %v1020_v49 = vor.u32 %v1153_v43, %v1019_v42  ;;  %v960_v50 = vor.u32 %v1136_v44, %v957_v45  ;;  %v963_v52 = vld [vmem:[%s1416_s18 + $0x30] sm:$0xf]  ;;  %v1139_v53 = vld [vmem:[%s1416_s18 + $0x34] sm:$0xf0] }
  0x19   : > { %593 = vmatpush.bf16.msra.mxu1 %v1176_v7  ;;  %1191 = vmatpush.bf16.msra.mxu3 %v1176_v7  ;;  %v1024_v51 = vor.u32 %v1152_v46, %v1021_v47  ;;  %v1027_v54 = vld [vmem:[%s1416_s18 + $0xb0] sm:$0xf]  ;;  %v1155_v55 = vld [vmem:[%s1416_s18 + $0xb4] sm:$0xf0]  ;;  %v1138_v56 = vld [vmem:[%s1416_s18 + $0x34] sm:$0xf]  ;;  %v964_v60 = vor.u32 %v1139_v53, %v963_v52 }
  0x1a   : > { %v965_v57 = vld [vmem:[%s1416_s18 + $0x38] sm:$0xf0]  ;;  %v1154_v58 = vld [vmem:[%s1416_s18 + $0xb4] sm:$0xf]  ;;  %v1028_v61 = vor.u32 %v1155_v55, %v1027_v54  ;;  %v971_v0 = vld [vmem:[%s1416_s18 + $0x40] sm:$0xf] }
  0x1b   : > { %v1029_v59 = vld [vmem:[%s1416_s18 + $0xb8] sm:$0xf0]  ;;  %v968_v62 = vor.u32 %v1138_v56, %v965_v57  ;;  %v1141_v1 = vld [vmem:[%s1416_s18 + $0x44] sm:$0xf0]  ;;  %v1035_v2 = vld [vmem:[%s1416_s18 + $0xc0] sm:$0xf] }
  0x1c   : > { %505 = vmatpush.bf16.msra.mxu0 %v1167_v8  ;;  %1184 = vmatpush.bf16.msra.mxu2 %v1167_v8  ;;  %v1032_v63 = vor.u32 %v1154_v58, %v1029_v59  ;;  %v1157_v3 = vld [vmem:[%s1416_s18 + $0xc4] sm:$0xf0]  ;;  %v1140_v4 = vld [vmem:[%s1416_s18 + $0x44] sm:$0xf]  ;;  %v973_v5 = vld [vmem:[%s1416_s18 + $0x48] sm:$0xf0]  ;;  %v972_v8 = vor.u32 %v1141_v1, %v971_v0 }
  0x1d   : > { %594 = vmatpush.bf16.msra.mxu1 %v1175_v9  ;;  %1192 = vmatpush.bf16.msra.mxu3 %v1175_v9  ;;  %v1156_v6 = vld [vmem:[%s1416_s18 + $0xc4] sm:$0xf]  ;;  %v1037_v7 = vld [vmem:[%s1416_s18 + $0xc8] sm:$0xf0]  ;;  %v1036_v9 = vor.u32 %v1157_v3, %v1035_v2  ;;  %v1142_v16 = vld [vmem:[%s1416_s18 + $0x54] sm:$0xf] }
  0x1e   : > { %v981_v17 = vld [vmem:[%s1416_s18 + $0x58] sm:$0xf0]  ;;  %v1158_v18 = vld [vmem:[%s1416_s18 + $0xd4] sm:$0xf]  ;;  %v1144_v28 = vld [vmem:[%s1416_s18 + $0x64] sm:$0xf] }
  0x1f   : > { %v1045_v19 = vld [vmem:[%s1416_s18 + $0xd8] sm:$0xf0]  ;;  %v984_v22 = vor.u32 %v1142_v16, %v981_v17  ;;  %v989_v29 = vld [vmem:[%s1416_s18 + $0x68] sm:$0xf0]  ;;  %v1160_v30 = vld [vmem:[%s1416_s18 + $0xe4] sm:$0xf] }
  0x20   : > { %506 = vmatpush.bf16.msra.mxu0 %v1166_v10  ;;  %1185 = vmatpush.bf16.msra.mxu2 %v1166_v10  ;;  %v976_v10 = vor.u32 %v1140_v4, %v973_v5  ;;  %v1048_v23 = vor.u32 %v1158_v18, %v1045_v19  ;;  %v1053_v31 = vld [vmem:[%s1416_s18 + $0xe8] sm:$0xf0]  ;;  %v992_v34 = vor.u32 %v1144_v28, %v989_v29  ;;  %v1146_v40 = vld [vmem:[%s1416_s18 + $0x74] sm:$0xf]  ;;  %v997_v41 = vld [vmem:[%s1416_s18 + $0x78] sm:$0xf0] }
  0x21   : > { %595 = vmatpush.bf16.msra.mxu1 %v1174_v11  ;;  %1193 = vmatpush.bf16.msra.mxu3 %v1174_v11  ;;  %v1040_v11 = vor.u32 %v1156_v6, %v1037_v7  ;;  %v1056_v35 = vor.u32 %v1160_v30, %v1053_v31  ;;  %v1162_v42 = vld [vmem:[%s1416_s18 + $0xf4] sm:$0xf]  ;;  %v1061_v43 = vld [vmem:[%s1416_s18 + $0xf8] sm:$0xf0]  ;;  %v1000_v46 = vor.u32 %v1146_v40, %v997_v41 }
  0x22   : > { %v1064_v47 = vor.u32 %v1162_v42, %v1061_v43 }
  0x24   : > { %507 = vmatpush.bf16.msra.mxu0 %v1165_v12  ;;  %1186 = vmatpush.bf16.msra.mxu2 %v1165_v12  ;;  %v979_v12 = vld [vmem:[%s1416_s18 + $0x50] sm:$0xf] }
  0x25   : > { %596 = vmatpush.bf16.msra.mxu1 %v1173_v13  ;;  %1194 = vmatpush.bf16.msra.mxu3 %v1173_v13  ;;  %v1143_v13 = vld [vmem:[%s1416_s18 + $0x54] sm:$0xf0] }
  0x26   : > { %v980_v20 = vor.u32 %v1143_v13, %v979_v12 }
  0x28   : > { %508 = vmatpush.bf16.msra.mxu0 %v1164_v14  ;;  %1187 = vmatpush.bf16.msra.mxu2 %v1164_v14  ;;  %v1043_v14 = vld [vmem:[%s1416_s18 + $0xd0] sm:$0xf] }
  0x29   : > { %597 = vmatpush.bf16.msra.mxu1 %v1172_v15  ;;  %1195 = vmatpush.bf16.msra.mxu3 %v1172_v15  ;;  %v1159_v15 = vld [vmem:[%s1416_s18 + $0xd4] sm:$0xf0] }
  0x2a   : > { %v1044_v21 = vor.u32 %v1159_v15, %v1043_v14 }
  0x2b   : > { %509 = vmatmul.bf16.vlgmr.msra.gmra.mxu0 %v940_v24  ;;  %549 = vmatmul.bf16.vlgmr.msra.gmra.mxu2 %v1004_v25  ;;  %v987_v24 = vld [vmem:[%s1416_s18 + $0x60] sm:$0xf]  ;;  %v1145_v25 = vld [vmem:[%s1416_s18 + $0x64] sm:$0xf0] }
  0x2c   : > { %598 = vmatmul.bf16.vlgmr.msra.gmra.mxu1 %v944_v26  ;;  %638 = vmatmul.bf16.vlgmr.msra.gmra.mxu3 %v1008_v27  ;;  %v1051_v26 = vld [vmem:[%s1416_s18 + $0xe0] sm:$0xf]  ;;  %v1161_v27 = vld [vmem:[%s1416_s18 + $0xe4] sm:$0xf0]  ;;  %v988_v32 = vor.u32 %v1145_v25, %v987_v24 }
  0x2d   : > { %v1052_v33 = vor.u32 %v1161_v27, %v1051_v26 }
  0x3b   : > { %514 = vmatmul.bf16.gmra.mxu0 %v948_v36  ;;  %554 = vmatmul.bf16.gmra.mxu2 %v1012_v37  ;;  %v995_v36 = vld [vmem:[%s1416_s18 + $0x70] sm:$0xf]  ;;  %v1147_v37 = vld [vmem:[%s1416_s18 + $0x74] sm:$0xf0] }
  0x3c   : > { %603 = vmatmul.bf16.gmra.mxu1 %v952_v38  ;;  %643 = vmatmul.bf16.gmra.mxu3 %v1016_v39  ;;  %v1059_v38 = vld [vmem:[%s1416_s18 + $0xf0] sm:$0xf]  ;;  %v1163_v39 = vld [vmem:[%s1416_s18 + $0xf4] sm:$0xf0]  ;;  %v996_v44 = vor.u32 %v1147_v37, %v995_v36 }
  0x3d   : > { %v1060_v45 = vor.u32 %v1163_v39, %v1059_v38 }
  0x4b   : > { %519 = vmatmul.bf16.gmra.mxu0 %v956_v48  ;;  %559 = vmatmul.bf16.gmra.mxu2 %v1020_v49  ;;  %v1494_v48 = vld [vmem:[%s1572_s2] ss:$0 sm:$0xff] }
  0x4c   : > { %608 = vmatmul.bf16.gmra.mxu1 %v960_v50  ;;  %648 = vmatmul.bf16.gmra.mxu3 %v1024_v51 }
  0x5b   : > { %524 = vmatmul.bf16.gmra.mxu0 %v964_v60  ;;  %564 = vmatmul.bf16.gmra.mxu2 %v1028_v61 }
  0x5c   : > { %613 = vmatmul.bf16.gmra.mxu1 %v968_v62  ;;  %653 = vmatmul.bf16.gmra.mxu3 %v1032_v63 }
  0x6b   : > { %529 = vmatmul.bf16.gmra.mxu0 %v972_v8  ;;  %569 = vmatmul.bf16.gmra.mxu2 %v1036_v9 }
  0x6c   : > { %618 = vmatmul.bf16.gmra.mxu1 %v976_v10  ;;  %658 = vmatmul.bf16.gmra.mxu3 %v1040_v11 }
  0x7b   : > { %534 = vmatmul.bf16.gmra.mxu0 %v980_v20  ;;  %574 = vmatmul.bf16.gmra.mxu2 %v1044_v21 }
  0x7c   : > { %623 = vmatmul.bf16.gmra.mxu1 %v984_v22  ;;  %663 = vmatmul.bf16.gmra.mxu3 %v1048_v23 }
  0x8b   : > { %539 = vmatmul.bf16.gmra.mxu0 %v988_v32  ;;  %579 = vmatmul.bf16.gmra.mxu2 %v1052_v33 }
  0x8c   : > { %628 = vmatmul.bf16.gmra.mxu1 %v992_v34  ;;  %668 = vmatmul.bf16.gmra.mxu3 %v1056_v35 }
  0x9b   : > { %544 = vmatmul.bf16.gmra.mxu0 %v996_v44  ;;  %584 = vmatmul.bf16.gmra.mxu2 %v1060_v45 }
  0x9c   : > { %633 = vmatmul.bf16.gmra.mxu1 %v1000_v46  ;;  %673 = vmatmul.bf16.gmra.mxu3 %v1064_v47 }
  0xa8   : > { %v510_v49 = vpop.f32.mrf.mxu0 }
  0xa9   : > { %v511_v50 = vadd.f32 %v1494_v48, %v510_v49  ;;  %v599_v51 = vpop.f32.mrf.mxu1 }
  0xab   : > { %v600_v52 = vadd.f32 %v599_v51, %v511_v50 }
  0xad   : > { %v679_v53 = vsub.f32 0.0, %v600_v52 }
  0xae   : > { %v550_v54 = vpop.f32.mrf.mxu2 }
  0xaf   : > { %v711_v55 = vmul.f32 1.442695, %v679_v53  ;;  %v551_v56 = vadd.f32 %v1494_v48, %v550_v54  ;;  %v639_v57 = vpop.f32.mrf.mxu3 }
  0xb0   : > { %v512_v58 = vpop.f32.mrf.mxu0 }
  0xb1   : > { %1205 = vpow2.f32 %v711_v55  ;;  %v640_v59 = vadd.f32 %v639_v57, %v551_v56  ;;  %v513_v60 = vadd.f32 %v1494_v48, %v512_v58  ;;  %v601_v61 = vpop.f32.mrf.mxu1 }
  0xb3   : > { %v695_v62 = vsub.f32 0.0, %v640_v59  ;;  %v602_v63 = vadd.f32 %v601_v61, %v513_v60 }
  0xb5   : > { %v743_v0 = vmul.f32 1.442695, %v695_v62  ;;  %v680_v1 = vsub.f32 0.0, %v602_v63 }
  0xb6   : > { %v552_v2 = vpop.f32.mrf.mxu2 }
  0xb7   : > { %v1206_v3 = vpop.eup %1205  ;;  %1207 = vpow2.f32 %v743_v0  ;;  %v713_v4 = vmul.f32 1.442695, %v680_v1  ;;  %v553_v5 = vadd.f32 %v1494_v48, %v552_v2  ;;  %v641_v6 = vpop.f32.mrf.mxu3 }
  0xb8   : > { %v775_v7 = vadd.f32 1.0, %v1206_v3  ;;  %v515_v8 = vpop.f32.mrf.mxu0 }
  0xb9   : > { %1209 = vpow2.f32 %v713_v4  ;;  %v642_v9 = vadd.f32 %v641_v6, %v553_v5  ;;  %v516_v10 = vadd.f32 %v1494_v48, %v515_v8  ;;  %v604_v11 = vpop.f32.mrf.mxu1 }
  0xba   : > { %1211 = vrcp.f32 %v775_v7 }
  0xbb   : > { %v696_v12 = vsub.f32 0.0, %v642_v9  ;;  %v605_v13 = vadd.f32 %v604_v11, %v516_v10 }
  0xbd   : > { %v1208_v14 = vpop.eup %1207  ;;  %v745_v15 = vmul.f32 1.442695, %v696_v12  ;;  %v681_v16 = vsub.f32 0.0, %v605_v13 }
  0xbe   : > { %v791_v17 = vadd.f32 1.0, %v1208_v14  ;;  %v555_v18 = vpop.f32.mrf.mxu2 }
  0xbf   : > { %v1210_v19 = vpop.eup %1209  ;;  %1213 = vpow2.f32 %v745_v15  ;;  %v715_v20 = vmul.f32 1.442695, %v681_v16  ;;  %v556_v21 = vadd.f32 %v1494_v48, %v555_v18  ;;  %v644_v22 = vpop.f32.mrf.mxu3 }
  0xc0   : > { %v1212_v23 = vpop.eup %1211  ;;  %1215 = vrcp.f32 %v791_v17  ;;  %v776_v24 = vadd.f32 1.0, %v1210_v19  ;;  %v517_v25 = vpop.f32.mrf.mxu0 }
  0xc1   : > { %839 = vst [vmem:[%s1506_s30] sm:$0xff] %v1212_v23  ;;  %1217 = vpow2.f32 %v715_v20  ;;  %v645_v26 = vadd.f32 %v644_v22, %v556_v21  ;;  %v518_v27 = vadd.f32 %v1494_v48, %v517_v25  ;;  %v606_v28 = vpop.f32.mrf.mxu1 }
  0xc2   : > { %1219 = vrcp.f32 %v776_v24 }
  0xc3   : > { %v697_v29 = vsub.f32 0.0, %v645_v26  ;;  %v607_v30 = vadd.f32 %v606_v28, %v518_v27 }
  0xc5   : > { %v1214_v31 = vpop.eup %1213  ;;  %v747_v32 = vmul.f32 1.442695, %v697_v29  ;;  %v682_v33 = vsub.f32 0.0, %v607_v30 }
  0xc6   : > { %v1216_v34 = vpop.eup %1215  ;;  %v792_v35 = vadd.f32 1.0, %v1214_v31  ;;  %v557_v36 = vpop.f32.mrf.mxu2 }
  0xc7   : > { %v1218_v37 = vpop.eup %1217  ;;  %855 = vst [vmem:[%s1506_s30 + $0x80] sm:$0xff] %v1216_v34  ;;  %1221 = vpow2.f32 %v747_v32  ;;  %v717_v38 = vmul.f32 1.442695, %v682_v33  ;;  %v558_v39 = vadd.f32 %v1494_v48, %v557_v36  ;;  %v646_v40 = vpop.f32.mrf.mxu3 }
  0xc8   : > { %v1220_v41 = vpop.eup %1219  ;;  %1223 = vrcp.f32 %v792_v35  ;;  %v777_v42 = vadd.f32 1.0, %v1218_v37  ;;  %v520_v43 = vpop.f32.mrf.mxu0 }
  0xc9   : > { %840 = vst [vmem:[%s1506_s30 + $0x8] sm:$0xff] %v1220_v41  ;;  %1225 = vpow2.f32 %v717_v38  ;;  %v647_v44 = vadd.f32 %v646_v40, %v558_v39  ;;  %v521_v45 = vadd.f32 %v1494_v48, %v520_v43  ;;  %v609_v46 = vpop.f32.mrf.mxu1 }
  0xca   : > { %1227 = vrcp.f32 %v777_v42 }
  0xcb   : > { %v698_v47 = vsub.f32 0.0, %v647_v44  ;;  %v610_v49 = vadd.f32 %v609_v46, %v521_v45 }
  0xcd   : > { %v1222_v50 = vpop.eup %1221  ;;  %v749_v51 = vmul.f32 1.442695, %v698_v47  ;;  %v683_v52 = vsub.f32 0.0, %v610_v49 }
  0xce   : > { %v1224_v53 = vpop.eup %1223  ;;  %v793_v54 = vadd.f32 1.0, %v1222_v50  ;;  %v560_v55 = vpop.f32.mrf.mxu2 }
  0xcf   : > { %v1226_v56 = vpop.eup %1225  ;;  %856 = vst [vmem:[%s1506_s30 + $0x88] sm:$0xff] %v1224_v53  ;;  %1229 = vpow2.f32 %v749_v51  ;;  %v719_v57 = vmul.f32 1.442695, %v683_v52  ;;  %v561_v58 = vadd.f32 %v1494_v48, %v560_v55  ;;  %v649_v59 = vpop.f32.mrf.mxu3 }
  0xd0   : > { %v1228_v60 = vpop.eup %1227  ;;  %1231 = vrcp.f32 %v793_v54  ;;  %v778_v61 = vadd.f32 1.0, %v1226_v56  ;;  %v522_v62 = vpop.f32.mrf.mxu0 }
  0xd1   : > { %841 = vst [vmem:[%s1506_s30 + $0x10] sm:$0xff] %v1228_v60  ;;  %1233 = vpow2.f32 %v719_v57  ;;  %v650_v63 = vadd.f32 %v649_v59, %v561_v58  ;;  %v523_v0 = vadd.f32 %v1494_v48, %v522_v62  ;;  %v611_v1 = vpop.f32.mrf.mxu1 }
  0xd2   : > { %1235 = vrcp.f32 %v778_v61 }
  0xd3   : > { %v699_v2 = vsub.f32 0.0, %v650_v63  ;;  %v612_v3 = vadd.f32 %v611_v1, %v523_v0 }
  0xd5   : > { %v1230_v4 = vpop.eup %1229  ;;  %v751_v5 = vmul.f32 1.442695, %v699_v2  ;;  %v684_v6 = vsub.f32 0.0, %v612_v3 }
  0xd6   : > { %v1232_v7 = vpop.eup %1231  ;;  %v794_v8 = vadd.f32 1.0, %v1230_v4  ;;  %v562_v9 = vpop.f32.mrf.mxu2 }
  0xd7   : > { %v1234_v10 = vpop.eup %1233  ;;  %857 = vst [vmem:[%s1506_s30 + $0x90] sm:$0xff] %v1232_v7  ;;  %1237 = vpow2.f32 %v751_v5  ;;  %v721_v11 = vmul.f32 1.442695, %v684_v6  ;;  %v563_v12 = vadd.f32 %v1494_v48, %v562_v9  ;;  %v651_v13 = vpop.f32.mrf.mxu3 }
  0xd8   : > { %v1236_v14 = vpop.eup %1235  ;;  %1239 = vrcp.f32 %v794_v8  ;;  %v779_v15 = vadd.f32 1.0, %v1234_v10  ;;  %v525_v16 = vpop.f32.mrf.mxu0 }
  0xd9   : > { %842 = vst [vmem:[%s1506_s30 + $0x18] sm:$0xff] %v1236_v14  ;;  %1241 = vpow2.f32 %v721_v11  ;;  %v652_v17 = vadd.f32 %v651_v13, %v563_v12  ;;  %v526_v18 = vadd.f32 %v1494_v48, %v525_v16  ;;  %v614_v19 = vpop.f32.mrf.mxu1 }
  0xda   : > { %1243 = vrcp.f32 %v779_v15 }
  0xdb   : > { %v700_v20 = vsub.f32 0.0, %v652_v17  ;;  %v615_v21 = vadd.f32 %v614_v19, %v526_v18 }
  0xdd   : > { %v1238_v22 = vpop.eup %1237  ;;  %v753_v23 = vmul.f32 1.442695, %v700_v20  ;;  %v685_v24 = vsub.f32 0.0, %v615_v21 }
  0xde   : > { %v1240_v25 = vpop.eup %1239  ;;  %v795_v26 = vadd.f32 1.0, %v1238_v22  ;;  %v565_v27 = vpop.f32.mrf.mxu2 }
  0xdf   : > { %v1242_v28 = vpop.eup %1241  ;;  %858 = vst [vmem:[%s1506_s30 + $0x98] sm:$0xff] %v1240_v25  ;;  %1245 = vpow2.f32 %v753_v23  ;;  %v723_v29 = vmul.f32 1.442695, %v685_v24  ;;  %v566_v30 = vadd.f32 %v1494_v48, %v565_v27  ;;  %v654_v31 = vpop.f32.mrf.mxu3 }
  0xe0   : > { %v1244_v32 = vpop.eup %1243  ;;  %1247 = vrcp.f32 %v795_v26  ;;  %v780_v33 = vadd.f32 1.0, %v1242_v28  ;;  %v527_v34 = vpop.f32.mrf.mxu0 }
  0xe1   : > { %843 = vst [vmem:[%s1506_s30 + $0x20] sm:$0xff] %v1244_v32  ;;  %1249 = vpow2.f32 %v723_v29  ;;  %v655_v35 = vadd.f32 %v654_v31, %v566_v30  ;;  %v528_v36 = vadd.f32 %v1494_v48, %v527_v34  ;;  %v616_v37 = vpop.f32.mrf.mxu1 }
  0xe2   : > { %1251 = vrcp.f32 %v780_v33 }
  0xe3   : > { %v701_v38 = vsub.f32 0.0, %v655_v35  ;;  %v617_v39 = vadd.f32 %v616_v37, %v528_v36 }
  0xe5   : > { %v1246_v40 = vpop.eup %1245  ;;  %v755_v41 = vmul.f32 1.442695, %v701_v38  ;;  %v686_v42 = vsub.f32 0.0, %v617_v39 }
  0xe6   : > { %v1248_v43 = vpop.eup %1247  ;;  %v796_v44 = vadd.f32 1.0, %v1246_v40  ;;  %v567_v45 = vpop.f32.mrf.mxu2 }
  0xe7   : > { %v1250_v46 = vpop.eup %1249  ;;  %859 = vst [vmem:[%s1506_s30 + $0xa0] sm:$0xff] %v1248_v43  ;;  %1253 = vpow2.f32 %v755_v41  ;;  %v725_v47 = vmul.f32 1.442695, %v686_v42  ;;  %v568_v49 = vadd.f32 %v1494_v48, %v567_v45  ;;  %v656_v50 = vpop.f32.mrf.mxu3 }
  0xe8   : > { %v1252_v51 = vpop.eup %1251  ;;  %1255 = vrcp.f32 %v796_v44  ;;  %v781_v52 = vadd.f32 1.0, %v1250_v46  ;;  %v530_v53 = vpop.f32.mrf.mxu0 }
  0xe9   : > { %844 = vst [vmem:[%s1506_s30 + $0x28] sm:$0xff] %v1252_v51  ;;  %1257 = vpow2.f32 %v725_v47  ;;  %v657_v54 = vadd.f32 %v656_v50, %v568_v49  ;;  %v531_v55 = vadd.f32 %v1494_v48, %v530_v53  ;;  %v619_v56 = vpop.f32.mrf.mxu1 }
  0xea   : > { %1259 = vrcp.f32 %v781_v52 }
  0xeb   : > { %v702_v57 = vsub.f32 0.0, %v657_v54  ;;  %v620_v58 = vadd.f32 %v619_v56, %v531_v55 }
  0xed   : > { %v1254_v59 = vpop.eup %1253  ;;  %v757_v60 = vmul.f32 1.442695, %v702_v57  ;;  %v687_v61 = vsub.f32 0.0, %v620_v58 }
  0xee   : > { %v1256_v62 = vpop.eup %1255  ;;  %v797_v63 = vadd.f32 1.0, %v1254_v59  ;;  %v570_v0 = vpop.f32.mrf.mxu2 }
  0xef   : > { %v1258_v1 = vpop.eup %1257  ;;  %860 = vst [vmem:[%s1506_s30 + $0xa8] sm:$0xff] %v1256_v62  ;;  %1261 = vpow2.f32 %v757_v60  ;;  %v727_v2 = vmul.f32 1.442695, %v687_v61  ;;  %v571_v3 = vadd.f32 %v1494_v48, %v570_v0  ;;  %v659_v4 = vpop.f32.mrf.mxu3 }
  0xf0   : > { %v1260_v5 = vpop.eup %1259  ;;  %1263 = vrcp.f32 %v797_v63  ;;  %v782_v6 = vadd.f32 1.0, %v1258_v1  ;;  %v532_v7 = vpop.f32.mrf.mxu0 }
  0xf1   : > { %845 = vst [vmem:[%s1506_s30 + $0x30] sm:$0xff] %v1260_v5  ;;  %1265 = vpow2.f32 %v727_v2  ;;  %v660_v8 = vadd.f32 %v659_v4, %v571_v3  ;;  %v533_v9 = vadd.f32 %v1494_v48, %v532_v7  ;;  %v621_v10 = vpop.f32.mrf.mxu1 }
  0xf2   : > { %1267 = vrcp.f32 %v782_v6 }
  0xf3   : > { %v703_v11 = vsub.f32 0.0, %v660_v8  ;;  %v622_v12 = vadd.f32 %v621_v10, %v533_v9 }
  0xf5   : > { %v1262_v13 = vpop.eup %1261  ;;  %v759_v14 = vmul.f32 1.442695, %v703_v11  ;;  %v688_v15 = vsub.f32 0.0, %v622_v12 }
  0xf6   : > { %v1264_v16 = vpop.eup %1263  ;;  %v798_v17 = vadd.f32 1.0, %v1262_v13  ;;  %v572_v18 = vpop.f32.mrf.mxu2 }
  0xf7   : > { %v1266_v19 = vpop.eup %1265  ;;  %861 = vst [vmem:[%s1506_s30 + $0xb0] sm:$0xff] %v1264_v16  ;;  %1269 = vpow2.f32 %v759_v14  ;;  %v729_v20 = vmul.f32 1.442695, %v688_v15  ;;  %v573_v21 = vadd.f32 %v1494_v48, %v572_v18  ;;  %v661_v22 = vpop.f32.mrf.mxu3 }
  0xf8   : > { %v1268_v23 = vpop.eup %1267  ;;  %1271 = vrcp.f32 %v798_v17  ;;  %v783_v24 = vadd.f32 1.0, %v1266_v19  ;;  %v535_v25 = vpop.f32.mrf.mxu0 }
  0xf9   : > { %846 = vst [vmem:[%s1506_s30 + $0x38] sm:$0xff] %v1268_v23  ;;  %1273 = vpow2.f32 %v729_v20  ;;  %v662_v26 = vadd.f32 %v661_v22, %v573_v21  ;;  %v536_v27 = vadd.f32 %v1494_v48, %v535_v25  ;;  %v624_v28 = vpop.f32.mrf.mxu1 }
  0xfa   : > { %1275 = vrcp.f32 %v783_v24 }
  0xfb   : > { %v704_v29 = vsub.f32 0.0, %v662_v26  ;;  %v625_v30 = vadd.f32 %v624_v28, %v536_v27 }
  0xfd   : > { %v1270_v31 = vpop.eup %1269  ;;  %v761_v32 = vmul.f32 1.442695, %v704_v29  ;;  %v689_v33 = vsub.f32 0.0, %v625_v30 }
  0xfe   : > { %v1272_v34 = vpop.eup %1271  ;;  %v799_v35 = vadd.f32 1.0, %v1270_v31  ;;  %v575_v36 = vpop.f32.mrf.mxu2 }
  0xff   : > { %v1274_v37 = vpop.eup %1273  ;;  %862 = vst [vmem:[%s1506_s30 + $0xb8] sm:$0xff] %v1272_v34  ;;  %1277 = vpow2.f32 %v761_v32  ;;  %v731_v38 = vmul.f32 1.442695, %v689_v33  ;;  %v576_v39 = vadd.f32 %v1494_v48, %v575_v36  ;;  %v664_v40 = vpop.f32.mrf.mxu3 }
 0x100   : > { %v1276_v41 = vpop.eup %1275  ;;  %1279 = vrcp.f32 %v799_v35  ;;  %v784_v42 = vadd.f32 1.0, %v1274_v37  ;;  %v537_v43 = vpop.f32.mrf.mxu0 }
 0x101   : > { %847 = vst [vmem:[%s1506_s30 + $0x40] sm:$0xff] %v1276_v41  ;;  %1281 = vpow2.f32 %v731_v38  ;;  %v665_v44 = vadd.f32 %v664_v40, %v576_v39  ;;  %v538_v45 = vadd.f32 %v1494_v48, %v537_v43  ;;  %v626_v46 = vpop.f32.mrf.mxu1 }
 0x102   : > { %1283 = vrcp.f32 %v784_v42 }
 0x103   : > { %v705_v47 = vsub.f32 0.0, %v665_v44  ;;  %v627_v49 = vadd.f32 %v626_v46, %v538_v45 }
 0x105   : > { %v1278_v50 = vpop.eup %1277  ;;  %v763_v51 = vmul.f32 1.442695, %v705_v47  ;;  %v690_v52 = vsub.f32 0.0, %v627_v49 }
 0x106   : > { %v1280_v53 = vpop.eup %1279  ;;  %v800_v54 = vadd.f32 1.0, %v1278_v50  ;;  %v577_v55 = vpop.f32.mrf.mxu2 }
 0x107   : > { %v1282_v56 = vpop.eup %1281  ;;  %863 = vst [vmem:[%s1506_s30 + $0xc0] sm:$0xff] %v1280_v53  ;;  %1285 = vpow2.f32 %v763_v51  ;;  %v733_v57 = vmul.f32 1.442695, %v690_v52  ;;  %v578_v58 = vadd.f32 %v1494_v48, %v577_v55  ;;  %v666_v59 = vpop.f32.mrf.mxu3 }
 0x108   : > { %v1284_v60 = vpop.eup %1283  ;;  %1287 = vrcp.f32 %v800_v54  ;;  %v785_v61 = vadd.f32 1.0, %v1282_v56  ;;  %v540_v62 = vpop.f32.mrf.mxu0 }
 0x109   : > { %848 = vst [vmem:[%s1506_s30 + $0x48] sm:$0xff] %v1284_v60  ;;  %1289 = vpow2.f32 %v733_v57  ;;  %v667_v63 = vadd.f32 %v666_v59, %v578_v58  ;;  %v541_v0 = vadd.f32 %v1494_v48, %v540_v62  ;;  %v629_v1 = vpop.f32.mrf.mxu1 }
 0x10a   : > { %1291 = vrcp.f32 %v785_v61 }
 0x10b   : > { %v706_v2 = vsub.f32 0.0, %v667_v63  ;;  %v630_v3 = vadd.f32 %v629_v1, %v541_v0 }
 0x10d   : > { %v1286_v4 = vpop.eup %1285  ;;  %v765_v5 = vmul.f32 1.442695, %v706_v2  ;;  %v691_v6 = vsub.f32 0.0, %v630_v3 }
 0x10e   : > { %v1288_v7 = vpop.eup %1287  ;;  %v801_v8 = vadd.f32 1.0, %v1286_v4  ;;  %v580_v9 = vpop.f32.mrf.mxu2 }
 0x10f   : > { %v1290_v10 = vpop.eup %1289  ;;  %864 = vst [vmem:[%s1506_s30 + $0xc8] sm:$0xff] %v1288_v7  ;;  %1293 = vpow2.f32 %v765_v5  ;;  %v735_v11 = vmul.f32 1.442695, %v691_v6  ;;  %v581_v12 = vadd.f32 %v1494_v48, %v580_v9  ;;  %v669_v13 = vpop.f32.mrf.mxu3 }
 0x110   : > { %v1292_v14 = vpop.eup %1291  ;;  %1295 = vrcp.f32 %v801_v8  ;;  %v786_v15 = vadd.f32 1.0, %v1290_v10  ;;  %v542_v16 = vpop.f32.mrf.mxu0 }
 0x111   : > { %849 = vst [vmem:[%s1506_s30 + $0x50] sm:$0xff] %v1292_v14  ;;  %1297 = vpow2.f32 %v735_v11  ;;  %v670_v17 = vadd.f32 %v669_v13, %v581_v12  ;;  %v543_v18 = vadd.f32 %v1494_v48, %v542_v16  ;;  %v631_v19 = vpop.f32.mrf.mxu1 }
 0x112   : > { %1299 = vrcp.f32 %v786_v15 }
 0x113   : > { %v707_v20 = vsub.f32 0.0, %v670_v17  ;;  %v632_v21 = vadd.f32 %v631_v19, %v543_v18 }
 0x115   : > { %v1294_v22 = vpop.eup %1293  ;;  %v767_v23 = vmul.f32 1.442695, %v707_v20  ;;  %v692_v24 = vsub.f32 0.0, %v632_v21 }
 0x116   : > { %v1296_v25 = vpop.eup %1295  ;;  %v802_v26 = vadd.f32 1.0, %v1294_v22  ;;  %v582_v27 = vpop.f32.mrf.mxu2 }
 0x117   : > { %v1298_v28 = vpop.eup %1297  ;;  %865 = vst [vmem:[%s1506_s30 + $0xd0] sm:$0xff] %v1296_v25  ;;  %1301 = vpow2.f32 %v767_v23  ;;  %v737_v29 = vmul.f32 1.442695, %v692_v24  ;;  %v583_v30 = vadd.f32 %v1494_v48, %v582_v27  ;;  %v671_v31 = vpop.f32.mrf.mxu3 }
 0x118   : > { %v1300_v32 = vpop.eup %1299  ;;  %1303 = vrcp.f32 %v802_v26  ;;  %v787_v33 = vadd.f32 1.0, %v1298_v28  ;;  %v545_v34 = vpop.f32.mrf.mxu0 }
 0x119   : > { %850 = vst [vmem:[%s1506_s30 + $0x58] sm:$0xff] %v1300_v32  ;;  %1305 = vpow2.f32 %v737_v29  ;;  %v672_v35 = vadd.f32 %v671_v31, %v583_v30  ;;  %v546_v36 = vadd.f32 %v1494_v48, %v545_v34  ;;  %v634_v37 = vpop.f32.mrf.mxu1 }
 0x11a   : > { %1307 = vrcp.f32 %v787_v33 }
 0x11b   : > { %v708_v38 = vsub.f32 0.0, %v672_v35  ;;  %v635_v39 = vadd.f32 %v634_v37, %v546_v36 }
 0x11d   : > { %v1302_v40 = vpop.eup %1301  ;;  %v769_v41 = vmul.f32 1.442695, %v708_v38  ;;  %v693_v42 = vsub.f32 0.0, %v635_v39 }
 0x11e   : > { %v1304_v43 = vpop.eup %1303  ;;  %v803_v44 = vadd.f32 1.0, %v1302_v40  ;;  %v585_v45 = vpop.f32.mrf.mxu2 }
 0x11f   : > { %v1306_v46 = vpop.eup %1305  ;;  %866 = vst [vmem:[%s1506_s30 + $0xd8] sm:$0xff] %v1304_v43  ;;  %1309 = vpow2.f32 %v769_v41  ;;  %v739_v47 = vmul.f32 1.442695, %v693_v42  ;;  %v586_v49 = vadd.f32 %v1494_v48, %v585_v45  ;;  %v674_v50 = vpop.f32.mrf.mxu3 }
 0x120   : > { %v1308_v51 = vpop.eup %1307  ;;  %1311 = vrcp.f32 %v803_v44  ;;  %v788_v52 = vadd.f32 1.0, %v1306_v46  ;;  %v547_v53 = vpop.f32.mrf.mxu0 }
 0x121   : > { %851 = vst [vmem:[%s1506_s30 + $0x60] sm:$0xff] %v1308_v51  ;;  %1313 = vpow2.f32 %v739_v47  ;;  %v675_v54 = vadd.f32 %v674_v50, %v586_v49  ;;  %v548_v55 = vadd.f32 %v1494_v48, %v547_v53  ;;  %v636_v56 = vpop.f32.mrf.mxu1 }
 0x122   : > { %1315 = vrcp.f32 %v788_v52 }
 0x123   : > { %v709_v57 = vsub.f32 0.0, %v675_v54  ;;  %v637_v58 = vadd.f32 %v636_v56, %v548_v55 }
 0x125   : > { %v1310_v59 = vpop.eup %1309  ;;  %v771_v60 = vmul.f32 1.442695, %v709_v57  ;;  %v694_v61 = vsub.f32 0.0, %v637_v58 }
 0x126   : > { %v1312_v62 = vpop.eup %1311  ;;  %v804_v63 = vadd.f32 1.0, %v1310_v59  ;;  %v587_v0 = vpop.f32.mrf.mxu2 }
 0x127   : > { %v1314_v1 = vpop.eup %1313  ;;  %867 = vst [vmem:[%s1506_s30 + $0xe0] sm:$0xff] %v1312_v62  ;;  %1317 = vpow2.f32 %v771_v60  ;;  %v741_v2 = vmul.f32 1.442695, %v694_v61  ;;  %v588_v3 = vadd.f32 %v1494_v48, %v587_v0  ;;  %v676_v6 = vpop.f32.mrf.mxu3 }
 0x128   : > { %v1316_v4 = vpop.eup %1315  ;;  %1319 = vrcp.f32 %v804_v63  ;;  %v789_v5 = vadd.f32 1.0, %v1314_v1 }
 0x129   : > { %852 = vst [vmem:[%s1506_s30 + $0x68] sm:$0xff] %v1316_v4  ;;  %1321 = vpow2.f32 %v741_v2  ;;  %v677_v7 = vadd.f32 %v676_v6, %v588_v3 }
 0x12a   : > { %1323 = vrcp.f32 %v789_v5 }
 0x12b   : > { %v710_v8 = vsub.f32 0.0, %v677_v7 }
 0x12d   : > { %v1318_v9 = vpop.eup %1317  ;;  %v773_v10 = vmul.f32 1.442695, %v710_v8 }
 0x12e   : > { %v1320_v11 = vpop.eup %1319  ;;  %v805_v12 = vadd.f32 1.0, %v1318_v9 }
 0x12f   : > { %v1322_v13 = vpop.eup %1321  ;;  %868 = vst [vmem:[%s1506_s30 + $0xe8] sm:$0xff] %v1320_v11  ;;  %1325 = vpow2.f32 %v773_v10 }
 0x130   : > { %v1324_v48 = vpop.eup %1323  ;;  %1327 = vrcp.f32 %v805_v12  ;;  %v790_v14 = vadd.f32 1.0, %v1322_v13 }
 0x131   : > { %853 = vst [vmem:[%s1506_s30 + $0x70] sm:$0xff] %v1324_v48 }
 0x132   : > { %1329 = vrcp.f32 %v790_v14 }
 0x135   : > { %v1326_v15 = vpop.eup %1325 }
 0x136   : > { %v1328_v16 = vpop.eup %1327  ;;  %v806_v17 = vadd.f32 1.0, %v1326_v15 }
 0x137   : > { %869 = vst [vmem:[%s1506_s30 + $0xf0] sm:$0xff] %v1328_v16 }
 0x138   : > { %v1330_v18 = vpop.eup %1329  ;;  %1331 = vrcp.f32 %v806_v17 }
 0x139   : > { %854 = vst [vmem:[%s1506_s30 + $0x78] sm:$0xff] %v1330_v18 }
 0x13e   : > { %v1332_v19 = vpop.eup %1331 }
 0x13f   : > { %870 = vst [vmem:[%s1506_s30 + $0xf8] sm:$0xff] %v1332_v19 }
 0x140 PF: > { %s13_s12 = sadd.s32 1, %s1339_s12  }
 0x141   : > { %p10_p4 = scmp.ge.s32.totalorder %s13_s12, 4  }
 0x143   :  { %12 = sbr.rel (!%p10_p4) target bundleno = 1 (0x1), region = 62 }

</bundles_post_ra>
